<compile_context>
chip_gen: v6e
topology: v6e:2x2x1
jax: 0.10.0
libtpu: 0.0.40
codegen_flags: <defaults>
</compile_context>

<pallas_src>
import functools

import jax
import jax.numpy as jnp
from jax.experimental import pallas as pl
from jax.experimental.pallas import tpu as pltpu

EPS = 1e-5  # nn.InstanceNorm2d default eps


def _resnet_block_kernel(x_ref, w1_ref, w2_ref, out_ref, pad_ref, acc_ref, *, H, W, C):
    """One grid step = one (channel-padded) image, fully resident in VMEM."""

    def reflect_pad_to_scratch(img):
        # ReflectionPad2d(1): fill the (H+2, W+2, C) scratch with plain ref
        # stores (no concatenate copies).  Columns are mirrored last so the
        # corners inherit the already row-mirrored values.
        pad_ref[pl.ds(1, H), pl.ds(1, W), :] = img
        pad_ref[pl.ds(0, 1), pl.ds(1, W), :] = img[1:2]
        pad_ref[pl.ds(H + 1, 1), pl.ds(1, W), :] = img[H - 2:H - 1]
        left = pad_ref[:, pl.ds(2, 1), :]
        pad_ref[:, pl.ds(0, 1), :] = left
        right = pad_ref[:, pl.ds(W - 1, 1), :]
        pad_ref[:, pl.ds(W + 1, 1), :] = right

    def conv3x3_instnorm(w_ref):
        """3x3 conv as 9 shifted MXU matmuls (bf16 operands, f32 scratch acc) + IN."""
        for dy in range(3):
            for dx in range(3):
                patch = pad_ref[pl.ds(dy, H), pl.ds(dx, W), :]
                patch = patch.astype(jnp.bfloat16).reshape(H * W, C)
                contrib = jnp.dot(patch, w_ref[dy, dx],
                                  preferred_element_type=jnp.float32)
                if dy == 0 and dx == 0:
                    acc_ref[...] = contrib
                else:
                    acc_ref[...] += contrib
        # InstanceNorm (affine=False).  Conv bias is omitted on purpose: it is
        # exactly cancelled by the mean subtraction.  Two-pass (mean, then
        # centered variance) for numerical robustness.
        acc = acc_ref[...]
        inv_n = 1.0 / float(H * W)
        mean = jnp.sum(acc, axis=0, keepdims=True) * inv_n           # (1, C)
        centered = acc - mean
        var = jnp.sum(centered * centered, axis=0, keepdims=True) * inv_n
        return centered * jax.lax.rsqrt(var + EPS)

    x = x_ref[0]                                            # (H, W, C) f32, kept for residual
    reflect_pad_to_scratch(x)
    h = jnp.maximum(conv3x3_instnorm(w1_ref), 0.0)          # stage 1 + ReLU
    reflect_pad_to_scratch(h.reshape(H, W, C))
    y = conv3x3_instnorm(w2_ref)                            # stage 2
    out_ref[0] = x + y.reshape(H, W, C)                     # residual add


def _vmem_capacity_bytes():
    try:
        return int(pltpu.get_tpu_info().vmem_capacity_bytes)
    except Exception:
        return 64 << 20  # conservative (v7x per-TC VMEM)


def resnet_block_nhwc(x_nhwc, w1, w2):
    """x_nhwc: (N, H, W, C) float32.  w*: (3, 3, Cin, Cout).  Returns NHWC float32.

    Keep activations NHWC across chained blocks; conv biases are intentionally
    not taken (exactly cancelled by InstanceNorm2d(affine=False)).
    """
    N, H, W, C = x_nhwc.shape
    Cp = max(128, ((C + 127) // 128) * 128)  # lane-dense channel axis

    x = x_nhwc.astype(jnp.float32)
    w1p = w1.astype(jnp.bfloat16)
    w2p = w2.astype(jnp.bfloat16)
    if Cp != C:
        x = jnp.pad(x, ((0, 0), (0, 0), (0, 0), (0, Cp - C)))
        w1p = jnp.pad(w1p, ((0, 0), (0, 0), (0, Cp - C), (0, Cp - C)))
        w2p = jnp.pad(w2p, ((0, 0), (0, 0), (0, Cp - C), (0, Cp - C)))

    Hp, Wp = H + 2, W + 2
    block_bytes = (
        2 * 2 * H * W * Cp * 4        # double-buffered x & out blocks (f32)
        + 2 * 2 * 9 * Cp * Cp * 2     # double-buffered bf16 weight sets
        + Hp * Wp * Cp * 4            # padded-image scratch (f32)
        + H * W * Cp * 4              # conv-tap accumulator scratch (f32)
        + 4 * H * W * Cp * 4          # live intermediates (h, centered, y) headroom
    )
    vmem_limit = int(min(max(2 * block_bytes, 16 << 20),
                         _vmem_capacity_bytes() * 3 // 4))

    out = pl.pallas_call(
        functools.partial(_resnet_block_kernel, H=H, W=W, C=Cp),
        out_shape=jax.ShapeDtypeStruct((N, H, W, Cp), jnp.float32),
        grid=(N,),
        in_specs=[
            pl.BlockSpec((1, H, W, Cp), lambda n: (n, 0, 0, 0)),
            pl.BlockSpec((3, 3, Cp, Cp), lambda n: (0, 0, 0, 0)),
            pl.BlockSpec((3, 3, Cp, Cp), lambda n: (0, 0, 0, 0)),
        ],
        out_specs=pl.BlockSpec((1, H, W, Cp), lambda n: (n, 0, 0, 0)),
        scratch_shapes=[
            pltpu.VMEM((Hp, Wp, Cp), jnp.float32),   # reflect-padded image/activation
            pltpu.VMEM((H * W, Cp), jnp.float32),    # conv-tap accumulator
        ],
        compiler_params=pltpu.CompilerParams(
            dimension_semantics=("parallel",),
            vmem_limit_bytes=vmem_limit),
    )(x, w1p, w2p)

    return out[..., :C]


def resnet_block_forward(x_nchw, w1, b1, w2, b2):
    """PyTorch-layout entry: x (N, C, H, W), w* (3,3,Cin,Cout), b* (C,)."""
    # Per-channel conv biases are exactly cancelled by InstanceNorm(affine=False);
    # this elision is ONLY valid for that norm configuration.
    del b1, b2
    # TODO(synk): keep activations NHWC across the 9 chained ResnetBlocks of the
    # full generator instead of transposing around every block.
    x = jnp.transpose(x_nchw, (0, 2, 3, 1))
    out = resnet_block_nhwc(x, w1, w2)
    return jnp.transpose(out, (0, 3, 1, 2))


def _reference_forward(x_nchw, w1, b1, w2, b2):
    """Pure-JAX reference (NCHW, with biases) for correctness check."""
    def conv(x, w, b):
        xp = jnp.pad(x, ((0, 0), (0, 0), (1, 1), (1, 1)), mode="reflect")
        w_oihw = jnp.transpose(w, (3, 2, 0, 1))  # (kh,kw,Ci,Co) -> (Co,Ci,kh,kw)
        y = jax.lax.conv_general_dilated(
            xp, w_oihw, window_strides=(1, 1), padding="VALID",
            dimension_numbers=("NCHW", "OIHW", "NCHW"))
        return y + b[None, :, None, None]

    def instnorm(y):
        m = jnp.mean(y, axis=(2, 3), keepdims=True)
        v = jnp.mean((y - m) ** 2, axis=(2, 3), keepdims=True)
        return (y - m) * jax.lax.rsqrt(v + EPS)

    h = jnp.maximum(instnorm(conv(x_nchw, w1, b1)), 0.0)
    return x_nchw + instnorm(conv(h, w2, b2))


if __name__ == "__main__":
    N, C, H, W = 2, 4, 16, 16  # dim = 4

    key = jax.random.PRNGKey(0)
    kx, kw1, kb1, kw2, kb2 = jax.random.split(key, 5)
    x = jax.random.normal(kx, (N, C, H, W), dtype=jnp.float32)

    # Deterministic synthetic conv params: weights (3,3,Cin,Cout), bias (Cout,)
    fan_in = C * 3 * 3
    bound = float(fan_in) ** -0.5
    w1 = jax.random.uniform(kw1, (3, 3, C, C), jnp.float32, -bound, bound)
    b1 = jax.random.uniform(kb1, (C,), jnp.float32, -bound, bound)
    w2 = jax.random.uniform(kw2, (3, 3, C, C), jnp.float32, -bound, bound)
    b2 = jax.random.uniform(kb2, (C,), jnp.float32, -bound, bound)

    out = resnet_block_forward(x, w1, b1, w2, b2)
    out = jax.block_until_ready(out)

    ref = jax.block_until_ready(_reference_forward(x, w1, b1, w2, b2))
    assert out.shape == (N, C, H, W)
    # bf16 matmul operands -> looser tolerance than pure-f32.
    assert jnp.allclose(out, ref, atol=5e-2, rtol=5e-2), float(
        jnp.max(jnp.abs(out - ref)))

    print("KERNEL_OK")
</pallas_src>

<mosaic_0001>
module attributes {stable_mosaic.version = 11 : i64} {
  func.func @_resnet_block_kernel(%arg0: i32, %arg1: memref<1x16x16x128xf32, #tpu.memory_space<vmem>>, %arg2: memref<3x3x128x128xbf16, #tpu.memory_space<vmem>>, %arg3: memref<3x3x128x128xbf16, #tpu.memory_space<vmem>>, %arg4: memref<1x16x16x128xf32, #tpu.memory_space<vmem>>, %arg5: memref<18x18x128xf32, #tpu.memory_space<vmem>>, %arg6: memref<256x128xf32, #tpu.memory_space<vmem>>) attributes {dimension_semantics = [#tpu.dimension_semantics<parallel>], iteration_bounds = array<i64: 2>, scalar_prefetch = 0 : i64, scratch_operands = 2 : i64, tpu.core_type = #tpu.core_type<tc>, window_params = [{transform_indices = @transform_0, window_bounds = array<i64: 1, 16, 16, 128>}, {pipeline_mode = #tpu.pipeline_mode<synchronous>, transform_indices = @transform_1, window_bounds = array<i64: 3, 3, 128, 128>}, {pipeline_mode = #tpu.pipeline_mode<synchronous>, transform_indices = @transform_2, window_bounds = array<i64: 3, 3, 128, 128>}, {transform_indices = @transform_3, window_bounds = array<i64: 1, 16, 16, 128>}]} {
    %c0 = arith.constant 0 : index
    %c0_0 = arith.constant 0 : index
    %c0_1 = arith.constant 0 : index
    %c0_2 = arith.constant 0 : index
    %0 = vector.load %arg1[%c0, %c0_0, %c0_1, %c0_2] : memref<1x16x16x128xf32, #tpu.memory_space<vmem>>, vector<1x16x16x128xf32>
    %1 = vector.shape_cast %0 : vector<1x16x16x128xf32> to vector<16x16x128xf32>
    %c1 = arith.constant 1 : index
    %c1_3 = arith.constant 1 : index
    %c0_4 = arith.constant 0 : index
    %2 = vector.load %arg5[%c1, %c1_3, %c0_4] : memref<18x18x128xf32, #tpu.memory_space<vmem>>, vector<16x16x128xf32>
    tpu.vector_store %arg5[%c1, %c1_3, %c0_4], %1 {strides = array<i32>} : memref<18x18x128xf32, #tpu.memory_space<vmem>>, vector<16x16x128xf32>,
    %3 = vector.extract_strided_slice %1 {offsets = [1, 0, 0], sizes = [1, 16, 128], strides = [1, 1, 1]} : vector<16x16x128xf32> to vector<1x16x128xf32>
    %c0_5 = arith.constant 0 : index
    %c1_6 = arith.constant 1 : index
    %c0_7 = arith.constant 0 : index
    %4 = vector.load %arg5[%c0_5, %c1_6, %c0_7] : memref<18x18x128xf32, #tpu.memory_space<vmem>>, vector<1x16x128xf32>
    tpu.vector_store %arg5[%c0_5, %c1_6, %c0_7], %3 {strides = array<i32>} : memref<18x18x128xf32, #tpu.memory_space<vmem>>, vector<1x16x128xf32>,
    %5 = vector.extract_strided_slice %1 {offsets = [14, 0, 0], sizes = [1, 16, 128], strides = [1, 1, 1]} : vector<16x16x128xf32> to vector<1x16x128xf32>
    %c17 = arith.constant 17 : index
    %c1_8 = arith.constant 1 : index
    %c0_9 = arith.constant 0 : index
    %6 = vector.load %arg5[%c17, %c1_8, %c0_9] : memref<18x18x128xf32, #tpu.memory_space<vmem>>, vector<1x16x128xf32>
    tpu.vector_store %arg5[%c17, %c1_8, %c0_9], %5 {strides = array<i32>} : memref<18x18x128xf32, #tpu.memory_space<vmem>>, vector<1x16x128xf32>,
    %c0_10 = arith.constant 0 : index
    %c2 = arith.constant 2 : index
    %c0_11 = arith.constant 0 : index
    %7 = vector.load %arg5[%c0_10, %c2, %c0_11] : memref<18x18x128xf32, #tpu.memory_space<vmem>>, vector<18x1x128xf32>
    %c0_12 = arith.constant 0 : index
    %c0_13 = arith.constant 0 : index
    %c0_14 = arith.constant 0 : index
    %8 = vector.load %arg5[%c0_12, %c0_13, %c0_14] : memref<18x18x128xf32, #tpu.memory_space<vmem>>, vector<18x1x128xf32>
    tpu.vector_store %arg5[%c0_12, %c0_13, %c0_14], %7 {strides = array<i32>} : memref<18x18x128xf32, #tpu.memory_space<vmem>>, vector<18x1x128xf32>,
    %c0_15 = arith.constant 0 : index
    %c15 = arith.constant 15 : index
    %c0_16 = arith.constant 0 : index
    %9 = vector.load %arg5[%c0_15, %c15, %c0_16] : memref<18x18x128xf32, #tpu.memory_space<vmem>>, vector<18x1x128xf32>
    %c0_17 = arith.constant 0 : index
    %c17_18 = arith.constant 17 : index
    %c0_19 = arith.constant 0 : index
    %10 = vector.load %arg5[%c0_17, %c17_18, %c0_19] : memref<18x18x128xf32, #tpu.memory_space<vmem>>, vector<18x1x128xf32>
    tpu.vector_store %arg5[%c0_17, %c17_18, %c0_19], %9 {strides = array<i32>} : memref<18x18x128xf32, #tpu.memory_space<vmem>>, vector<18x1x128xf32>,
    %c0_20 = arith.constant 0 : index
    %c0_21 = arith.constant 0 : index
    %c0_22 = arith.constant 0 : index
    %11 = vector.load %arg5[%c0_20, %c0_21, %c0_22] : memref<18x18x128xf32, #tpu.memory_space<vmem>>, vector<16x16x128xf32>
    %12 = arith.truncf %11 : vector<16x16x128xf32> to vector<16x16x128xbf16>
    %13 = vector.shape_cast %12 : vector<16x16x128xbf16> to vector<256x128xbf16>
    %c0_23 = arith.constant 0 : index
    %c0_24 = arith.constant 0 : index
    %c0_25 = arith.constant 0 : index
    %c0_26 = arith.constant 0 : index
    %14 = vector.load %arg2[%c0_23, %c0_24, %c0_25, %c0_26] : memref<3x3x128x128xbf16, #tpu.memory_space<vmem>>, vector<1x1x128x128xbf16>
    %15 = vector.shape_cast %14 : vector<1x1x128x128xbf16> to vector<128x128xbf16>
    %cst = arith.constant dense<0.000000e+00> : vector<256x128xf32>
    %16 = tpu.matmul %13, %15, %cst {dimension_numbers = #tpu.dot_dimension_numbers<[1], [0], [0], [1], [0, 0, 1, 1], [], []>} : vector<256x128xbf16>, vector<128x128xbf16>, vector<256x128xf32> -> vector<256x128xf32>
    %c0_27 = arith.constant 0 : index
    %c0_28 = arith.constant 0 : index
    %17 = vector.load %arg6[%c0_27, %c0_28] : memref<256x128xf32, #tpu.memory_space<vmem>>, vector<256x128xf32>
    tpu.vector_store %arg6[%c0_27, %c0_28], %16 {strides = array<i32>} : memref<256x128xf32, #tpu.memory_space<vmem>>, vector<256x128xf32>,
    %c0_29 = arith.constant 0 : index
    %c1_30 = arith.constant 1 : index
    %c0_31 = arith.constant 0 : index
    %18 = vector.load %arg5[%c0_29, %c1_30, %c0_31] : memref<18x18x128xf32, #tpu.memory_space<vmem>>, vector<16x16x128xf32>
    %19 = arith.truncf %18 : vector<16x16x128xf32> to vector<16x16x128xbf16>
    %20 = vector.shape_cast %19 : vector<16x16x128xbf16> to vector<256x128xbf16>
    %c0_32 = arith.constant 0 : index
    %c1_33 = arith.constant 1 : index
    %c0_34 = arith.constant 0 : index
    %c0_35 = arith.constant 0 : index
    %21 = vector.load %arg2[%c0_32, %c1_33, %c0_34, %c0_35] : memref<3x3x128x128xbf16, #tpu.memory_space<vmem>>, vector<1x1x128x128xbf16>
    %22 = vector.shape_cast %21 : vector<1x1x128x128xbf16> to vector<128x128xbf16>
    %cst_36 = arith.constant dense<0.000000e+00> : vector<256x128xf32>
    %23 = tpu.matmul %20, %22, %cst_36 {dimension_numbers = #tpu.dot_dimension_numbers<[1], [0], [0], [1], [0, 0, 1, 1], [], []>} : vector<256x128xbf16>, vector<128x128xbf16>, vector<256x128xf32> -> vector<256x128xf32>
    %c0_37 = arith.constant 0 : index
    %c0_38 = arith.constant 0 : index
    %24 = vector.load %arg6[%c0_37, %c0_38] : memref<256x128xf32, #tpu.memory_space<vmem>>, vector<256x128xf32>
    %25 = arith.addf %24, %23 : vector<256x128xf32>
    %c0_39 = arith.constant 0 : index
    %c0_40 = arith.constant 0 : index
    %26 = vector.load %arg6[%c0_39, %c0_40] : memref<256x128xf32, #tpu.memory_space<vmem>>, vector<256x128xf32>
    tpu.vector_store %arg6[%c0_39, %c0_40], %25 {strides = array<i32>} : memref<256x128xf32, #tpu.memory_space<vmem>>, vector<256x128xf32>,
    %c0_41 = arith.constant 0 : index
    %c2_42 = arith.constant 2 : index
    %c0_43 = arith.constant 0 : index
    %27 = vector.load %arg5[%c0_41, %c2_42, %c0_43] : memref<18x18x128xf32, #tpu.memory_space<vmem>>, vector<16x16x128xf32>
    %28 = arith.truncf %27 : vector<16x16x128xf32> to vector<16x16x128xbf16>
    %29 = vector.shape_cast %28 : vector<16x16x128xbf16> to vector<256x128xbf16>
    %c0_44 = arith.constant 0 : index
    %c2_45 = arith.constant 2 : index
    %c0_46 = arith.constant 0 : index
    %c0_47 = arith.constant 0 : index
    %30 = vector.load %arg2[%c0_44, %c2_45, %c0_46, %c0_47] : memref<3x3x128x128xbf16, #tpu.memory_space<vmem>>, vector<1x1x128x128xbf16>
    %31 = vector.shape_cast %30 : vector<1x1x128x128xbf16> to vector<128x128xbf16>
    %cst_48 = arith.constant dense<0.000000e+00> : vector<256x128xf32>
    %32 = tpu.matmul %29, %31, %cst_48 {dimension_numbers = #tpu.dot_dimension_numbers<[1], [0], [0], [1], [0, 0, 1, 1], [], []>} : vector<256x128xbf16>, vector<128x128xbf16>, vector<256x128xf32> -> vector<256x128xf32>
    %c0_49 = arith.constant 0 : index
    %c0_50 = arith.constant 0 : index
    %33 = vector.load %arg6[%c0_49, %c0_50] : memref<256x128xf32, #tpu.memory_space<vmem>>, vector<256x128xf32>
    %34 = arith.addf %33, %32 : vector<256x128xf32>
    %c0_51 = arith.constant 0 : index
    %c0_52 = arith.constant 0 : index
    %35 = vector.load %arg6[%c0_51, %c0_52] : memref<256x128xf32, #tpu.memory_space<vmem>>, vector<256x128xf32>
    tpu.vector_store %arg6[%c0_51, %c0_52], %34 {strides = array<i32>} : memref<256x128xf32, #tpu.memory_space<vmem>>, vector<256x128xf32>,
    %c1_53 = arith.constant 1 : index
    %c0_54 = arith.constant 0 : index
    %c0_55 = arith.constant 0 : index
    %36 = vector.load %arg5[%c1_53, %c0_54, %c0_55] : memref<18x18x128xf32, #tpu.memory_space<vmem>>, vector<16x16x128xf32>
    %37 = arith.truncf %36 : vector<16x16x128xf32> to vector<16x16x128xbf16>
    %38 = vector.shape_cast %37 : vector<16x16x128xbf16> to vector<256x128xbf16>
    %c1_56 = arith.constant 1 : index
    %c0_57 = arith.constant 0 : index
    %c0_58 = arith.constant 0 : index
    %c0_59 = arith.constant 0 : index
    %39 = vector.load %arg2[%c1_56, %c0_57, %c0_58, %c0_59] : memref<3x3x128x128xbf16, #tpu.memory_space<vmem>>, vector<1x1x128x128xbf16>
    %40 = vector.shape_cast %39 : vector<1x1x128x128xbf16> to vector<128x128xbf16>
    %cst_60 = arith.constant dense<0.000000e+00> : vector<256x128xf32>
    %41 = tpu.matmul %38, %40, %cst_60 {dimension_numbers = #tpu.dot_dimension_numbers<[1], [0], [0], [1], [0, 0, 1, 1], [], []>} : vector<256x128xbf16>, vector<128x128xbf16>, vector<256x128xf32> -> vector<256x128xf32>
    %c0_61 = arith.constant 0 : index
    %c0_62 = arith.constant 0 : index
    %42 = vector.load %arg6[%c0_61, %c0_62] : memref<256x128xf32, #tpu.memory_space<vmem>>, vector<256x128xf32>
    %43 = arith.addf %42, %41 : vector<256x128xf32>
    %c0_63 = arith.constant 0 : index
    %c0_64 = arith.constant 0 : index
    %44 = vector.load %arg6[%c0_63, %c0_64] : memref<256x128xf32, #tpu.memory_space<vmem>>, vector<256x128xf32>
    tpu.vector_store %arg6[%c0_63, %c0_64], %43 {strides = array<i32>} : memref<256x128xf32, #tpu.memory_space<vmem>>, vector<256x128xf32>,
    %c1_65 = arith.constant 1 : index
    %c1_66 = arith.constant 1 : index
    %c0_67 = arith.constant 0 : index
    %45 = vector.load %arg5[%c1_65, %c1_66, %c0_67] : memref<18x18x128xf32, #tpu.memory_space<vmem>>, vector<16x16x128xf32>
    %46 = arith.truncf %45 : vector<16x16x128xf32> to vector<16x16x128xbf16>
    %47 = vector.shape_cast %46 : vector<16x16x128xbf16> to vector<256x128xbf16>
    %c1_68 = arith.constant 1 : index
    %c1_69 = arith.constant 1 : index
    %c0_70 = arith.constant 0 : index
    %c0_71 = arith.constant 0 : index
    %48 = vector.load %arg2[%c1_68, %c1_69, %c0_70, %c0_71] : memref<3x3x128x128xbf16, #tpu.memory_space<vmem>>, vector<1x1x128x128xbf16>
    %49 = vector.shape_cast %48 : vector<1x1x128x128xbf16> to vector<128x128xbf16>
    %cst_72 = arith.constant dense<0.000000e+00> : vector<256x128xf32>
    %50 = tpu.matmul %47, %49, %cst_72 {dimension_numbers = #tpu.dot_dimension_numbers<[1], [0], [0], [1], [0, 0, 1, 1], [], []>} : vector<256x128xbf16>, vector<128x128xbf16>, vector<256x128xf32> -> vector<256x128xf32>
    %c0_73 = arith.constant 0 : index
    %c0_74 = arith.constant 0 : index
    %51 = vector.load %arg6[%c0_73, %c0_74] : memref<256x128xf32, #tpu.memory_space<vmem>>, vector<256x128xf32>
    %52 = arith.addf %51, %50 : vector<256x128xf32>
    %c0_75 = arith.constant 0 : index
    %c0_76 = arith.constant 0 : index
    %53 = vector.load %arg6[%c0_75, %c0_76] : memref<256x128xf32, #tpu.memory_space<vmem>>, vector<256x128xf32>
    tpu.vector_store %arg6[%c0_75, %c0_76], %52 {strides = array<i32>} : memref<256x128xf32, #tpu.memory_space<vmem>>, vector<256x128xf32>,
    %c1_77 = arith.constant 1 : index
    %c2_78 = arith.constant 2 : index
    %c0_79 = arith.constant 0 : index
    %54 = vector.load %arg5[%c1_77, %c2_78, %c0_79] : memref<18x18x128xf32, #tpu.memory_space<vmem>>, vector<16x16x128xf32>
    %55 = arith.truncf %54 : vector<16x16x128xf32> to vector<16x16x128xbf16>
    %56 = vector.shape_cast %55 : vector<16x16x128xbf16> to vector<256x128xbf16>
    %c1_80 = arith.constant 1 : index
    %c2_81 = arith.constant 2 : index
    %c0_82 = arith.constant 0 : index
    %c0_83 = arith.constant 0 : index
    %57 = vector.load %arg2[%c1_80, %c2_81, %c0_82, %c0_83] : memref<3x3x128x128xbf16, #tpu.memory_space<vmem>>, vector<1x1x128x128xbf16>
    %58 = vector.shape_cast %57 : vector<1x1x128x128xbf16> to vector<128x128xbf16>
    %cst_84 = arith.constant dense<0.000000e+00> : vector<256x128xf32>
    %59 = tpu.matmul %56, %58, %cst_84 {dimension_numbers = #tpu.dot_dimension_numbers<[1], [0], [0], [1], [0, 0, 1, 1], [], []>} : vector<256x128xbf16>, vector<128x128xbf16>, vector<256x128xf32> -> vector<256x128xf32>
    %c0_85 = arith.constant 0 : index
    %c0_86 = arith.constant 0 : index
    %60 = vector.load %arg6[%c0_85, %c0_86] : memref<256x128xf32, #tpu.memory_space<vmem>>, vector<256x128xf32>
    %61 = arith.addf %60, %59 : vector<256x128xf32>
    %c0_87 = arith.constant 0 : index
    %c0_88 = arith.constant 0 : index
    %62 = vector.load %arg6[%c0_87, %c0_88] : memref<256x128xf32, #tpu.memory_space<vmem>>, vector<256x128xf32>
    tpu.vector_store %arg6[%c0_87, %c0_88], %61 {strides = array<i32>} : memref<256x128xf32, #tpu.memory_space<vmem>>, vector<256x128xf32>,
    %c2_89 = arith.constant 2 : index
    %c0_90 = arith.constant 0 : index
    %c0_91 = arith.constant 0 : index
    %63 = vector.load %arg5[%c2_89, %c0_90, %c0_91] : memref<18x18x128xf32, #tpu.memory_space<vmem>>, vector<16x16x128xf32>
    %64 = arith.truncf %63 : vector<16x16x128xf32> to vector<16x16x128xbf16>
    %65 = vector.shape_cast %64 : vector<16x16x128xbf16> to vector<256x128xbf16>
    %c2_92 = arith.constant 2 : index
    %c0_93 = arith.constant 0 : index
    %c0_94 = arith.constant 0 : index
    %c0_95 = arith.constant 0 : index
    %66 = vector.load %arg2[%c2_92, %c0_93, %c0_94, %c0_95] : memref<3x3x128x128xbf16, #tpu.memory_space<vmem>>, vector<1x1x128x128xbf16>
    %67 = vector.shape_cast %66 : vector<1x1x128x128xbf16> to vector<128x128xbf16>
    %cst_96 = arith.constant dense<0.000000e+00> : vector<256x128xf32>
    %68 = tpu.matmul %65, %67, %cst_96 {dimension_numbers = #tpu.dot_dimension_numbers<[1], [0], [0], [1], [0, 0, 1, 1], [], []>} : vector<256x128xbf16>, vector<128x128xbf16>, vector<256x128xf32> -> vector<256x128xf32>
    %c0_97 = arith.constant 0 : index
    %c0_98 = arith.constant 0 : index
    %69 = vector.load %arg6[%c0_97, %c0_98] : memref<256x128xf32, #tpu.memory_space<vmem>>, vector<256x128xf32>
    %70 = arith.addf %69, %68 : vector<256x128xf32>
    %c0_99 = arith.constant 0 : index
    %c0_100 = arith.constant 0 : index
    %71 = vector.load %arg6[%c0_99, %c0_100] : memref<256x128xf32, #tpu.memory_space<vmem>>, vector<256x128xf32>
    tpu.vector_store %arg6[%c0_99, %c0_100], %70 {strides = array<i32>} : memref<256x128xf32, #tpu.memory_space<vmem>>, vector<256x128xf32>,
    %c2_101 = arith.constant 2 : index
    %c1_102 = arith.constant 1 : index
    %c0_103 = arith.constant 0 : index
    %72 = vector.load %arg5[%c2_101, %c1_102, %c0_103] : memref<18x18x128xf32, #tpu.memory_space<vmem>>, vector<16x16x128xf32>
    %73 = arith.truncf %72 : vector<16x16x128xf32> to vector<16x16x128xbf16>
    %74 = vector.shape_cast %73 : vector<16x16x128xbf16> to vector<256x128xbf16>
    %c2_104 = arith.constant 2 : index
    %c1_105 = arith.constant 1 : index
    %c0_106 = arith.constant 0 : index
    %c0_107 = arith.constant 0 : index
    %75 = vector.load %arg2[%c2_104, %c1_105, %c0_106, %c0_107] : memref<3x3x128x128xbf16, #tpu.memory_space<vmem>>, vector<1x1x128x128xbf16>
    %76 = vector.shape_cast %75 : vector<1x1x128x128xbf16> to vector<128x128xbf16>
    %cst_108 = arith.constant dense<0.000000e+00> : vector<256x128xf32>
    %77 = tpu.matmul %74, %76, %cst_108 {dimension_numbers = #tpu.dot_dimension_numbers<[1], [0], [0], [1], [0, 0, 1, 1], [], []>} : vector<256x128xbf16>, vector<128x128xbf16>, vector<256x128xf32> -> vector<256x128xf32>
    %c0_109 = arith.constant 0 : index
    %c0_110 = arith.constant 0 : index
    %78 = vector.load %arg6[%c0_109, %c0_110] : memref<256x128xf32, #tpu.memory_space<vmem>>, vector<256x128xf32>
    %79 = arith.addf %78, %77 : vector<256x128xf32>
    %c0_111 = arith.constant 0 : index
    %c0_112 = arith.constant 0 : index
    %80 = vector.load %arg6[%c0_111, %c0_112] : memref<256x128xf32, #tpu.memory_space<vmem>>, vector<256x128xf32>
    tpu.vector_store %arg6[%c0_111, %c0_112], %79 {strides = array<i32>} : memref<256x128xf32, #tpu.memory_space<vmem>>, vector<256x128xf32>,
    %c2_113 = arith.constant 2 : index
    %c2_114 = arith.constant 2 : index
    %c0_115 = arith.constant 0 : index
    %81 = vector.load %arg5[%c2_113, %c2_114, %c0_115] : memref<18x18x128xf32, #tpu.memory_space<vmem>>, vector<16x16x128xf32>
    %82 = arith.truncf %81 : vector<16x16x128xf32> to vector<16x16x128xbf16>
    %83 = vector.shape_cast %82 : vector<16x16x128xbf16> to vector<256x128xbf16>
    %c2_116 = arith.constant 2 : index
    %c2_117 = arith.constant 2 : index
    %c0_118 = arith.constant 0 : index
    %c0_119 = arith.constant 0 : index
    %84 = vector.load %arg2[%c2_116, %c2_117, %c0_118, %c0_119] : memref<3x3x128x128xbf16, #tpu.memory_space<vmem>>, vector<1x1x128x128xbf16>
    %85 = vector.shape_cast %84 : vector<1x1x128x128xbf16> to vector<128x128xbf16>
    %cst_120 = arith.constant dense<0.000000e+00> : vector<256x128xf32>
    %86 = tpu.matmul %83, %85, %cst_120 {dimension_numbers = #tpu.dot_dimension_numbers<[1], [0], [0], [1], [0, 0, 1, 1], [], []>} : vector<256x128xbf16>, vector<128x128xbf16>, vector<256x128xf32> -> vector<256x128xf32>
    %c0_121 = arith.constant 0 : index
    %c0_122 = arith.constant 0 : index
    %87 = vector.load %arg6[%c0_121, %c0_122] : memref<256x128xf32, #tpu.memory_space<vmem>>, vector<256x128xf32>
    %88 = arith.addf %87, %86 : vector<256x128xf32>
    %c0_123 = arith.constant 0 : index
    %c0_124 = arith.constant 0 : index
    %89 = vector.load %arg6[%c0_123, %c0_124] : memref<256x128xf32, #tpu.memory_space<vmem>>, vector<256x128xf32>
    tpu.vector_store %arg6[%c0_123, %c0_124], %88 {strides = array<i32>} : memref<256x128xf32, #tpu.memory_space<vmem>>, vector<256x128xf32>,
    %c0_125 = arith.constant 0 : index
    %c0_126 = arith.constant 0 : index
    %90 = vector.load %arg6[%c0_125, %c0_126] : memref<256x128xf32, #tpu.memory_space<vmem>>, vector<256x128xf32>
    %cst_127 = arith.constant dense<0.000000e+00> : vector<128xf32>
    %91 = vector.multi_reduction <add>, %90, %cst_127 [0] : vector<256x128xf32> to vector<128xf32>
    %92 = vector.shape_cast %91 : vector<128xf32> to vector<1x128xf32>
    %cst_128 = arith.constant 3.906250e-03 : f32
    %93 = vector.broadcast %cst_128 : f32 to vector<1x128xf32>
    %94 = arith.mulf %92, %93 : vector<1x128xf32>
    %95 = vector.broadcast %94 : vector<1x128xf32> to vector<256x128xf32>
    %96 = arith.subf %90, %95 : vector<256x128xf32>
    %97 = arith.mulf %96, %96 : vector<256x128xf32>
    %cst_129 = arith.constant dense<0.000000e+00> : vector<128xf32>
    %98 = vector.multi_reduction <add>, %97, %cst_129 [0] : vector<256x128xf32> to vector<128xf32>
    %99 = vector.shape_cast %98 : vector<128xf32> to vector<1x128xf32>
    %cst_130 = arith.constant 3.906250e-03 : f32
    %100 = vector.broadcast %cst_130 : f32 to vector<1x128xf32>
    %101 = arith.mulf %99, %100 : vector<1x128xf32>
    %cst_131 = arith.constant 9.99999974E-6 : f32
    %102 = vector.broadcast %cst_131 : f32 to vector<1x128xf32>
    %103 = arith.addf %101, %102 : vector<1x128xf32>
    %104 = math.rsqrt %103 : vector<1x128xf32>
    %105 = vector.broadcast %104 : vector<1x128xf32> to vector<256x128xf32>
    %106 = arith.mulf %96, %105 : vector<256x128xf32>
    %cst_132 = arith.constant 0.000000e+00 : f32
    %107 = vector.broadcast %cst_132 : f32 to vector<256x128xf32>
    %108 = arith.maximumf %106, %107 : vector<256x128xf32>
    %109 = vector.shape_cast %108 : vector<256x128xf32> to vector<16x16x128xf32>
    %c1_133 = arith.constant 1 : index
    %c1_134 = arith.constant 1 : index
    %c0_135 = arith.constant 0 : index
    %110 = vector.load %arg5[%c1_133, %c1_134, %c0_135] : memref<18x18x128xf32, #tpu.memory_space<vmem>>, vector<16x16x128xf32>
    tpu.vector_store %arg5[%c1_133, %c1_134, %c0_135], %109 {strides = array<i32>} : memref<18x18x128xf32, #tpu.memory_space<vmem>>, vector<16x16x128xf32>,
    %111 = vector.extract_strided_slice %109 {offsets = [1, 0, 0], sizes = [1, 16, 128], strides = [1, 1, 1]} : vector<16x16x128xf32> to vector<1x16x128xf32>
    %c0_136 = arith.constant 0 : index
    %c1_137 = arith.constant 1 : index
    %c0_138 = arith.constant 0 : index
    %112 = vector.load %arg5[%c0_136, %c1_137, %c0_138] : memref<18x18x128xf32, #tpu.memory_space<vmem>>, vector<1x16x128xf32>
    tpu.vector_store %arg5[%c0_136, %c1_137, %c0_138], %111 {strides = array<i32>} : memref<18x18x128xf32, #tpu.memory_space<vmem>>, vector<1x16x128xf32>,
    %113 = vector.extract_strided_slice %109 {offsets = [14, 0, 0], sizes = [1, 16, 128], strides = [1, 1, 1]} : vector<16x16x128xf32> to vector<1x16x128xf32>
    %c17_139 = arith.constant 17 : index
    %c1_140 = arith.constant 1 : index
    %c0_141 = arith.constant 0 : index
    %114 = vector.load %arg5[%c17_139, %c1_140, %c0_141] : memref<18x18x128xf32, #tpu.memory_space<vmem>>, vector<1x16x128xf32>
    tpu.vector_store %arg5[%c17_139, %c1_140, %c0_141], %113 {strides = array<i32>} : memref<18x18x128xf32, #tpu.memory_space<vmem>>, vector<1x16x128xf32>,
    %c0_142 = arith.constant 0 : index
    %c2_143 = arith.constant 2 : index
    %c0_144 = arith.constant 0 : index
    %115 = vector.load %arg5[%c0_142, %c2_143, %c0_144] : memref<18x18x128xf32, #tpu.memory_space<vmem>>, vector<18x1x128xf32>
    %c0_145 = arith.constant 0 : index
    %c0_146 = arith.constant 0 : index
    %c0_147 = arith.constant 0 : index
    %116 = vector.load %arg5[%c0_145, %c0_146, %c0_147] : memref<18x18x128xf32, #tpu.memory_space<vmem>>, vector<18x1x128xf32>
    tpu.vector_store %arg5[%c0_145, %c0_146, %c0_147], %115 {strides = array<i32>} : memref<18x18x128xf32, #tpu.memory_space<vmem>>, vector<18x1x128xf32>,
    %c0_148 = arith.constant 0 : index
    %c15_149 = arith.constant 15 : index
    %c0_150 = arith.constant 0 : index
    %117 = vector.load %arg5[%c0_148, %c15_149, %c0_150] : memref<18x18x128xf32, #tpu.memory_space<vmem>>, vector<18x1x128xf32>
    %c0_151 = arith.constant 0 : index
    %c17_152 = arith.constant 17 : index
    %c0_153 = arith.constant 0 : index
    %118 = vector.load %arg5[%c0_151, %c17_152, %c0_153] : memref<18x18x128xf32, #tpu.memory_space<vmem>>, vector<18x1x128xf32>
    tpu.vector_store %arg5[%c0_151, %c17_152, %c0_153], %117 {strides = array<i32>} : memref<18x18x128xf32, #tpu.memory_space<vmem>>, vector<18x1x128xf32>,
    %c0_154 = arith.constant 0 : index
    %c0_155 = arith.constant 0 : index
    %c0_156 = arith.constant 0 : index
    %119 = vector.load %arg5[%c0_154, %c0_155, %c0_156] : memref<18x18x128xf32, #tpu.memory_space<vmem>>, vector<16x16x128xf32>
    %120 = arith.truncf %119 : vector<16x16x128xf32> to vector<16x16x128xbf16>
    %121 = vector.shape_cast %120 : vector<16x16x128xbf16> to vector<256x128xbf16>
    %c0_157 = arith.constant 0 : index
    %c0_158 = arith.constant 0 : index
    %c0_159 = arith.constant 0 : index
    %c0_160 = arith.constant 0 : index
    %122 = vector.load %arg3[%c0_157, %c0_158, %c0_159, %c0_160] : memref<3x3x128x128xbf16, #tpu.memory_space<vmem>>, vector<1x1x128x128xbf16>
    %123 = vector.shape_cast %122 : vector<1x1x128x128xbf16> to vector<128x128xbf16>
    %cst_161 = arith.constant dense<0.000000e+00> : vector<256x128xf32>
    %124 = tpu.matmul %121, %123, %cst_161 {dimension_numbers = #tpu.dot_dimension_numbers<[1], [0], [0], [1], [0, 0, 1, 1], [], []>} : vector<256x128xbf16>, vector<128x128xbf16>, vector<256x128xf32> -> vector<256x128xf32>
    %c0_162 = arith.constant 0 : index
    %c0_163 = arith.constant 0 : index
    %125 = vector.load %arg6[%c0_162, %c0_163] : memref<256x128xf32, #tpu.memory_space<vmem>>, vector<256x128xf32>
    tpu.vector_store %arg6[%c0_162, %c0_163], %124 {strides = array<i32>} : memref<256x128xf32, #tpu.memory_space<vmem>>, vector<256x128xf32>,
    %c0_164 = arith.constant 0 : index
    %c1_165 = arith.constant 1 : index
    %c0_166 = arith.constant 0 : index
    %126 = vector.load %arg5[%c0_164, %c1_165, %c0_166] : memref<18x18x128xf32, #tpu.memory_space<vmem>>, vector<16x16x128xf32>
    %127 = arith.truncf %126 : vector<16x16x128xf32> to vector<16x16x128xbf16>
    %128 = vector.shape_cast %127 : vector<16x16x128xbf16> to vector<256x128xbf16>
    %c0_167 = arith.constant 0 : index
    %c1_168 = arith.constant 1 : index
    %c0_169 = arith.constant 0 : index
    %c0_170 = arith.constant 0 : index
    %129 = vector.load %arg3[%c0_167, %c1_168, %c0_169, %c0_170] : memref<3x3x128x128xbf16, #tpu.memory_space<vmem>>, vector<1x1x128x128xbf16>
    %130 = vector.shape_cast %129 : vector<1x1x128x128xbf16> to vector<128x128xbf16>
    %cst_171 = arith.constant dense<0.000000e+00> : vector<256x128xf32>
    %131 = tpu.matmul %128, %130, %cst_171 {dimension_numbers = #tpu.dot_dimension_numbers<[1], [0], [0], [1], [0, 0, 1, 1], [], []>} : vector<256x128xbf16>, vector<128x128xbf16>, vector<256x128xf32> -> vector<256x128xf32>
    %c0_172 = arith.constant 0 : index
    %c0_173 = arith.constant 0 : index
    %132 = vector.load %arg6[%c0_172, %c0_173] : memref<256x128xf32, #tpu.memory_space<vmem>>, vector<256x128xf32>
    %133 = arith.addf %132, %131 : vector<256x128xf32>
    %c0_174 = arith.constant 0 : index
    %c0_175 = arith.constant 0 : index
    %134 = vector.load %arg6[%c0_174, %c0_175] : memref<256x128xf32, #tpu.memory_space<vmem>>, vector<256x128xf32>
    tpu.vector_store %arg6[%c0_174, %c0_175], %133 {strides = array<i32>} : memref<256x128xf32, #tpu.memory_space<vmem>>, vector<256x128xf32>,
    %c0_176 = arith.constant 0 : index
    %c2_177 = arith.constant 2 : index
    %c0_178 = arith.constant 0 : index
    %135 = vector.load %arg5[%c0_176, %c2_177, %c0_178] : memref<18x18x128xf32, #tpu.memory_space<vmem>>, vector<16x16x128xf32>
    %136 = arith.truncf %135 : vector<16x16x128xf32> to vector<16x16x128xbf16>
    %137 = vector.shape_cast %136 : vector<16x16x128xbf16> to vector<256x128xbf16>
    %c0_179 = arith.constant 0 : index
    %c2_180 = arith.constant 2 : index
    %c0_181 = arith.constant 0 : index
    %c0_182 = arith.constant 0 : index
    %138 = vector.load %arg3[%c0_179, %c2_180, %c0_181, %c0_182] : memref<3x3x128x128xbf16, #tpu.memory_space<vmem>>, vector<1x1x128x128xbf16>
    %139 = vector.shape_cast %138 : vector<1x1x128x128xbf16> to vector<128x128xbf16>
    %cst_183 = arith.constant dense<0.000000e+00> : vector<256x128xf32>
    %140 = tpu.matmul %137, %139, %cst_183 {dimension_numbers = #tpu.dot_dimension_numbers<[1], [0], [0], [1], [0, 0, 1, 1], [], []>} : vector<256x128xbf16>, vector<128x128xbf16>, vector<256x128xf32> -> vector<256x128xf32>
    %c0_184 = arith.constant 0 : index
    %c0_185 = arith.constant 0 : index
    %141 = vector.load %arg6[%c0_184, %c0_185] : memref<256x128xf32, #tpu.memory_space<vmem>>, vector<256x128xf32>
    %142 = arith.addf %141, %140 : vector<256x128xf32>
    %c0_186 = arith.constant 0 : index
    %c0_187 = arith.constant 0 : index
    %143 = vector.load %arg6[%c0_186, %c0_187] : memref<256x128xf32, #tpu.memory_space<vmem>>, vector<256x128xf32>
    tpu.vector_store %arg6[%c0_186, %c0_187], %142 {strides = array<i32>} : memref<256x128xf32, #tpu.memory_space<vmem>>, vector<256x128xf32>,
    %c1_188 = arith.constant 1 : index
    %c0_189 = arith.constant 0 : index
    %c0_190 = arith.constant 0 : index
    %144 = vector.load %arg5[%c1_188, %c0_189, %c0_190] : memref<18x18x128xf32, #tpu.memory_space<vmem>>, vector<16x16x128xf32>
    %145 = arith.truncf %144 : vector<16x16x128xf32> to vector<16x16x128xbf16>
    %146 = vector.shape_cast %145 : vector<16x16x128xbf16> to vector<256x128xbf16>
    %c1_191 = arith.constant 1 : index
    %c0_192 = arith.constant 0 : index
    %c0_193 = arith.constant 0 : index
    %c0_194 = arith.constant 0 : index
    %147 = vector.load %arg3[%c1_191, %c0_192, %c0_193, %c0_194] : memref<3x3x128x128xbf16, #tpu.memory_space<vmem>>, vector<1x1x128x128xbf16>
    %148 = vector.shape_cast %147 : vector<1x1x128x128xbf16> to vector<128x128xbf16>
    %cst_195 = arith.constant dense<0.000000e+00> : vector<256x128xf32>
    %149 = tpu.matmul %146, %148, %cst_195 {dimension_numbers = #tpu.dot_dimension_numbers<[1], [0], [0], [1], [0, 0, 1, 1], [], []>} : vector<256x128xbf16>, vector<128x128xbf16>, vector<256x128xf32> -> vector<256x128xf32>
    %c0_196 = arith.constant 0 : index
    %c0_197 = arith.constant 0 : index
    %150 = vector.load %arg6[%c0_196, %c0_197] : memref<256x128xf32, #tpu.memory_space<vmem>>, vector<256x128xf32>
    %151 = arith.addf %150, %149 : vector<256x128xf32>
    %c0_198 = arith.constant 0 : index
    %c0_199 = arith.constant 0 : index
    %152 = vector.load %arg6[%c0_198, %c0_199] : memref<256x128xf32, #tpu.memory_space<vmem>>, vector<256x128xf32>
    tpu.vector_store %arg6[%c0_198, %c0_199], %151 {strides = array<i32>} : memref<256x128xf32, #tpu.memory_space<vmem>>, vector<256x128xf32>,
    %c1_200 = arith.constant 1 : index
    %c1_201 = arith.constant 1 : index
    %c0_202 = arith.constant 0 : index
    %153 = vector.load %arg5[%c1_200, %c1_201, %c0_202] : memref<18x18x128xf32, #tpu.memory_space<vmem>>, vector<16x16x128xf32>
    %154 = arith.truncf %153 : vector<16x16x128xf32> to vector<16x16x128xbf16>
    %155 = vector.shape_cast %154 : vector<16x16x128xbf16> to vector<256x128xbf16>
    %c1_203 = arith.constant 1 : index
    %c1_204 = arith.constant 1 : index
    %c0_205 = arith.constant 0 : index
    %c0_206 = arith.constant 0 : index
    %156 = vector.load %arg3[%c1_203, %c1_204, %c0_205, %c0_206] : memref<3x3x128x128xbf16, #tpu.memory_space<vmem>>, vector<1x1x128x128xbf16>
    %157 = vector.shape_cast %156 : vector<1x1x128x128xbf16> to vector<128x128xbf16>
    %cst_207 = arith.constant dense<0.000000e+00> : vector<256x128xf32>
    %158 = tpu.matmul %155, %157, %cst_207 {dimension_numbers = #tpu.dot_dimension_numbers<[1], [0], [0], [1], [0, 0, 1, 1], [], []>} : vector<256x128xbf16>, vector<128x128xbf16>, vector<256x128xf32> -> vector<256x128xf32>
    %c0_208 = arith.constant 0 : index
    %c0_209 = arith.constant 0 : index
    %159 = vector.load %arg6[%c0_208, %c0_209] : memref<256x128xf32, #tpu.memory_space<vmem>>, vector<256x128xf32>
    %160 = arith.addf %159, %158 : vector<256x128xf32>
    %c0_210 = arith.constant 0 : index
    %c0_211 = arith.constant 0 : index
    %161 = vector.load %arg6[%c0_210, %c0_211] : memref<256x128xf32, #tpu.memory_space<vmem>>, vector<256x128xf32>
    tpu.vector_store %arg6[%c0_210, %c0_211], %160 {strides = array<i32>} : memref<256x128xf32, #tpu.memory_space<vmem>>, vector<256x128xf32>,
    %c1_212 = arith.constant 1 : index
    %c2_213 = arith.constant 2 : index
    %c0_214 = arith.constant 0 : index
    %162 = vector.load %arg5[%c1_212, %c2_213, %c0_214] : memref<18x18x128xf32, #tpu.memory_space<vmem>>, vector<16x16x128xf32>
    %163 = arith.truncf %162 : vector<16x16x128xf32> to vector<16x16x128xbf16>
    %164 = vector.shape_cast %163 : vector<16x16x128xbf16> to vector<256x128xbf16>
    %c1_215 = arith.constant 1 : index
    %c2_216 = arith.constant 2 : index
    %c0_217 = arith.constant 0 : index
    %c0_218 = arith.constant 0 : index
    %165 = vector.load %arg3[%c1_215, %c2_216, %c0_217, %c0_218] : memref<3x3x128x128xbf16, #tpu.memory_space<vmem>>, vector<1x1x128x128xbf16>
    %166 = vector.shape_cast %165 : vector<1x1x128x128xbf16> to vector<128x128xbf16>
    %cst_219 = arith.constant dense<0.000000e+00> : vector<256x128xf32>
    %167 = tpu.matmul %164, %166, %cst_219 {dimension_numbers = #tpu.dot_dimension_numbers<[1], [0], [0], [1], [0, 0, 1, 1], [], []>} : vector<256x128xbf16>, vector<128x128xbf16>, vector<256x128xf32> -> vector<256x128xf32>
    %c0_220 = arith.constant 0 : index
    %c0_221 = arith.constant 0 : index
    %168 = vector.load %arg6[%c0_220, %c0_221] : memref<256x128xf32, #tpu.memory_space<vmem>>, vector<256x128xf32>
    %169 = arith.addf %168, %167 : vector<256x128xf32>
    %c0_222 = arith.constant 0 : index
    %c0_223 = arith.constant 0 : index
    %170 = vector.load %arg6[%c0_222, %c0_223] : memref<256x128xf32, #tpu.memory_space<vmem>>, vector<256x128xf32>
    tpu.vector_store %arg6[%c0_222, %c0_223], %169 {strides = array<i32>} : memref<256x128xf32, #tpu.memory_space<vmem>>, vector<256x128xf32>,
    %c2_224 = arith.constant 2 : index
    %c0_225 = arith.constant 0 : index
    %c0_226 = arith.constant 0 : index
    %171 = vector.load %arg5[%c2_224, %c0_225, %c0_226] : memref<18x18x128xf32, #tpu.memory_space<vmem>>, vector<16x16x128xf32>
    %172 = arith.truncf %171 : vector<16x16x128xf32> to vector<16x16x128xbf16>
    %173 = vector.shape_cast %172 : vector<16x16x128xbf16> to vector<256x128xbf16>
    %c2_227 = arith.constant 2 : index
    %c0_228 = arith.constant 0 : index
    %c0_229 = arith.constant 0 : index
    %c0_230 = arith.constant 0 : index
    %174 = vector.load %arg3[%c2_227, %c0_228, %c0_229, %c0_230] : memref<3x3x128x128xbf16, #tpu.memory_space<vmem>>, vector<1x1x128x128xbf16>
    %175 = vector.shape_cast %174 : vector<1x1x128x128xbf16> to vector<128x128xbf16>
    %cst_231 = arith.constant dense<0.000000e+00> : vector<256x128xf32>
    %176 = tpu.matmul %173, %175, %cst_231 {dimension_numbers = #tpu.dot_dimension_numbers<[1], [0], [0], [1], [0, 0, 1, 1], [], []>} : vector<256x128xbf16>, vector<128x128xbf16>, vector<256x128xf32> -> vector<256x128xf32>
    %c0_232 = arith.constant 0 : index
    %c0_233 = arith.constant 0 : index
    %177 = vector.load %arg6[%c0_232, %c0_233] : memref<256x128xf32, #tpu.memory_space<vmem>>, vector<256x128xf32>
    %178 = arith.addf %177, %176 : vector<256x128xf32>
    %c0_234 = arith.constant 0 : index
    %c0_235 = arith.constant 0 : index
    %179 = vector.load %arg6[%c0_234, %c0_235] : memref<256x128xf32, #tpu.memory_space<vmem>>, vector<256x128xf32>
    tpu.vector_store %arg6[%c0_234, %c0_235], %178 {strides = array<i32>} : memref<256x128xf32, #tpu.memory_space<vmem>>, vector<256x128xf32>,
    %c2_236 = arith.constant 2 : index
    %c1_237 = arith.constant 1 : index
    %c0_238 = arith.constant 0 : index
    %180 = vector.load %arg5[%c2_236, %c1_237, %c0_238] : memref<18x18x128xf32, #tpu.memory_space<vmem>>, vector<16x16x128xf32>
    %181 = arith.truncf %180 : vector<16x16x128xf32> to vector<16x16x128xbf16>
    %182 = vector.shape_cast %181 : vector<16x16x128xbf16> to vector<256x128xbf16>
    %c2_239 = arith.constant 2 : index
    %c1_240 = arith.constant 1 : index
    %c0_241 = arith.constant 0 : index
    %c0_242 = arith.constant 0 : index
    %183 = vector.load %arg3[%c2_239, %c1_240, %c0_241, %c0_242] : memref<3x3x128x128xbf16, #tpu.memory_space<vmem>>, vector<1x1x128x128xbf16>
    %184 = vector.shape_cast %183 : vector<1x1x128x128xbf16> to vector<128x128xbf16>
    %cst_243 = arith.constant dense<0.000000e+00> : vector<256x128xf32>
    %185 = tpu.matmul %182, %184, %cst_243 {dimension_numbers = #tpu.dot_dimension_numbers<[1], [0], [0], [1], [0, 0, 1, 1], [], []>} : vector<256x128xbf16>, vector<128x128xbf16>, vector<256x128xf32> -> vector<256x128xf32>
    %c0_244 = arith.constant 0 : index
    %c0_245 = arith.constant 0 : index
    %186 = vector.load %arg6[%c0_244, %c0_245] : memref<256x128xf32, #tpu.memory_space<vmem>>, vector<256x128xf32>
    %187 = arith.addf %186, %185 : vector<256x128xf32>
    %c0_246 = arith.constant 0 : index
    %c0_247 = arith.constant 0 : index
    %188 = vector.load %arg6[%c0_246, %c0_247] : memref<256x128xf32, #tpu.memory_space<vmem>>, vector<256x128xf32>
    tpu.vector_store %arg6[%c0_246, %c0_247], %187 {strides = array<i32>} : memref<256x128xf32, #tpu.memory_space<vmem>>, vector<256x128xf32>,
    %c2_248 = arith.constant 2 : index
    %c2_249 = arith.constant 2 : index
    %c0_250 = arith.constant 0 : index
    %189 = vector.load %arg5[%c2_248, %c2_249, %c0_250] : memref<18x18x128xf32, #tpu.memory_space<vmem>>, vector<16x16x128xf32>
    %190 = arith.truncf %189 : vector<16x16x128xf32> to vector<16x16x128xbf16>
    %191 = vector.shape_cast %190 : vector<16x16x128xbf16> to vector<256x128xbf16>
    %c2_251 = arith.constant 2 : index
    %c2_252 = arith.constant 2 : index
    %c0_253 = arith.constant 0 : index
    %c0_254 = arith.constant 0 : index
    %192 = vector.load %arg3[%c2_251, %c2_252, %c0_253, %c0_254] : memref<3x3x128x128xbf16, #tpu.memory_space<vmem>>, vector<1x1x128x128xbf16>
    %193 = vector.shape_cast %192 : vector<1x1x128x128xbf16> to vector<128x128xbf16>
    %cst_255 = arith.constant dense<0.000000e+00> : vector<256x128xf32>
    %194 = tpu.matmul %191, %193, %cst_255 {dimension_numbers = #tpu.dot_dimension_numbers<[1], [0], [0], [1], [0, 0, 1, 1], [], []>} : vector<256x128xbf16>, vector<128x128xbf16>, vector<256x128xf32> -> vector<256x128xf32>
    %c0_256 = arith.constant 0 : index
    %c0_257 = arith.constant 0 : index
    %195 = vector.load %arg6[%c0_256, %c0_257] : memref<256x128xf32, #tpu.memory_space<vmem>>, vector<256x128xf32>
    %196 = arith.addf %195, %194 : vector<256x128xf32>
    %c0_258 = arith.constant 0 : index
    %c0_259 = arith.constant 0 : index
    %197 = vector.load %arg6[%c0_258, %c0_259] : memref<256x128xf32, #tpu.memory_space<vmem>>, vector<256x128xf32>
    tpu.vector_store %arg6[%c0_258, %c0_259], %196 {strides = array<i32>} : memref<256x128xf32, #tpu.memory_space<vmem>>, vector<256x128xf32>,
    %c0_260 = arith.constant 0 : index
    %c0_261 = arith.constant 0 : index
    %198 = vector.load %arg6[%c0_260, %c0_261] : memref<256x128xf32, #tpu.memory_space<vmem>>, vector<256x128xf32>
    %cst_262 = arith.constant dense<0.000000e+00> : vector<128xf32>
    %199 = vector.multi_reduction <add>, %198, %cst_262 [0] : vector<256x128xf32> to vector<128xf32>
    %200 = vector.shape_cast %199 : vector<128xf32> to vector<1x128xf32>
    %cst_263 = arith.constant 3.906250e-03 : f32
    %201 = vector.broadcast %cst_263 : f32 to vector<1x128xf32>
    %202 = arith.mulf %200, %201 : vector<1x128xf32>
    %203 = vector.broadcast %202 : vector<1x128xf32> to vector<256x128xf32>
    %204 = arith.subf %198, %203 : vector<256x128xf32>
    %205 = arith.mulf %204, %204 : vector<256x128xf32>
    %cst_264 = arith.constant dense<0.000000e+00> : vector<128xf32>
    %206 = vector.multi_reduction <add>, %205, %cst_264 [0] : vector<256x128xf32> to vector<128xf32>
    %207 = vector.shape_cast %206 : vector<128xf32> to vector<1x128xf32>
    %cst_265 = arith.constant 3.906250e-03 : f32
    %208 = vector.broadcast %cst_265 : f32 to vector<1x128xf32>
    %209 = arith.mulf %207, %208 : vector<1x128xf32>
    %cst_266 = arith.constant 9.99999974E-6 : f32
    %210 = vector.broadcast %cst_266 : f32 to vector<1x128xf32>
    %211 = arith.addf %209, %210 : vector<1x128xf32>
    %212 = math.rsqrt %211 : vector<1x128xf32>
    %213 = vector.broadcast %212 : vector<1x128xf32> to vector<256x128xf32>
    %214 = arith.mulf %204, %213 : vector<256x128xf32>
    %215 = vector.shape_cast %214 : vector<256x128xf32> to vector<16x16x128xf32>
    %216 = arith.addf %1, %215 : vector<16x16x128xf32>
    %c0_267 = arith.constant 0 : index
    %c0_268 = arith.constant 0 : index
    %c0_269 = arith.constant 0 : index
    %c0_270 = arith.constant 0 : index
    %217 = vector.load %arg4[%c0_267, %c0_268, %c0_269, %c0_270] : memref<1x16x16x128xf32, #tpu.memory_space<vmem>>, vector<1x16x16x128xf32>
    %218 = vector.shape_cast %217 : vector<1x16x16x128xf32> to vector<16x16x128xf32>
    %219 = vector.shape_cast %216 : vector<16x16x128xf32> to vector<1x16x16x128xf32>
    tpu.vector_store %arg4[%c0_267, %c0_268, %c0_269, %c0_270], %219 {strides = array<i32>} : memref<1x16x16x128xf32, #tpu.memory_space<vmem>>, vector<1x16x16x128xf32>,
    return
  }
  func.func @transform_0(%arg0: i32) -> (i32, i32, i32, i32) {
    %c0_i32 = arith.constant 0 : i32
    %c0_i32_0 = arith.constant 0 : i32
    %c0_i32_1 = arith.constant 0 : i32
    %c0_i32_2 = arith.constant 0 : i32
    return %arg0, %c0_i32, %c0_i32_0, %c0_i32_1 : i32, i32, i32, i32
  }
  func.func @transform_1(%arg0: i32) -> (i32, i32, i32, i32) {
    %c0_i32 = arith.constant 0 : i32
    %c0_i32_0 = arith.constant 0 : i32
    %c0_i32_1 = arith.constant 0 : i32
    %c0_i32_2 = arith.constant 0 : i32
    %c0_i32_3 = arith.constant 0 : i32
    return %c0_i32, %c0_i32_0, %c0_i32_1, %c0_i32_2 : i32, i32, i32, i32
  }
  func.func @transform_2(%arg0: i32) -> (i32, i32, i32, i32) {
    %c0_i32 = arith.constant 0 : i32
    %c0_i32_0 = arith.constant 0 : i32
    %c0_i32_1 = arith.constant 0 : i32
    %c0_i32_2 = arith.constant 0 : i32
    %c0_i32_3 = arith.constant 0 : i32
    return %c0_i32, %c0_i32_0, %c0_i32_1, %c0_i32_2 : i32, i32, i32, i32
  }
  func.func @transform_3(%arg0: i32) -> (i32, i32, i32, i32) {
    %c0_i32 = arith.constant 0 : i32
    %c0_i32_0 = arith.constant 0 : i32
    %c0_i32_1 = arith.constant 0 : i32
    %c0_i32_2 = arith.constant 0 : i32
    return %arg0, %c0_i32, %c0_i32_0, %c0_i32_1 : i32, i32, i32, i32
  }
}

</mosaic_0001>

<bundles_post_ra>
// kernel: tpu_custom_call.1
= control target key start
LH: loop header
LB: loop body
LE: loop exit
PB: predicated region body
PF: predicated region fallthrough
CT: control target
= control target key end

     0   :  { %8 = vsyncpa [#allocation5], 0  ;;  %s12082_s0 = inlined_call_operand.hbm [shape: f32[2,16,16,128], index: 0, kind: input, shape index: {}]   ;;  %s12083_s1 = inlined_call_operand.hbm [shape: bf16[3,3,128,128], index: 1, kind: input, shape index: {}]   ;;  %s12084_s2 = inlined_call_operand.hbm [shape: bf16[3,3,128,128], index: 2, kind: input, shape index: {}]   ;;  %s12085_s3 = inlined_call_operand.hbm [shape: f32[2,16,16,128], index: 3, kind: output, shape index: {}]  }
   0x1   :  { %10 = vsyncpa [#allocation5 + $0x1], 0 }
   0x2   :  { %11 = vsyncpa [#allocation8], 0 }
   0x3   :  { %12 = vsyncpa [#allocation6], 0 }
   0x4   :  { %14 = vsyncpa [#allocation6 + $0x1], 0  ;;  %s9475_s12 = smov 0   ;;  %s9477_s13 = smov 0  }
   0x5   :  { %s9479_s14 = smov 0   ;;  %s9481_s15 = smov 0  }
   0x6 LB: > { %s9496_s16 = sadd.s32 4294967295, %s9443_s15   ;;  %s7614_s17 = sadd.s32 4294967294, %s9443_s15   ;;  %s9443_s15 = sphi %s9481_s15, %s12351_s15   ;;  %s9439_s14 = sphi %s9479_s14, %s12350_s14   ;;  %s9435_s13 = sphi %s9477_s13, %s12349_s13   ;;  %s9431_s12 = sphi %s9475_s12, %s12348_s12  }
   0x7   : > { %p40_p0 = scmp.ne.s32.totalorder %s9435_s13, %s9431_s12  ;;  %p12086_p1 = scmp.eq.s32.totalorder %s9496_s16, 0 }
   0x8   : > { %p112_p3 = scmp.eq.s32.totalorder %s7614_s17, 1  ;;  %p7615_p5 = scmp.ge.s32.totalorder %s9443_s15, 1 }
   0x9   : > { %p9505_p4 = por %p12086_p1, %p40_p0  ;;  %p119_p7 = scmp.lt.s32.totalorder %s9443_s15, 3 }
   0xa   : > { %p9510_p6 = por %p112_p3, %p40_p0  ;;  %s9445_s21 = smov [#allocation7]  }
   0xb   : > { %s12122_s18 = scalar_select %p9505_p4, 1, 0 }
   0xc   : > { %s12123_s19 = scalar_select %p9510_p6, 1, 0 }
   0xd   : > { %p9515_p8 = pnand %p7615_p5, %p119_p7  ;;  %s131_s22 = sshll.u32 %s9445_s21, 4  ;;  %s132_s22 = int_to_ptr.vmem [resolvable:$true] %s131_s22 }
   0xe   : > { %s9446_s24 = smov [#allocation9]   ;;  %s9306_s26 = scalar_lea.vmem %s132_s22, 9216 }
   0xf   : > { %s12124_s20 = scalar_select %p9515_p8, 1, 0 }
  0x10   : > { %p9086_p9 = pneg %p9515_p8  ;;  %s144_s25 = sshll.u32 %s9446_s24, 4  ;;  %s145_s25 = int_to_ptr.vmem [resolvable:$true] %s144_s25 }
  0x11   : > { %p9307_p13 = scmp.ne.s32.totalorder %s132_s22, %s9306_s26  ;;  %p9314_p5 = scmp.lt.s32.totalorder %s132_s22, %s132_s22 }
  0x12   : > { %p9524_p11 = pnand %p9086_p9, %p12086_p1  ;;  %p9315_p7 = scmp.lt.s32.totalorder %s9306_s26, %s9306_s26 }
  0x14   : > { %p9297_p12 = pneg %p9524_p11  ;;  %p9316_p10 = por %p9315_p7, %p9314_p5 }
  0x16   : > { %p9309_p0 = pnand %p9307_p13, %p9297_p12 }
  0x18   : > { %p9310_p3 = pneg %p9309_p0 }
  0x1a   : > { %p9317_p9 = pnand %p9316_p10, %p9310_p3 }
  0x1c   : > { %9320 = shalt.err (!%p9317_p9)
}
  0x1d   : > { %s9447_s27 = smov 64   ;;  %s9448_s28 = smov 4  }
  0x1e   : > { %9089 = dma.hbm_to_vmem [thread:$0]  (!%p9524_p11), %s12083_s1, 9216, %s132_s22, [#allocation8], %s9447_s27, %s9447_s27, %s9448_s28  }
  0x1f   : > { %s9332_s4 = scalar_lea.vmem %s145_s25, 9216  ;;  %p9340_p2 = scmp.lt.s32.totalorder %s145_s25, %s145_s25 }
  0x20   : > { %p9333_p1 = scmp.ne.s32.totalorder %s145_s25, %s9332_s4  ;;  %p9341_p6 = scmp.lt.s32.totalorder %s9332_s4, %s9332_s4 }
  0x22   : > { %p9335_p13 = pnand %p9333_p1, %p9297_p12  ;;  %p9342_p5 = por %p9341_p6, %p9340_p2 }
  0x24   : > { %p9336_p0 = pneg %p9335_p13 }
  0x26   : > { %p9343_p10 = pnand %p9342_p5, %p9336_p0 }
  0x28   : > { %9346 = shalt.err (!%p9343_p10)
}
  0x29   : > { %9092 = dma.hbm_to_vmem [thread:$0]  (!%p9524_p11), %s12084_s2, 9216, %s145_s25, [#allocation8], %s9447_s27, %s9447_s27, %s9448_s28  }
  0x2a   : > { %s9547_s7 = sadd.s32 1, %s9443_s15   ;;  %s27_s8 = sadd.s32 1, %s9439_s14 }
  0x2b   : > { %s24_s9 = ssub.s32 %s9443_s15, %s9547_s7  ;;  %p34_p1 = scmp.ne.s32.totalorder %s9439_s14, %s9435_s13 }
  0x2c   : > { %p25_p2 = scmp.eq.s32.totalorder %s24_s9, 0  ;;  %p35_p6 = scmp.eq.s32.totalorder %s9443_s15, 0 }
  0x2d   : > { %p12126_p12 = scmp.eq.s32.totalorder %s9496_s16, 1  ;;  %p9103_p7 = scmp.lt.s32.totalorder %s9443_s15, 2 }
  0x2e   : > { %s9563_s11 = scalar_select %p25_p2, %s9439_s14, %s27_s8  }
  0x2f   : > { %p9557_p3 = por %p12126_p12, %p34_p1  ;;  %p36_p9 = por %p35_p6, %p34_p1 }
  0x30   : > { %s158_s17 = sand.u32 1, %s9439_s14   ;;  %s7776_s22 = sshll.u32 %s9443_s15, 12 }
  0x31   : > { %s12127_s10 = scalar_select %p9557_p3, 1, 0 }
  0x32   : > { %s7619_s21 = sshll.u32 %s158_s17, 8  ;;  %s9570_s25 = scalar_lea.hbm %s12082_s0, %s7776_s22 }
  0x33   : > { %s162_s26 = scalar_lea.vmem [#allocation4], %s7619_s21  ;;  %p9574_p11 = pnand %p9103_p7, %p36_p9 }
  0x34   : > { %s169_s27 = sshll.u32 %s162_s26, 4  ;;  %s9578_s29 = scalar_lea.sflag [#allocation5], %s158_s17  ;;  %s9572_s27 = int_to_ptr.vmem [resolvable:$true] %s169_s27 }
  0x35   : > { %s9347_s30 = scalar_lea.hbm %s9570_s25, 4096  ;;  %p9349_p0 = pneg %p9574_p11 }
  0x36   : > { %p9348_p13 = scmp.ne.s32.totalorder %s9570_s25, %s9347_s30  ;;  %s9352_s6 = scalar_lea.hbm %s12082_s0, 8192 }
  0x37   : > { %p9353_p1 = scmp.lt.s32.totalorder %s9570_s25, %s12082_s0  ;;  %p9354_p2 = scmp.lt.s32.totalorder %s9352_s6, %s9347_s30 }
  0x38   : > { %p9350_p5 = pnand %p9349_p0, %p9348_p13 }
  0x39   : > { %p9355_p6 = por %p9354_p2, %p9353_p1 }
  0x3a   : > { %p9351_p10 = pneg %p9350_p5 }
  0x3c   : > { %p9356_p12 = pnand %p9355_p6, %p9351_p10 }
  0x3e   : > { %9359 = shalt.err (!%p9356_p12)
}
  0x3f   : > { %s9360_s17 = scalar_lea.vmem %s9572_s27, 4096  ;;  %s9449_s21 = smov [#allocation4]  }
  0x40   : > { %p9361_p7 = scmp.ne.s32.totalorder %s9572_s27, %s9360_s17  ;;  %s9365_s22 = sshll.u32 %s9449_s21, 4  ;;  %s9366_s22 = int_to_ptr.vmem [resolvable:$false] %s9365_s22 }
  0x41   : > { %s9367_s23 = scalar_lea.vmem %s9366_s22, 8192  ;;  %p9368_p5 = scmp.lt.s32.totalorder %s9572_s27, %s9366_s22 }
  0x42   : > { %p9363_p9 = pnand %p9361_p7, %p9349_p0  ;;  %p9369_p3 = scmp.lt.s32.totalorder %s9367_s23, %s9360_s17 }
  0x44   : > { %p9364_p13 = pneg %p9363_p9  ;;  %p9370_p4 = por %p9369_p3, %p9368_p5 }
  0x46   : > { %p9371_p8 = pnand %p9370_p4, %p9364_p13 }
  0x48   : > { %9374 = shalt.err (!%p9371_p8)
}
  0x49   : > { %s9450_s24 = smov 128   ;;  %s9451_s26 = smov 8  }
  0x4a   : > { %9096 = dma.hbm_to_vmem [thread:$0]  (!%p9574_p11), %s9570_s25, 4096, %s9572_s27, %s9578_s29, %s9450_s24, %s9450_s24, %s9451_s26  }
  0x4b   : > { %p12129_p0 = scmp.ne.s32.totalorder %s12124_s20, 0 }
  0x4d   : > { %181 = sbr.rel (%p12129_p0) target bundleno = 1470 (0x5be), region = 32 }
  0x52   : > { %s9602_s30 = sand.u32 1, %s9435_s13   ;;  %p12130_p4 = scmp.ne.s32.totalorder %s12122_s18, 0 }
  0x53   : > { %s7623_s4 = sshll.u32 %s9602_s30, 8  ;;  %s184_s5 = scalar_lea.sflag [#allocation5], %s9602_s30 }
  0x54   : > { %s9608_s6 = scalar_lea.vmem [#allocation4], %s7623_s4 }
  0x55   : > { %9418 = dma.done.wait (%p12130_p4), %s184_s5, 4096  }
  0x56   : > { %9420 = vsyncadd (%p12130_p4), %s184_s5, 4294963200  ;;  %p12131_p8 = scmp.eq.s32.totalorder %s9496_s16, 0 }
  0x58   : > { %9422 = dma.done.wait (%p12131_p8), [#allocation8], 18432   ;;  %p12132_p3 = pmov %p12131_p8 }
  0x59   : > { %v9147_v0 = vld [vmem:[#allocation7 + $0x38] sm:$0xff]   ;;  %v9149_v2 = vld [vmem:[#allocation7 + $0x30] sm:$0xff]   ;;  %v9151_v4 = vld [vmem:[#allocation7 + $0x28] sm:$0xff]   ;;  %s11950_s18 = scalar_lea.vmem [#allocation10], %s7623_s4  ;;  %s7777_s20 = sshll.u32 %s9496_s16, 12 }
  0x5a   : > { %9424 = vsyncadd (%p12132_p3), [#allocation8], 4294948864  ;;  %v9148_v1 = vld [vmem:[#allocation7 + $0x78] sm:$0xff]   ;;  %8210 = vmatprep.subr.bf16.mxu0 %v9147_v0  ;;  %v9150_v3 = vld [vmem:[#allocation7 + $0x70] sm:$0xff]   ;;  %s7522_s25 = sshll.u32 %s11950_s18, 4  ;;  %s12021_s28 = scalar_lea.hbm %s12085_s3, %s7777_s20  ;;  %s12023_s25 = int_to_ptr.vmem [resolvable:$true] %s7522_s25 }
  0x5b   : > { %8258 = vmatprep.subr.bf16.mxu1 %v9148_v1  ;;  %8211 = vmatpush3.bf16.msra.mxu0 %v9147_v0  ;;  %v9152_v5 = vld [vmem:[#allocation7 + $0x68] sm:$0xff]   ;;  %v9153_v6 = vld [vmem:[#allocation7 + $0x20] sm:$0xff]   ;;  %v9155_v8 = vld [vmem:[#allocation7 + $0x18] sm:$0xff]   ;;  %s7509_s29 = scalar_lea.sflag [#allocation6], %s9602_s30  ;;  %s9375_s8 = scalar_lea.vmem %s12023_s25, 4096 }
  0x5c   : > { %8259 = vmatpush3.bf16.msra.mxu1 %v9148_v1  ;;  %8212 = vmatprep.subr.bf16.mxu0 %v9149_v2  ;;  %v9154_v7 = vld [vmem:[#allocation7 + $0x60] sm:$0xff]   ;;  %v9156_v9 = vld [vmem:[#allocation7 + $0x58] sm:$0xff]   ;;  %v9157_v10 = vld [vmem:[#allocation7 + $0x10] sm:$0xff]   ;;  %p9376_p11 = scmp.ne.s32.totalorder %s12023_s25, %s9375_s8  ;;  %p12345_p10 = scmp.ne.s32.totalorder %s12127_s10, 0 }
  0x5d   : > { %8260 = vmatprep.subr.bf16.mxu1 %v9150_v3  ;;  %v9158_v11 = vld [vmem:[#allocation7 + $0x50] sm:$0xff]   ;;  %v9622_v13 = vld [vmem:[%s9608_s6 + $0x18] sm:$0xff]  ;;  %v9625_v14 = vld [vmem:[%s9608_s6] sm:$0xff]  ;;  %s9452_s9 = smov [#allocation10]  }
  0x5e   : > { %v9619_v12 = vld [vmem:[%s9608_s6 + $0x10] sm:$0xff]  ;;  %12134 = vst [vmem:[#allocation15_spill] sm:$0xff] %v9622_v13  ;;  %12135 = vst [vmem:[#allocation16_spill] sm:$0xff] %v9625_v14  ;;  %v9636_v16 = vld [vmem:[%s9608_s6 + $0x8] sm:$0xff]  ;;  %p9377_p1 = pnand %p9376_p11, %p12345_p10  ;;  %s9379_s17 = sshll.u32 %s9452_s9, 4  ;;  %s9380_s17 = int_to_ptr.vmem [resolvable:$false] %s9379_s17 }
  0x5f   : > { %8213 = vmatpush3.bf16.msra.mxu0 %v9149_v2  ;;  %12133 = vst [vmem:[#allocation14_spill] sm:$0xff] %v9619_v12  ;;  %284 = vst [vmem:[#allocation2 + $0x1] sm:$0xff] %v9619_v12  ;;  %v9633_v15 = vpack.c.bf16 %v9622_v13, %v9619_v12  ;;  %v9159_v17 = vld [vmem:[#allocation7 + $0x8] sm:$0xff]   ;;  %v9641_v18 = vld [vmem:[%s9608_s6 + $0x20] sm:$0xff]  ;;  %v699_v45 = vpack.c.bf16 %v9636_v16, %v9625_v14  ;;  %s9381_s21 = scalar_lea.vmem %s9380_s17, 8192  ;;  %p9382_p6 = scmp.lt.s32.totalorder %s12023_s25, %s9380_s17 }
  0x60   : > { %8261 = vmatpush3.bf16.msra.mxu1 %v9150_v3  ;;  %8214 = vmatprep.subr.bf16.mxu0 %v9151_v4  ;;  %285 = vst [vmem:[#allocation2 + $0x9] sm:$0xff] %v9622_v13  ;;  %254 = vst [vmem:[#allocation2 + $0x31] sm:$0xff] %v9619_v12  ;;  %v9644_v19 = vld [vmem:[%s9608_s6 + $0x28] sm:$0xff]  ;;  %v9650_v21 = vld [vmem:[%s9608_s6 + $0x30] sm:$0xff]  ;;  %p9378_p2 = pneg %p9377_p1  ;;  %p9383_p12 = scmp.lt.s32.totalorder %s9381_s21, %s9375_s8 }
  0x61   : > { %8262 = vmatprep.subr.bf16.mxu1 %v9152_v5  ;;  %255 = vst [vmem:[#allocation2 + $0x39] sm:$0xff] %v9622_v13  ;;  %12136 = vst [vmem:[#allocation17_spill] sm:$0xff] %v9636_v16  ;;  %v9160_v20 = vld [vmem:[#allocation7 + $0x48] sm:$0xff]   ;;  %8274 = vmatprep.mubr.bf16.mxu1 %v9633_v15  ;;  %v9653_v22 = vld [vmem:[%s9608_s6 + $0x38] sm:$0xff]  ;;  %v701_v3 = vpack.c.bf16 %v9644_v19, %v9641_v18 }
  0x62   : > { %252 = vst [vmem:[#allocation2 + $0x19] sm:$0xff] %v9625_v14  ;;  %253 = vst [vmem:[#allocation2 + $0x21] sm:$0xff] %v9636_v16  ;;  %v9656_v23 = vld [vmem:[%s9608_s6 + $0x40] sm:$0xff]  ;;  %v9661_v24 = vld [vmem:[%s9608_s6 + $0x48] sm:$0xff]  ;;  %p9384_p7 = por %p9383_p12, %p9382_p6 }
  0x63   : > { %8215 = vmatpush3.bf16.msra.mxu0 %v9151_v4  ;;  %12137 = vst [vmem:[#allocation18_spill] sm:$0xff] %v9641_v18  ;;  %12138 = vst [vmem:[#allocation19_spill] sm:$0xff] %v9644_v19  ;;  %v9666_v25 = vld [vmem:[%s9608_s6 + $0x50] sm:$0xff]  ;;  %v9669_v26 = vld [vmem:[%s9608_s6 + $0x58] sm:$0xff] }
  0x64   : > { %8263 = vmatpush3.bf16.msra.mxu1 %v9152_v5  ;;  %8216 = vmatprep.subr.bf16.mxu0 %v9153_v6  ;;  %256 = vst [vmem:[#allocation2 + $0x49] sm:$0xff] %v9641_v18  ;;  %257 = vst [vmem:[#allocation2 + $0x51] sm:$0xff] %v9644_v19  ;;  %v9674_v27 = vld [vmem:[%s9608_s6 + $0x60] sm:$0xff]  ;;  %v9677_v28 = vld [vmem:[%s9608_s6 + $0x68] sm:$0xff]  ;;  %p9385_p9 = pnand %p9384_p7, %p9378_p2 }
  0x65   : > { %8264 = vmatprep.subr.bf16.mxu1 %v9154_v7  ;;  %12139 = vst [vmem:[#allocation20_spill] sm:$0xff] %v9650_v21  ;;  %12140 = vst [vmem:[#allocation21_spill] sm:$0xff] %v9653_v22  ;;  %v9161_v29 = vld [vmem:[#allocation7] sm:$0xff]   ;;  %v9682_v35 = vld [vmem:[%s9608_s6 + $0x70] sm:$0xff] }
  0x66   : > { %12141 = vst [vmem:[#allocation22_spill] sm:$0xff] %v9656_v23  ;;  %258 = vst [vmem:[#allocation2 + $0x61] sm:$0xff] %v9650_v21  ;;  %v289_v30 = vld [vmem:[#allocation2 + $0x2] sm:$0x1]  ;;  %v9162_v32 = vld [vmem:[#allocation7 + $0x40] sm:$0xff]  }
  0x67   : > { %8217 = vmatpush3.bf16.msra.mxu0 %v9153_v6  ;;  %259 = vst [vmem:[#allocation2 + $0x69] sm:$0xff] %v9653_v22  ;;  %12142 = vst [vmem:[#allocation23_spill] sm:$0xff] %v9661_v24  ;;  %v291_v33 = vld [vmem:[#allocation2 + $0x32] sm:$0x1]  ;;  %v9685_v36 = vld [vmem:[%s9608_s6 + $0x78] sm:$0xff]  ;;  %v9727_v6 = vpack.c.bf16 %v9653_v22, %v9650_v21 }
  0x68   : > { %8265 = vmatpush3.bf16.msra.mxu1 %v9154_v7  ;;  %8218 = vmatprep.subr.bf16.mxu0 %v9155_v8  ;;  %260 = vst [vmem:[#allocation2 + $0x79] sm:$0xff] %v9656_v23  ;;  %261 = vst [vmem:[#allocation2 + $0x81] sm:$0xff] %v9661_v24  ;;  %v9163_v37 = vld [vmem:[#allocation7 + $0xb8] sm:$0xff]   ;;  %v9690_v41 = vld [vmem:[%s9608_s6 + $0x80] sm:$0xff] }
  0x69   : > { %8266 = vmatprep.subr.bf16.mxu1 %v9156_v9  ;;  %12143 = vst [vmem:[#allocation24_spill] sm:$0xff] %v9666_v25  ;;  %12144 = vst [vmem:[#allocation25_spill] sm:$0xff] %v9669_v26  ;;  %v290_v31 = vld [vmem:[#allocation2 + $0x1a] sm:$0x1]  ;;  %v362_v40 = vld [vmem:[#allocation2 + $0x8] sm:$0xff] }
  0x6a   : > { %262 = vst [vmem:[#allocation2 + $0x91] sm:$0xff] %v9666_v25  ;;  %263 = vst [vmem:[#allocation2 + $0x99] sm:$0xff] %v9669_v26  ;;  %v9693_v42 = vld [vmem:[%s9608_s6 + $0x88] sm:$0xff]  ;;  %v364_v43 = vld [vmem:[#allocation2 + $0x20] sm:$0xff] }
  0x6b   : > { %8219 = vmatpush3.bf16.msra.mxu0 %v9155_v8  ;;  %12145 = vst [vmem:[#allocation26_spill] sm:$0xff] %v9674_v27  ;;  %12146 = vst [vmem:[#allocation27_spill] sm:$0xff] %v9677_v28  ;;  %v292_v34 = vld [vmem:[#allocation2 + $0x4a] sm:$0x1]  ;;  %v366_v46 = vld [vmem:[#allocation2 + $0x38] sm:$0xff] }
  0x6c   : > { %8267 = vmatpush3.bf16.msra.mxu1 %v9156_v9  ;;  %8220 = vmatprep.subr.bf16.mxu0 %v9157_v10  ;;  %264 = vst [vmem:[#allocation2 + $0xa9] sm:$0xff] %v9674_v27  ;;  %265 = vst [vmem:[#allocation2 + $0xb1] sm:$0xff] %v9677_v28  ;;  %v9164_v54 = vld [vmem:[#allocation7 + $0xb0] sm:$0xff]   ;;  %v9168_v55 = vld [vmem:[#allocation7 + $0xf8] sm:$0xff]  }
  0x6d   : > { %8268 = vmatprep.subr.bf16.mxu1 %v9158_v11  ;;  %307 = vst [vmem:[#allocation2] sm:$0x1] %v289_v30  ;;  %308 = vst [vmem:[#allocation2 + $0x18] sm:$0x1] %v290_v31  ;;  %v293_v38 = vld [vmem:[#allocation2 + $0x62] sm:$0x1] }
  0x6e   : > { %309 = vst [vmem:[#allocation2 + $0x30] sm:$0x1] %v291_v33  ;;  %310 = vst [vmem:[#allocation2 + $0x48] sm:$0x1] %v292_v34  ;;  %v368_v57 = vld [vmem:[#allocation2 + $0x50] sm:$0xff]  ;;  %v370_v58 = vld [vmem:[#allocation2 + $0x68] sm:$0xff] }
  0x6f   : > { %8221 = vmatpush3.bf16.msra.mxu0 %v9157_v10  ;;  %12147 = vst [vmem:[#allocation28_spill] sm:$0xff] %v9682_v35  ;;  %12148 = vst [vmem:[#allocation29_spill] sm:$0xff] %v9685_v36  ;;  %v294_v39 = vld [vmem:[#allocation2 + $0x7a] sm:$0x1]  ;;  %v9169_v60 = vld [vmem:[#allocation7 + $0xf0] sm:$0xff]  }
  0x70   : > { %8269 = vmatpush3.bf16.msra.mxu1 %v9158_v11  ;;  %8222 = vmatprep.subr.bf16.mxu0 %v9159_v17  ;;  %266 = vst [vmem:[#allocation2 + $0xc1] sm:$0xff] %v9682_v35  ;;  %267 = vst [vmem:[#allocation2 + $0xc9] sm:$0xff] %v9685_v36  ;;  %v9165_v59 = vld [vmem:[#allocation7 + $0xa8] sm:$0xff]   ;;  %v9707_v63 = vld [vmem:[%s9608_s6 + $0x90] sm:$0xff] }
  0x71   : > { %8270 = vmatprep.subr.bf16.mxu1 %v9160_v20  ;;  %311 = vst [vmem:[#allocation2 + $0x60] sm:$0x1] %v293_v38  ;;  %312 = vst [vmem:[#allocation2 + $0x78] sm:$0x1] %v294_v39  ;;  %v295_v44 = vld [vmem:[#allocation2 + $0x92] sm:$0x1] }
  0x72   : > { %12149 = vst [vmem:[#allocation30_spill] sm:$0xff] %v9690_v41  ;;  %12150 = vst [vmem:[#allocation31_spill] sm:$0xff] %v9693_v42  ;;  %v9710_v1 = vld [vmem:[%s9608_s6 + $0x98] sm:$0xff]  ;;  %v9714_v2 = vld [vmem:[%s9608_s6 + $0xa0] sm:$0xff] }
  0x73   : > { %8223 = vmatpush3.bf16.msra.mxu0 %v9159_v17  ;;  %268 = vst [vmem:[#allocation2 + $0xd9] sm:$0xff] %v9690_v41  ;;  %269 = vst [vmem:[#allocation2 + $0xe1] sm:$0xff] %v9693_v42  ;;  %v296_v47 = vld [vmem:[#allocation2 + $0xaa] sm:$0x1]  ;;  %v9720_v4 = vld [vmem:[%s9608_s6 + $0xa8] sm:$0xff] }
  0x74   : > { %8271 = vmatpush3.bf16.msra.mxu1 %v9160_v20  ;;  %8224 = vmatprep.subr.bf16.mxu0 %v9161_v29  ;;  %313 = vst [vmem:[#allocation2 + $0x90] sm:$0x1] %v295_v44  ;;  %v361_v48 = vld [vmem:[#allocation2] sm:$0xff]  ;;  %v363_v49 = vld [vmem:[#allocation2 + $0x18] sm:$0xff]  ;;  %314 = vst [vmem:[#allocation2 + $0xa8] sm:$0x1] %v296_v47 }
  0x75   : > { %8272 = vmatprep.subr.bf16.mxu1 %v9162_v32  ;;  %v393_v50 = vpack.c.bf16 %v362_v40, %v361_v48  ;;  %v9699_v51 = vpack.c.bf16 %v364_v43, %v363_v49  ;;  %v365_v52 = vld [vmem:[#allocation2 + $0x30] sm:$0xff]  ;;  %v367_v61 = vld [vmem:[#allocation2 + $0x48] sm:$0xff]  ;;  %12151 = vst [vmem:[#allocation32_spill] sm:$0xff] %v9707_v63  ;;  %12152 = vst [vmem:[#allocation33_spill] sm:$0xff] %v9710_v1  ;;  %v9759_v40 = vpack.c.bf16 %v9669_v26, %v9666_v25 }
  0x76   : > { %v9701_v53 = vpack.c.bf16 %v366_v46, %v365_v52  ;;  %270 = vst [vmem:[#allocation2 + $0xf1] sm:$0xff] %v9707_v63  ;;  %12153 = vst [vmem:[#allocation34_spill] sm:$0xff] %v9714_v2  ;;  %v9723_v5 = vpack.c.bf16 %v368_v57, %v367_v61  ;;  %v9166_v8 = vld [vmem:[#allocation7 + $0xa0] sm:$0xff]   ;;  %v9733_v9 = vld [vmem:[%s9608_s6 + $0xb0] sm:$0xff] }
  0x77   : > { %8225 = vmatpush3.bf16.msra.mxu0 %v9161_v29  ;;  %8226 = vmatprep.mubr.bf16.mxu0 %v393_v50  ;;  %v297_v56 = vld [vmem:[#allocation2 + $0xc2] sm:$0x1]  ;;  %271 = vst [vmem:[#allocation2 + $0xf9] sm:$0xff] %v9710_v1  ;;  %12154 = vst [vmem:[#allocation35_spill] sm:$0xff] %v9720_v4  ;;  %v9171_v11 = vld [vmem:[#allocation7 + $0xe8] sm:$0xff]  }
  0x78   : > { %8273 = vmatpush3.bf16.msra.mxu1 %v9162_v32  ;;  %8306 = vmatprep.subr.bf16.mxu0 %v9163_v37  ;;  %315 = vst [vmem:[#allocation2 + $0xc0] sm:$0x1] %v297_v56  ;;  %v369_v0 = vld [vmem:[#allocation2 + $0x60] sm:$0xff]  ;;  %272 = vst [vmem:[#allocation2 + $0x109] sm:$0xff] %v9714_v2  ;;  %v9740_v17 = vld [vmem:[%s9608_s6 + $0xc0] sm:$0xff] }
  0x79   : > { %8354 = vmatprep.subr.bf16.mxu1 %v9168_v55  ;;  %273 = vst [vmem:[#allocation2 + $0x111] sm:$0xff] %v9720_v4  ;;  %v9730_v7 = vpack.c.bf16 %v370_v58, %v369_v0  ;;  %12155 = vst [vmem:[#allocation36_spill] sm:$0xff] %v9733_v9  ;;  %v372_v10 = vld [vmem:[#allocation2 + $0x80] sm:$0xff]  ;;  %v374_v20 = vld [vmem:[#allocation2 + $0x98] sm:$0xff]  ;;  %v9793_v0 = vpack.c.bf16 %v9685_v36, %v9682_v35 }
  0x7a   : > { %8227 = vmatmul.mubr.bf16.vlgmr.msra.gmra.mxu0 %v9699_v51  ;;  %v298_v62 = vld [vmem:[#allocation2 + $0xda] sm:$0x1]  ;;  %274 = vst [vmem:[#allocation2 + $0x121] sm:$0xff] %v9733_v9  ;;  %12157 = vst [vmem:[#allocation38_spill] sm:$0xff] %v9740_v17  ;;  %v9167_v31 = vld [vmem:[#allocation7 + $0x98] sm:$0xff]  }
  0x7b   : > { %8275 = vmatmul.mubr.bf16.vlgmr.msra.gmra.mxu1 %v699_v45  ;;  %8307 = vmatpush3.bf16.msra.mxu0 %v9163_v37  ;;  %316 = vst [vmem:[#allocation2 + $0xd8] sm:$0x1] %v298_v62  ;;  %v9746_v29 = vld [vmem:[%s9608_s6 + $0xc8] sm:$0xff]  ;;  %276 = vst [vmem:[#allocation2 + $0x139] sm:$0xff] %v9740_v17  ;;  %v373_v33 = vld [vmem:[#allocation2 + $0x90] sm:$0xff]  ;;  %v9753_v37 = vpack.c.bf16 %v9661_v24, %v9656_v23 }
  0x7c   : > { %8278 = vmatprep.mubr.bf16.mxu1 %v9633_v15  ;;  %8230 = vmatprep.mubr.bf16.mxu0 %v9701_v53  ;;  %v9736_v15 = vld [vmem:[%s9608_s6 + $0xb8] sm:$0xff]  ;;  %12158 = vst [vmem:[#allocation39_spill] sm:$0xff] %v9746_v29  ;;  %v371_v30 = vld [vmem:[#allocation2 + $0x78] sm:$0xff]  ;;  %277 = vst [vmem:[#allocation2 + $0x141] sm:$0xff] %v9746_v29  ;;  %v9761_v44 = vpack.c.bf16 %v374_v20, %v373_v33 }
  0x7d   : > { %8308 = vmatprep.subr.bf16.mxu0 %v9164_v54  ;;  %8355 = vmatpush3.bf16.msra.mxu1 %v9168_v55  ;;  %12156 = vst [vmem:[#allocation37_spill] sm:$0xff] %v9736_v15  ;;  %275 = vst [vmem:[#allocation2 + $0x129] sm:$0xff] %v9736_v15  ;;  %v299_v32 = vld [vmem:[#allocation2 + $0xf2] sm:$0x1]  ;;  %v9755_v39 = vpack.c.bf16 %v372_v10, %v371_v30  ;;  %v9170_v43 = vld [vmem:[#allocation7 + $0x90] sm:$0xff]  }
  0x7e   : > { %8356 = vmatprep.subr.bf16.mxu1 %v9169_v60  ;;  %317 = vst [vmem:[#allocation2 + $0xf0] sm:$0x1] %v299_v32  ;;  %v9172_v38 = vld [vmem:[#allocation7 + $0xe0] sm:$0xff]   ;;  %v9764_v45 = vld [vmem:[%s9608_s6 + $0xd0] sm:$0xff]  ;;  %v9767_v46 = vld [vmem:[%s9608_s6 + $0xd8] sm:$0xff] }
  0x7f   : > { %8309 = vmatpush3.bf16.msra.mxu0 %v9164_v54  ;;  %v300_v34 = vld [vmem:[#allocation2 + $0x10a] sm:$0x1]  ;;  %12159 = vst [vmem:[#allocation40_spill] sm:$0xff] %v9764_v45  ;;  %12160 = vst [vmem:[#allocation41_spill] sm:$0xff] %v9767_v46  ;;  %v9770_v47 = vld [vmem:[%s9608_s6 + $0xe0] sm:$0xff] }
  0x80   : > { %8310 = vmatprep.subr.bf16.mxu0 %v9165_v59  ;;  %318 = vst [vmem:[#allocation2 + $0x108] sm:$0x1] %v300_v34  ;;  %12161 = vst [vmem:[#allocation42_spill] sm:$0xff] %v9770_v47  ;;  %v9775_v49 = vld [vmem:[%s9608_s6 + $0xe8] sm:$0xff]  ;;  %v9174_v52 = vld [vmem:[#allocation7 + $0xd8] sm:$0xff]  }
  0x81   : > { %8357 = vmatpush3.bf16.msra.mxu1 %v9169_v60  ;;  %v301_v48 = vld [vmem:[#allocation2 + $0x122] sm:$0x1]  ;;  %278 = vst [vmem:[#allocation2 + $0x151] sm:$0xff] %v9764_v45  ;;  %279 = vst [vmem:[#allocation2 + $0x159] sm:$0xff] %v9767_v46  ;;  %v376_v54 = vld [vmem:[#allocation2 + $0xb0] sm:$0xff] }
  0x82   : > { %8231 = vmatmul.mubr.bf16.gmra.mxu0 %v9723_v5  ;;  %8358 = vmatprep.subr.bf16.mxu1 %v9171_v11  ;;  %12162 = vst [vmem:[#allocation43_spill] sm:$0xff] %v9775_v49  ;;  %280 = vst [vmem:[#allocation2 + $0x169] sm:$0xff] %v9770_v47  ;;  %v302_v50 = vld [vmem:[#allocation2 + $0x13a] sm:$0x1]  ;;  %v378_v55 = vld [vmem:[#allocation2 + $0xc8] sm:$0xff] }
  0x83   : > { %8279 = vmatmul.mubr.bf16.gmra.mxu1 %v701_v3  ;;  %8234 = vmatprep.mubr.bf16.mxu0 %v9730_v7  ;;  %287 = vst [vmem:[#allocation2 + $0x199] sm:$0xff] %v9770_v47  ;;  %319 = vst [vmem:[#allocation2 + $0x120] sm:$0x1] %v301_v48  ;;  %v375_v56 = vld [vmem:[#allocation2 + $0xa8] sm:$0xff]  ;;  %v377_v57 = vld [vmem:[#allocation2 + $0xc0] sm:$0xff] }
  0x84   : > { %8282 = vmatprep.mubr.bf16.mxu1 %v9727_v6  ;;  %8311 = vmatpush3.bf16.msra.mxu0 %v9165_v59  ;;  %281 = vst [vmem:[#allocation2 + $0x171] sm:$0xff] %v9775_v49  ;;  %288 = vst [vmem:[#allocation2 + $0x1a1] sm:$0xff] %v9775_v49  ;;  %v9173_v58 = vld [vmem:[#allocation7 + $0x88] sm:$0xff]   ;;  %v9787_v59 = vpack.c.bf16 %v9677_v28, %v9674_v27  ;;  %v9175_v60 = vld [vmem:[#allocation7 + $0xd0] sm:$0xff]   ;;  %v9789_v62 = vpack.c.bf16 %v376_v54, %v375_v56 }
  0x85   : > { %8312 = vmatprep.subr.bf16.mxu0 %v9166_v8  ;;  %8359 = vmatpush3.bf16.msra.mxu1 %v9171_v11  ;;  %320 = vst [vmem:[#allocation2 + $0x138] sm:$0x1] %v302_v50  ;;  %v325_v61 = vld [vmem:[#allocation2 + $0xf] sm:$0x1]  ;;  %v326_v3 = vld [vmem:[#allocation2 + $0x27] sm:$0x1]  ;;  %v9805_v54 = vpack.c.bf16 %v9693_v42, %v9690_v41 }
  0x86   : > { %8360 = vmatprep.subr.bf16.mxu1 %v9172_v38  ;;  %343 = vst [vmem:[#allocation2 + $0x11] sm:$0x1] %v325_v61  ;;  %344 = vst [vmem:[#allocation2 + $0x29] sm:$0x1] %v326_v3  ;;  %v9176_v20 = vld [vmem:[#allocation7 + $0x80] sm:$0xff]   ;;  %v380_v30 = vld [vmem:[#allocation2 + $0xe0] sm:$0xff] }
  0x87   : > { %v327_v32 = vld [vmem:[#allocation2 + $0x3f] sm:$0x1]  ;;  %v9801_v48 = vld [vmem:[#allocation7 + $0x138] sm:$0xff]   ;;  %v332_v61 = vld [vmem:[#allocation2 + $0xb7] sm:$0x1] }
  0x88   : > { %8313 = vmatpush3.bf16.msra.mxu0 %v9166_v8  ;;  %v9795_v8 = vpack.c.bf16 %v378_v55, %v377_v57  ;;  %v303_v10 = vld [vmem:[#allocation2 + $0x152] sm:$0x1]  ;;  %v379_v33 = vld [vmem:[#allocation2 + $0xd8] sm:$0xff]  ;;  %345 = vst [vmem:[#allocation2 + $0x41] sm:$0x1] %v327_v32  ;;  %v9811_v57 = vpack.c.bf16 %v9710_v1, %v9707_v63  ;;  %v9822_v32 = vpack.c.bf16 %v9720_v4, %v9714_v2 }
  0x89   : > { %8314 = vmatprep.subr.bf16.mxu0 %v9167_v31  ;;  %8361 = vmatpush3.bf16.msra.mxu1 %v9172_v38  ;;  %v304_v11 = vld [vmem:[#allocation2 + $0x16a] sm:$0x1]  ;;  %321 = vst [vmem:[#allocation2 + $0x150] sm:$0x1] %v303_v10  ;;  %v382_v34 = vld [vmem:[#allocation2 + $0xf8] sm:$0xff]  ;;  %v9178_v55 = vld [vmem:[#allocation7 + $0xc0] sm:$0xff]   ;;  %v9807_v56 = vpack.c.bf16 %v380_v30, %v379_v33 }
  0x8a   : > { %8235 = vmatmul.mubr.bf16.gmra.mxu0 %v9755_v39  ;;  %8362 = vmatprep.subr.bf16.mxu1 %v9174_v52  ;;  %322 = vst [vmem:[#allocation2 + $0x168] sm:$0x1] %v304_v11  ;;  %v328_v38 = vld [vmem:[#allocation2 + $0x57] sm:$0x1]  ;;  %v329_v50 = vld [vmem:[#allocation2 + $0x6f] sm:$0x1] }
  0x8b   : > { %8283 = vmatmul.mubr.bf16.gmra.mxu1 %v9753_v37  ;;  %8238 = vmatprep.mubr.bf16.mxu0 %v9761_v44  ;;  %346 = vst [vmem:[#allocation2 + $0x59] sm:$0x1] %v328_v38  ;;  %347 = vst [vmem:[#allocation2 + $0x71] sm:$0x1] %v329_v50  ;;  %v333_v3 = vld [vmem:[#allocation2 + $0xcf] sm:$0x1] }
  0x8c   : > { %8286 = vmatprep.mubr.bf16.mxu1 %v9759_v40  ;;  %8315 = vmatpush3.bf16.msra.mxu0 %v9167_v31  ;;  %v9177_v31 = vld [vmem:[#allocation7 + $0xc8] sm:$0xff]   ;;  %350 = vst [vmem:[#allocation2 + $0xb9] sm:$0x1] %v332_v61  ;;  %v383_v10 = vld [vmem:[#allocation2 + $0x108] sm:$0xff]  ;;  %v384_v11 = vld [vmem:[#allocation2 + $0x110] sm:$0xff] }
  0x8d   : > { %8316 = vmatprep.subr.bf16.mxu0 %v9170_v43  ;;  %8363 = vmatpush3.bf16.msra.mxu1 %v9174_v52  ;;  %v330_v52 = vld [vmem:[#allocation2 + $0x87] sm:$0x1]  ;;  %351 = vst [vmem:[#allocation2 + $0xd1] sm:$0x1] %v333_v3  ;;  %v9824_v33 = vpack.c.bf16 %v384_v11, %v383_v10  ;;  %v9830_v38 = vld [vmem:[#allocation7 + $0x178] sm:$0xff]   ;;  %v387_v61 = vld [vmem:[#allocation2 + $0x138] sm:$0xff]  ;;  %v9841_v10 = vpack.c.bf16 %v9746_v29, %v9740_v17 }
  0x8e   : > { %8364 = vmatprep.subr.bf16.mxu1 %v9175_v60  ;;  %348 = vst [vmem:[#allocation2 + $0x89] sm:$0x1] %v330_v52  ;;  %v385_v30 = vld [vmem:[#allocation2 + $0x120] sm:$0xff]  ;;  %v335_v50 = vld [vmem:[#allocation2 + $0xff] sm:$0x1]  ;;  %v9194_v1 = vld [vmem:[#allocation7 + $0x140] sm:$0xff]  }
  0x8f   : > { %353 = vst [vmem:[#allocation2 + $0x101] sm:$0x1] %v335_v50  ;;  %v336_v52 = vld [vmem:[#allocation2 + $0x117] sm:$0x1]  ;;  %v337_v11 = vld [vmem:[#allocation2 + $0x12f] sm:$0x1] }
  0x90   : > { %8317 = vmatpush3.bf16.msra.mxu0 %v9170_v43  ;;  %v381_v43 = vld [vmem:[#allocation2 + $0xf0] sm:$0xff]  ;;  %354 = vst [vmem:[#allocation2 + $0x119] sm:$0x1] %v336_v52  ;;  %355 = vst [vmem:[#allocation2 + $0x131] sm:$0x1] %v337_v11  ;;  %v1046_v2 = vld [vmem:[#allocation2 + $0x7a] sm:$0xff] }
  0x91   : > { %8318 = vmatprep.subr.bf16.mxu0 %v9173_v58  ;;  %8365 = vmatpush3.bf16.msra.mxu1 %v9175_v60  ;;  %v331_v60 = vld [vmem:[#allocation2 + $0x9f] sm:$0x1]  ;;  %v389_v3 = vld [vmem:[#allocation2 + $0x150] sm:$0xff] }
  0x92   : > { %8239 = vmatmul.mubr.bf16.gmra.mxu0 %v9789_v62  ;;  %8366 = vmatprep.subr.bf16.mxu1 %v9177_v31  ;;  %349 = vst [vmem:[#allocation2 + $0xa1] sm:$0x1] %v331_v60  ;;  %v390_v60 = vld [vmem:[#allocation2 + $0x158] sm:$0xff]  ;;  %v392_v52 = vld [vmem:[#allocation2 + $0x170] sm:$0xff] }
  0x93   : > { %8287 = vmatmul.mubr.bf16.gmra.mxu1 %v9787_v59  ;;  %8242 = vmatprep.mubr.bf16.mxu0 %v9795_v8  ;;  %v9849_v50 = vpack.c.bf16 %v390_v60, %v389_v3  ;;  %v340_v11 = vld [vmem:[#allocation2 + $0x177] sm:$0x1]  ;;  %v9856_v60 = vld [vmem:[%s9608_s6 + $0xf0] sm:$0xff]  ;;  %v9860_v3 = vpack.c.bf16 %v9775_v49, %v9770_v47 }
  0x94   : > { %8290 = vmatprep.mubr.bf16.mxu1 %v9793_v0  ;;  %8319 = vmatpush3.bf16.msra.mxu0 %v9173_v58  ;;  %v9813_v58 = vpack.c.bf16 %v382_v34, %v381_v43  ;;  %v9828_v34 = vpack.c.bf16 %v9736_v15, %v9733_v9  ;;  %358 = vst [vmem:[#allocation2 + $0x179] sm:$0x1] %v340_v11  ;;  %12163 = vst [vmem:[#allocation44_spill] sm:$0xff] %v9856_v60  ;;  %v1039_v11 = vld [vmem:[#allocation2 + $0x22] sm:$0xff]  ;;  %v1040_v47 = vld [vmem:[#allocation2 + $0x32] sm:$0xff] }
  0x95   : > { %8320 = vmatprep.subr.bf16.mxu0 %v9176_v20  ;;  %8367 = vmatpush3.bf16.msra.mxu1 %v9177_v31  ;;  %v386_v31 = vld [vmem:[#allocation2 + $0x128] sm:$0xff]  ;;  %282 = vst [vmem:[#allocation2 + $0x181] sm:$0xff] %v9856_v60  ;;  %v1041_v15 = vld [vmem:[#allocation2 + $0x3a] sm:$0xff]  ;;  %v3265_v25 = vld [vmem:[#allocation2 + $0x92] sm:$0xff] }
  0x96   : > { %8368 = vmatprep.subr.bf16.mxu1 %v9178_v55  ;;  %v9832_v43 = vpack.c.bf16 %v386_v31, %v385_v30  ;;  %v9847_v30 = vpack.c.bf16 %v9767_v46, %v9764_v45  ;;  %v338_v31 = vld [vmem:[#allocation2 + $0x147] sm:$0x1]  ;;  %v391_v46 = vld [vmem:[#allocation2 + $0x168] sm:$0xff]  ;;  %v3263_v26 = vld [vmem:[#allocation2 + $0x7a] sm:$0xff] }
  0x97   : > { %356 = vst [vmem:[#allocation2 + $0x149] sm:$0x1] %v338_v31  ;;  %v1037_v45 = vld [vmem:[#allocation2 + $0xa] sm:$0xff]  ;;  %v9866_v29 = vpack.c.bf16 %v392_v52, %v391_v46  ;;  %v9874_v46 = vpack.c.bf16 %v1041_v15, %v1040_v47  ;;  %v9180_v52 = vld [vmem:[#allocation7 + $0x130] sm:$0xff]   ;;  %v9187_v15 = vld [vmem:[#allocation7 + $0x168] sm:$0xff]  }
  0x98   : > { %8321 = vmatpush3.bf16.msra.mxu0 %v9176_v20  ;;  %v334_v20 = vld [vmem:[#allocation2 + $0xe7] sm:$0x1]  ;;  %v9863_v31 = vld [vmem:[%s9608_s6 + $0xf8] sm:$0xff] }
  0x99   : > { %8402 = vmatprep.subr.bf16.mxu0 %v9801_v48  ;;  %8369 = vmatpush3.bf16.msra.mxu1 %v9178_v55  ;;  %352 = vst [vmem:[#allocation2 + $0xe9] sm:$0x1] %v334_v20  ;;  %v388_v55 = vld [vmem:[#allocation2 + $0x140] sm:$0xff]  ;;  %12164 = vst [vmem:[#allocation45_spill] sm:$0xff] %v9863_v31 }
  0x9a   : > { %8243 = vmatmul.mubr.bf16.gmra.mxu0 %v9807_v56  ;;  %8450 = vmatprep.subr.bf16.mxu1 %v9830_v38  ;;  %v9843_v20 = vpack.c.bf16 %v388_v55, %v387_v61  ;;  %v1036_v55 = vld [vmem:[#allocation2 + $0x2] sm:$0xff]  ;;  %v339_v61 = vld [vmem:[#allocation2 + $0x15f] sm:$0x1]  ;;  %283 = vst [vmem:[#allocation2 + $0x189] sm:$0xff] %v9863_v31 }
  0x9b   : > { %8291 = vmatmul.mubr.bf16.gmra.mxu1 %v9805_v54  ;;  %8246 = vmatprep.mubr.bf16.mxu0 %v9813_v58  ;;  %357 = vst [vmem:[#allocation2 + $0x161] sm:$0x1] %v339_v61  ;;  %v1068_v17 = vpack.c.bf16 %v1037_v45, %v1036_v55  ;;  %v1038_v61 = vld [vmem:[#allocation2 + $0x1a] sm:$0xff]  ;;  %v1042_v45 = vld [vmem:[#allocation2 + $0x4a] sm:$0xff] }
  0x9c   : > { %8294 = vmatprep.mubr.bf16.mxu1 %v9811_v57  ;;  %v305_v9 = vld [vmem:[#allocation2 + $0x182] sm:$0x1]  ;;  %v9872_v4 = vpack.c.bf16 %v1039_v11, %v1038_v61  ;;  %v9181_v61 = vld [vmem:[#allocation7 + $0x128] sm:$0xff]  }
  0x9d   : > { %323 = vst [vmem:[#allocation2 + $0x180] sm:$0x1] %v305_v9  ;;  %v9185_v55 = vld [vmem:[#allocation7 + $0x170] sm:$0xff]   ;;  %v1045_v9 = vld [vmem:[#allocation2 + $0x6a] sm:$0xff] }
  0x9e   : > { %v3266_v24 = vld [vmem:[#allocation2 + $0x9a] sm:$0xff] }
  0xa1   : > { %v341_v11 = vld [vmem:[#allocation2 + $0x18f] sm:$0x1] }
  0xa2   : > { %8247 = vmatmul.mubr.bf16.gmra.mxu0 %v9824_v33  ;;  %359 = vst [vmem:[#allocation2 + $0x191] sm:$0x1] %v341_v11  ;;  %v1053_v11 = vld [vmem:[#allocation2 + $0xca] sm:$0xff] }
  0xa3   : > { %8295 = vmatmul.mubr.bf16.gmra.mxu1 %v9822_v32  ;;  %8250 = vmatprep.mubr.bf16.mxu0 %v9832_v43 }
  0xa4   : > { %8298 = vmatprep.mubr.bf16.mxu1 %v9828_v34 }
  0xaa   : > { %8251 = vmatmul.mubr.bf16.gmra.mxu0 %v9843_v20 }
  0xab   : > { %8299 = vmatmul.mubr.bf16.gmra.mxu1 %v9841_v10  ;;  %8254 = vmatprep.mubr.bf16.mxu0 %v9849_v50 }
  0xac   : > { %8302 = vmatprep.mubr.bf16.mxu1 %v9847_v30 }
  0xb2   : > { %8255 = vmatmul.mubr.bf16.gmra.mxu0 %v9866_v29 }
  0xb3   : > { %8303 = vmatmul.mubr.bf16.gmra.mxu1 %v9860_v3  ;;  %8322 = vmatprep.mubr.bf16.mxu0 %v1068_v17  ;;  %v1043_v17 = vld [vmem:[#allocation2 + $0x52] sm:$0xff] }
  0xb4   : > { %8370 = vmatprep.mubr.bf16.mxu1 %v9699_v51  ;;  %v1044_v51 = vld [vmem:[#allocation2 + $0x62] sm:$0xff] }
  0xb5   : > { %v9884_v47 = vpack.c.bf16 %v1045_v9, %v1044_v51  ;;  %v9183_v51 = vld [vmem:[#allocation7 + $0x118] sm:$0xff]   ;;  %v9186_v9 = vld [vmem:[#allocation7 + $0x110] sm:$0xff]  }
  0xba   : > { %8323 = vmatmul.mubr.bf16.vlgmr.msra.gmra.mxu0 %v9872_v4 }
  0xbb   : > { %8371 = vmatmul.mubr.bf16.vlgmr.msra.gmra.mxu1 %v9701_v53  ;;  %8403 = vmatpush3.bf16.msra.mxu0 %v9801_v48  ;;  %v9882_v53 = vpack.c.bf16 %v1043_v17, %v1042_v45  ;;  %v9188_v48 = vld [vmem:[#allocation7 + $0x160] sm:$0xff]   ;;  %v1049_v45 = vld [vmem:[#allocation2 + $0x9a] sm:$0xff] }
  0xbc   : > { %8374 = vmatprep.mubr.bf16.mxu1 %v9723_v5  ;;  %8326 = vmatprep.mubr.bf16.mxu0 %v9874_v46  ;;  %v9182_v5 = vld [vmem:[#allocation7 + $0x120] sm:$0xff]  }
  0xbd   : > { %8404 = vmatprep.subr.bf16.mxu0 %v9180_v52  ;;  %8451 = vmatpush3.bf16.msra.mxu1 %v9830_v38  ;;  %v1047_v38 = vld [vmem:[#allocation2 + $0x82] sm:$0xff] }
  0xbe   : > { %8452 = vmatprep.subr.bf16.mxu1 %v9185_v55 }
  0xbf   : > { %8405 = vmatpush3.bf16.msra.mxu0 %v9180_v52  ;;  %v1048_v52 = vld [vmem:[#allocation2 + $0x92] sm:$0xff] }
  0xc0   : > { %8406 = vmatprep.subr.bf16.mxu0 %v9181_v61  ;;  %v9892_v17 = vpack.c.bf16 %v1049_v45, %v1048_v52  ;;  %v9192_v52 = vld [vmem:[#allocation7 + $0x100] sm:$0xff]   ;;  %v1055_v45 = vld [vmem:[#allocation2 + $0xe2] sm:$0xff] }
  0xc1   : > { %8453 = vmatpush3.bf16.msra.mxu1 %v9185_v55  ;;  %v9890_v55 = vpack.c.bf16 %v1047_v38, %v1046_v2  ;;  %v1052_v2 = vld [vmem:[#allocation2 + $0xc2] sm:$0xff] }
  0xc2   : > { %8454 = vmatprep.subr.bf16.mxu1 %v9187_v15  ;;  %8327 = vmatmul.mubr.bf16.gmra.mxu0 %v9882_v53 }
  0xc3   : > { %8375 = vmatmul.mubr.bf16.gmra.mxu1 %v9730_v7  ;;  %8330 = vmatprep.mubr.bf16.mxu0 %v9884_v47  ;;  %v9190_v7 = vld [vmem:[#allocation7 + $0x158] sm:$0xff]  }
  0xc4   : > { %8378 = vmatprep.mubr.bf16.mxu1 %v9755_v39  ;;  %8407 = vmatpush3.bf16.msra.mxu0 %v9181_v61  ;;  %v9191_v39 = vld [vmem:[#allocation7 + $0x150] sm:$0xff]   ;;  %v1050_v61 = vld [vmem:[#allocation2 + $0xaa] sm:$0xff] }
  0xc5   : > { %8408 = vmatprep.subr.bf16.mxu0 %v9182_v5  ;;  %8455 = vmatpush3.bf16.msra.mxu1 %v9187_v15  ;;  %v1051_v15 = vld [vmem:[#allocation2 + $0xb2] sm:$0xff] }
  0xc6   : > { %8456 = vmatprep.subr.bf16.mxu1 %v9188_v48  ;;  %v9898_v38 = vpack.c.bf16 %v1051_v15, %v1050_v61  ;;  %v9905_v61 = vld [vmem:[#allocation7 + $0x1b8] sm:$0xff]   ;;  %v1059_v15 = vld [vmem:[#allocation2 + $0x112] sm:$0xff] }
  0xc8   : > { %8409 = vmatpush3.bf16.msra.mxu0 %v9182_v5  ;;  %v9189_v5 = vld [vmem:[#allocation7 + $0x108] sm:$0xff]  }
  0xc9   : > { %8410 = vmatprep.subr.bf16.mxu0 %v9183_v51  ;;  %8457 = vmatpush3.bf16.msra.mxu1 %v9188_v48  ;;  %v9193_v48 = vld [vmem:[#allocation7 + $0x148] sm:$0xff]  }
  0xca   : > { %8458 = vmatprep.subr.bf16.mxu1 %v9190_v7  ;;  %8331 = vmatmul.mubr.bf16.gmra.mxu0 %v9890_v55 }
  0xcb   : > { %8379 = vmatmul.mubr.bf16.gmra.mxu1 %v9761_v44  ;;  %8334 = vmatprep.mubr.bf16.mxu0 %v9892_v17  ;;  %v9900_v44 = vpack.c.bf16 %v1053_v11, %v1052_v2  ;;  %v1060_v2 = vld [vmem:[#allocation2 + $0x122] sm:$0xff]  ;;  %v1061_v11 = vld [vmem:[#allocation2 + $0x12a] sm:$0xff] }
  0xcc   : > { %8382 = vmatprep.mubr.bf16.mxu1 %v9789_v62  ;;  %8411 = vmatpush3.bf16.msra.mxu0 %v9183_v51  ;;  %v1054_v62 = vld [vmem:[#allocation2 + $0xda] sm:$0xff]  ;;  %v1056_v51 = vld [vmem:[#allocation2 + $0xf2] sm:$0xff] }
  0xcd   : > { %8412 = vmatprep.subr.bf16.mxu0 %v9186_v9  ;;  %8459 = vmatpush3.bf16.msra.mxu1 %v9190_v7  ;;  %v1057_v7 = vld [vmem:[#allocation2 + $0xfa] sm:$0xff] }
  0xce   : > { %8460 = vmatprep.subr.bf16.mxu1 %v9191_v39 }
  0xd0   : > { %8413 = vmatpush3.bf16.msra.mxu0 %v9186_v9  ;;  %v9908_v9 = vld [vmem:[#allocation7 + $0x1f8] sm:$0xff]  }
  0xd1   : > { %8414 = vmatprep.subr.bf16.mxu0 %v9189_v5  ;;  %8461 = vmatpush3.bf16.msra.mxu1 %v9191_v39  ;;  %v9912_v39 = vpack.c.bf16 %v1057_v7, %v1056_v51  ;;  %v306_v51 = vld [vmem:[#allocation2 + $0x19a] sm:$0x1]  ;;  %v1066_v7 = vld [vmem:[#allocation2 + $0x16a] sm:$0xff] }
  0xd2   : > { %8462 = vmatprep.subr.bf16.mxu1 %v9193_v48  ;;  %8335 = vmatmul.mubr.bf16.gmra.mxu0 %v9898_v38  ;;  %324 = vst [vmem:[#allocation2 + $0x198] sm:$0x1] %v306_v51 }
  0xd3   : > { %8383 = vmatmul.mubr.bf16.gmra.mxu1 %v9795_v8  ;;  %8338 = vmatprep.mubr.bf16.mxu0 %v9900_v44  ;;  %v9910_v8 = vpack.c.bf16 %v1055_v45, %v1054_v62 }
  0xd4   : > { %8386 = vmatprep.mubr.bf16.mxu1 %v9807_v56  ;;  %8415 = vmatpush3.bf16.msra.mxu0 %v9189_v5  ;;  %v1058_v56 = vld [vmem:[#allocation2 + $0x10a] sm:$0xff] }
  0xd5   : > { %8416 = vmatprep.subr.bf16.mxu0 %v9192_v52  ;;  %8463 = vmatpush3.bf16.msra.mxu1 %v9193_v48  ;;  %v9920_v5 = vpack.c.bf16 %v1059_v15, %v1058_v56  ;;  %v9922_v48 = vpack.c.bf16 %v1061_v11, %v1060_v2  ;;  %v1437_v56 = vld [vmem:[#allocation2 + $0x188] sm:$0xff]  ;;  %v1067_v2 = vld [vmem:[#allocation2 + $0x172] sm:$0xff] }
  0xd6   : > { %8464 = vmatprep.subr.bf16.mxu1 %v9194_v1  ;;  %v1777_v15 = vld [vmem:[#allocation2 + $0x21] sm:$0xff] }
  0xd8   : > { %8417 = vmatpush3.bf16.msra.mxu0 %v9192_v52  ;;  %v1064_v52 = vld [vmem:[#allocation2 + $0x152] sm:$0xff] }
  0xd9   : > { %8465 = vmatpush3.bf16.msra.mxu1 %v9194_v1  ;;  %8498 = vmatprep.subr.bf16.mxu0 %v9905_v61  ;;  %v1062_v1 = vld [vmem:[#allocation2 + $0x13a] sm:$0xff] }
  0xda   : > { %8546 = vmatprep.subr.bf16.mxu1 %v9908_v9  ;;  %8339 = vmatmul.mubr.bf16.gmra.mxu0 %v9910_v8 }
  0xdb   : > { %8387 = vmatmul.mubr.bf16.gmra.mxu1 %v9813_v58  ;;  %8342 = vmatprep.mubr.bf16.mxu0 %v9912_v39  ;;  %v1063_v58 = vld [vmem:[#allocation2 + $0x142] sm:$0xff] }
  0xdc   : > { %8390 = vmatprep.mubr.bf16.mxu1 %v9824_v33  ;;  %v1065_v33 = vld [vmem:[#allocation2 + $0x15a] sm:$0xff]  ;;  %v9928_v62 = vpack.c.bf16 %v1063_v58, %v1062_v1  ;;  %v9938_v1 = vpack.c.bf16 %v1067_v2, %v1066_v7 }
  0xdd   : > { %v9930_v45 = vpack.c.bf16 %v1065_v33, %v1064_v52  ;;  %v1779_v52 = vld [vmem:[#allocation2 + $0x39] sm:$0xff]  ;;  %v1780_v33 = vld [vmem:[#allocation2 + $0x49] sm:$0xff] }
  0xde   : > { %v9197_v7 = vld [vmem:[#allocation7 + $0x1a8] sm:$0xff]  }
  0xe2   : > { %8343 = vmatmul.mubr.bf16.gmra.mxu0 %v9920_v5 }
  0xe3   : > { %8391 = vmatmul.mubr.bf16.gmra.mxu1 %v9832_v43  ;;  %8346 = vmatprep.mubr.bf16.mxu0 %v9922_v48  ;;  %v1436_v43 = vld [vmem:[#allocation2 + $0x180] sm:$0xff] }
  0xe4   : > { %8394 = vmatprep.mubr.bf16.mxu1 %v9843_v20  ;;  %v1776_v20 = vld [vmem:[#allocation2 + $0x19] sm:$0xff]  ;;  %v9936_v11 = vpack.c.bf16 %v1437_v56, %v1436_v43 }
  0xe5   : > { %v1808_v58 = vpack.c.bf16 %v1777_v15, %v1776_v20  ;;  %v9196_v43 = vld [vmem:[#allocation7 + $0x1b0] sm:$0xff]   ;;  %v9198_v20 = vld [vmem:[#allocation7 + $0x1a0] sm:$0xff]  }
  0xe6   : > { %v9201_v56 = vld [vmem:[#allocation7 + $0x1f0] sm:$0xff]   ;;  %v9204_v15 = vld [vmem:[#allocation7 + $0x1e0] sm:$0xff]  }
  0xea   : > { %8347 = vmatmul.mubr.bf16.gmra.mxu0 %v9928_v62 }
  0xeb   : > { %8395 = vmatmul.mubr.bf16.gmra.mxu1 %v9849_v50  ;;  %8350 = vmatprep.mubr.bf16.mxu0 %v9930_v45  ;;  %v1778_v50 = vld [vmem:[#allocation2 + $0x31] sm:$0xff] }
  0xec   : > { %8398 = vmatprep.mubr.bf16.mxu1 %v9866_v29  ;;  %v1781_v29 = vld [vmem:[#allocation2 + $0x51] sm:$0xff]  ;;  %v9943_v51 = vpack.c.bf16 %v1779_v52, %v1778_v50  ;;  %v2893_v50 = vld [vmem:[#allocation2 + $0x79] sm:$0xff]  ;;  %v2894_v52 = vld [vmem:[#allocation2 + $0x81] sm:$0xff] }
  0xed   : > { %v9945_v63 = vpack.c.bf16 %v1781_v29, %v1780_v33 }
  0xf2   : > { %8351 = vmatmul.mubr.bf16.gmra.mxu0 %v9938_v1 }
  0xf3   : > { %8399 = vmatmul.mubr.bf16.gmra.mxu1 %v9936_v11  ;;  %8418 = vmatprep.mubr.bf16.mxu0 %v1808_v58  ;;  %v2523_v58 = vld [vmem:[#allocation2 + $0x78] sm:$0xff] }
  0xf4   : > { %8466 = vmatprep.mubr.bf16.mxu1 %v9872_v4  ;;  %v9203_v4 = vld [vmem:[#allocation7 + $0x1e8] sm:$0xff]  }
  0xfa   : > { %8419 = vmatmul.mubr.bf16.vlgmr.msra.gmra.mxu0 %v9943_v51 }
  0xfb   : > { %8467 = vmatmul.mubr.bf16.vlgmr.msra.gmra.mxu1 %v9874_v46  ;;  %8499 = vmatpush3.bf16.msra.mxu0 %v9905_v61  ;;  %v9199_v46 = vld [vmem:[#allocation7 + $0x198] sm:$0xff]   ;;  %v9202_v61 = vld [vmem:[#allocation7 + $0x190] sm:$0xff]  }
  0xfc   : > { %8470 = vmatprep.mubr.bf16.mxu1 %v9882_v53  ;;  %8422 = vmatprep.mubr.bf16.mxu0 %v9945_v63  ;;  %v9206_v53 = vld [vmem:[#allocation7 + $0x1d8] sm:$0xff]  }
  0xfd   : > { %8500 = vmatprep.subr.bf16.mxu0 %v9196_v43  ;;  %8547 = vmatpush3.bf16.msra.mxu1 %v9908_v9  ;;  %v9207_v9 = vld [vmem:[#allocation7 + $0x1d0] sm:$0xff]  }
  0xfe   : > { %8548 = vmatprep.subr.bf16.mxu1 %v9201_v56 }
  0xff   : > { %8501 = vmatpush3.bf16.msra.mxu0 %v9196_v43  ;;  %v2895_v43 = vld [vmem:[#allocation2 + $0x91] sm:$0xff] }
 0x100   : > { %8502 = vmatprep.subr.bf16.mxu0 %v9197_v7 }
 0x101   : > { %8549 = vmatpush3.bf16.msra.mxu1 %v9201_v56  ;;  %v2896_v56 = vld [vmem:[#allocation2 + $0x99] sm:$0xff] }
 0x102   : > { %8550 = vmatprep.subr.bf16.mxu1 %v9203_v4  ;;  %8423 = vmatmul.mubr.bf16.gmra.mxu0 %v9727_v6  ;;  %v9205_v6 = vld [vmem:[#allocation7 + $0x188] sm:$0xff]  }
 0x103   : > { %8471 = vmatmul.mubr.bf16.gmra.mxu1 %v9884_v47  ;;  %8426 = vmatprep.mubr.bf16.mxu0 %v9753_v37  ;;  %v9209_v37 = vld [vmem:[#allocation7 + $0x1c8] sm:$0xff]   ;;  %v9208_v47 = vld [vmem:[#allocation7 + $0x180] sm:$0xff]  }
 0x104   : > { %8474 = vmatprep.mubr.bf16.mxu1 %v9890_v55  ;;  %8503 = vmatpush3.bf16.msra.mxu0 %v9197_v7  ;;  %v9210_v55 = vld [vmem:[#allocation7 + $0x1c0] sm:$0xff]  }
 0x105   : > { %8504 = vmatprep.subr.bf16.mxu0 %v9198_v20  ;;  %8551 = vmatpush3.bf16.msra.mxu1 %v9203_v4  ;;  %v2525_v4 = vld [vmem:[#allocation2 + $0x90] sm:$0xff] }
 0x106   : > { %8552 = vmatprep.subr.bf16.mxu1 %v9204_v15 }
 0x108   : > { %8505 = vmatpush3.bf16.msra.mxu0 %v9198_v20  ;;  %v2526_v20 = vld [vmem:[#allocation2 + $0x98] sm:$0xff] }
 0x109   : > { %8506 = vmatprep.subr.bf16.mxu0 %v9199_v46  ;;  %8553 = vmatpush3.bf16.msra.mxu1 %v9204_v15  ;;  %v9213_v15 = vld [vmem:[#allocation7 + $0x228] sm:$0xff]  }
 0x10a   : > { %8554 = vmatprep.subr.bf16.mxu1 %v9206_v53  ;;  %8427 = vmatmul.mubr.bf16.gmra.mxu0 %v9759_v40  ;;  %v9211_v40 = vld [vmem:[#allocation7 + $0x238] sm:$0xff]  }
 0x10b   : > { %8475 = vmatmul.mubr.bf16.gmra.mxu1 %v9892_v17  ;;  %8430 = vmatprep.mubr.bf16.mxu0 %v9787_v59  ;;  %v342_v59 = vld [vmem:[#allocation2 + $0x1a7] sm:$0x1] }
 0x10c   : > { %8478 = vmatprep.mubr.bf16.mxu1 %v9898_v38  ;;  %8507 = vmatpush3.bf16.msra.mxu0 %v9199_v46  ;;  %360 = vst [vmem:[#allocation2 + $0x1a9] sm:$0x1] %v342_v59  ;;  %v2520_v38 = vld [vmem:[#allocation2 + $0x50] sm:$0xff] }
 0x10d   : > { %8508 = vmatprep.subr.bf16.mxu0 %v9202_v61  ;;  %8555 = vmatpush3.bf16.msra.mxu1 %v9206_v53  ;;  %v2922_v53 = vpack.c.bf16 %v2894_v52, %v2893_v50  ;;  %v9214_v59 = vld [vmem:[#allocation7 + $0x220] sm:$0xff]  }
 0x10e   : > { %8556 = vmatprep.subr.bf16.mxu1 %v9207_v9 }
 0x110   : > { %8509 = vmatpush3.bf16.msra.mxu0 %v9202_v61 }
 0x111   : > { %8510 = vmatprep.subr.bf16.mxu0 %v9205_v6  ;;  %8557 = vmatpush3.bf16.msra.mxu1 %v9207_v9 }
 0x112   : > { %8558 = vmatprep.subr.bf16.mxu1 %v9209_v37  ;;  %8431 = vmatmul.mubr.bf16.gmra.mxu0 %v9793_v0  ;;  %v2176_v0 = vld [vmem:[#allocation2 + $0x182] sm:$0xff] }
 0x113   : > { %8479 = vmatmul.mubr.bf16.gmra.mxu1 %v9900_v44  ;;  %8434 = vmatprep.mubr.bf16.mxu0 %v9805_v54  ;;  %v2177_v54 = vld [vmem:[#allocation2 + $0x18a] sm:$0xff]  ;;  %v2891_v44 = vld [vmem:[#allocation2 + $0x61] sm:$0xff] }
 0x114   : > { %8482 = vmatprep.mubr.bf16.mxu1 %v9910_v8  ;;  %8511 = vmatpush3.bf16.msra.mxu0 %v9205_v6  ;;  %v9977_v17 = vpack.c.bf16 %v2177_v54, %v2176_v0  ;;  %v2521_v8 = vld [vmem:[#allocation2 + $0x60] sm:$0xff]  ;;  %v2923_v6 = vpack.c.bf16 %v2896_v56, %v2895_v43 }
 0x115   : > { %8512 = vmatprep.subr.bf16.mxu0 %v9208_v47  ;;  %8559 = vmatpush3.bf16.msra.mxu1 %v9209_v37 }
 0x116   : > { %8560 = vmatprep.subr.bf16.mxu1 %v9210_v55 }
 0x118   : > { %8513 = vmatpush3.bf16.msra.mxu0 %v9208_v47 }
 0x119   : > { %8561 = vmatpush3.bf16.msra.mxu1 %v9210_v55  ;;  %8594 = vmatprep.subr.bf16.mxu0 %v9211_v40  ;;  %v2553_v55 = vpack.c.bf16 %v2526_v20, %v2525_v4  ;;  %v9216_v4 = vld [vmem:[#allocation7 + $0x210] sm:$0xff]  }
 0x11a   : > { %8435 = vmatmul.mubr.bf16.gmra.mxu0 %v9811_v57  ;;  %v2517_v57 = vld [vmem:[#allocation2 + $0x30] sm:$0xff] }
 0x11b   : > { %8483 = vmatmul.mubr.bf16.gmra.mxu1 %v9912_v39  ;;  %8438 = vmatprep.mubr.bf16.mxu0 %v9822_v32  ;;  %v2518_v32 = vld [vmem:[#allocation2 + $0x38] sm:$0xff]  ;;  %v2522_v39 = vld [vmem:[#allocation2 + $0x68] sm:$0xff] }
 0x11c   : > { %8486 = vmatprep.mubr.bf16.mxu1 %v9920_v5 }
 0x122   : > { %8439 = vmatmul.mubr.bf16.gmra.mxu0 %v9828_v34  ;;  %v9981_v34 = vpack.c.bf16 %v9863_v31, %v9856_v60 }
 0x123   : > { %8487 = vmatmul.mubr.bf16.gmra.mxu1 %v9922_v48  ;;  %8442 = vmatprep.mubr.bf16.mxu0 %v9841_v10  ;;  %v2549_v10 = vpack.c.bf16 %v2518_v32, %v2517_v57  ;;  %v2527_v32 = vld [vmem:[#allocation2 + $0xa8] sm:$0xff] }
 0x124   : > { %8490 = vmatprep.mubr.bf16.mxu1 %v9928_v62  ;;  %v2551_v62 = vpack.c.bf16 %v2522_v39, %v2521_v8  ;;  %v2899_v8 = vld [vmem:[#allocation2 + $0xc1] sm:$0xff]  ;;  %v2900_v39 = vld [vmem:[#allocation2 + $0xc9] sm:$0xff] }
 0x12a   : > { %8443 = vmatmul.mubr.bf16.gmra.mxu0 %v9847_v30  ;;  %v2519_v30 = vld [vmem:[#allocation2 + $0x48] sm:$0xff] }
 0x12b   : > { %8491 = vmatmul.mubr.bf16.gmra.mxu1 %v9930_v45  ;;  %8446 = vmatprep.mubr.bf16.mxu0 %v9860_v3  ;;  %v2892_v3 = vld [vmem:[#allocation2 + $0x69] sm:$0xff]  ;;  %v2550_v5 = vpack.c.bf16 %v2520_v38, %v2519_v30  ;;  %v9212_v45 = vld [vmem:[#allocation7 + $0x230] sm:$0xff]   ;;  %v2898_v30 = vld [vmem:[#allocation2 + $0xb1] sm:$0xff] }
 0x12c   : > { %8494 = vmatprep.mubr.bf16.mxu1 %v9938_v1  ;;  %v2921_v48 = vpack.c.bf16 %v2892_v3, %v2891_v44  ;;  %v2528_v3 = vld [vmem:[#allocation2 + $0xb0] sm:$0xff] }
 0x12d   : > { %v2554_v52 = vpack.c.bf16 %v2528_v3, %v2527_v32  ;;  %v2534_v32 = vld [vmem:[#allocation2 + $0xf8] sm:$0xff] }
 0x132   : > { %8447 = vmatmul.mubr.bf16.gmra.mxu0 %v9981_v34 }
 0x133   : > { %8495 = vmatmul.mubr.bf16.gmra.mxu1 %v9977_v17  ;;  %8514 = vmatprep.mubr.bf16.mxu0 %v2549_v10  ;;  %v2897_v10 = vld [vmem:[#allocation2 + $0xa9] sm:$0xff] }
 0x134   : > { %8562 = vmatprep.mubr.bf16.mxu1 %v9943_v51  ;;  %v2524_v51 = vld [vmem:[#allocation2 + $0x80] sm:$0xff] }
 0x135   : > { %v2552_v9 = vpack.c.bf16 %v2524_v51, %v2523_v58  ;;  %v2924_v58 = vpack.c.bf16 %v2898_v30, %v2897_v10  ;;  %v9217_v10 = vld [vmem:[#allocation7 + $0x208] sm:$0xff]  }
 0x13a   : > { %v8228_v1 = vpop.f32.mrf.mxu0  ;;  %8515 = vmatmul.mubr.bf16.vlgmr.msra.gmra.mxu0 %v2550_v5 }
 0x13b   : > { %v8276_v2 = vpop.f32.mrf.mxu1  ;;  %8563 = vmatmul.mubr.bf16.vlgmr.msra.gmra.mxu1 %v9945_v63  ;;  %8595 = vmatpush3.bf16.msra.mxu0 %v9211_v40 }
 0x13c   : > { %8566 = vmatprep.mubr.bf16.mxu1 %v2921_v48  ;;  %v9987_v33 = vadd.f32 %v8276_v2, %v8228_v1  ;;  %8518 = vmatprep.mubr.bf16.mxu0 %v2551_v62  ;;  %v507_v7 = vpop.f32.mrf.mxu0  ;;  %v2529_v48 = vld [vmem:[#allocation2 + $0xc0] sm:$0xff]  ;;  %v2530_v62 = vld [vmem:[#allocation2 + $0xc8] sm:$0xff] }
 0x13d   : > { %v813_v29 = vpop.f32.mrf.mxu1  ;;  %8596 = vmatprep.subr.bf16.mxu0 %v9212_v45  ;;  %v2555_v56 = vpack.c.bf16 %v2530_v62, %v2529_v48 }
 0x13e   : > { %v9989_v63 = vadd.f32 %v813_v29, %v507_v7  ;;  %v8229_v61 = vpop.f32.mrf.mxu0  ;;  %v2925_v29 = vpack.c.bf16 %v2900_v39, %v2899_v8 }
 0x13f   : > { %v8277_v46 = vpop.f32.mrf.mxu1  ;;  %8597 = vmatpush3.bf16.msra.mxu0 %v9212_v45  ;;  %v9215_v45 = vld [vmem:[#allocation7 + $0x218] sm:$0xff]  }
 0x140   : > { %v9991_v37 = vadd.f32 %v8277_v46, %v8229_v61  ;;  %v510_v40 = vpop.f32.mrf.mxu0  ;;  %8598 = vmatprep.subr.bf16.mxu0 %v9213_v15  ;;  %v2901_v61 = vld [vmem:[#allocation2 + $0xd9] sm:$0xff] }
 0x141   : > { %v816_v47 = vpop.f32.mrf.mxu1 }
 0x142   : > { %v9993_v0 = vadd.f32 %v816_v47, %v510_v40  ;;  %v8232_v57 = vpop.f32.mrf.mxu0  ;;  %8519 = vmatmul.mubr.bf16.gmra.mxu0 %v2552_v9  ;;  %v2902_v9 = vld [vmem:[#allocation2 + $0xe1] sm:$0xff]  ;;  %v2903_v40 = vld [vmem:[#allocation2 + $0xf1] sm:$0xff] }
 0x143   : > { %v8280_v54 = vpop.f32.mrf.mxu1  ;;  %8567 = vmatmul.mubr.bf16.gmra.mxu1 %v2922_v53  ;;  %8522 = vmatprep.mubr.bf16.mxu0 %v2553_v55  ;;  %v2531_v53 = vld [vmem:[#allocation2 + $0xd8] sm:$0xff]  ;;  %v2532_v55 = vld [vmem:[#allocation2 + $0xe0] sm:$0xff]  ;;  %v2926_v3 = vpack.c.bf16 %v2902_v9, %v2901_v61 }
 0x144   : > { %8570 = vmatprep.mubr.bf16.mxu1 %v2923_v6  ;;  %v9995_v38 = vadd.f32 %v8280_v54, %v8232_v57  ;;  %8599 = vmatpush3.bf16.msra.mxu0 %v9213_v15  ;;  %v523_v5 = vpop.f32.mrf.mxu0  ;;  %v2533_v57 = vld [vmem:[#allocation2 + $0xf0] sm:$0xff]  ;;  %v2556_v39 = vpack.c.bf16 %v2532_v55, %v2531_v53  ;;  %v2907_v61 = vld [vmem:[#allocation2 + $0x121] sm:$0xff] }
 0x145   : > { %v829_v44 = vpop.f32.mrf.mxu1  ;;  %8600 = vmatprep.subr.bf16.mxu0 %v9214_v59  ;;  %v2536_v53 = vld [vmem:[#allocation2 + $0x110] sm:$0xff]  ;;  %v2538_v55 = vld [vmem:[#allocation2 + $0x128] sm:$0xff] }
 0x146   : > { %v9997_v2 = vadd.f32 %v829_v44, %v523_v5  ;;  %v8233_v50 = vpop.f32.mrf.mxu0 }
 0x147   : > { %v8281_v1 = vpop.f32.mrf.mxu1 }
 0x148   : > { %v9999_v51 = vadd.f32 %v8281_v1, %v8233_v50  ;;  %8601 = vmatpush3.bf16.msra.mxu0 %v9214_v59  ;;  %v526_v7 = vpop.f32.mrf.mxu0  ;;  %v2904_v59 = vld [vmem:[#allocation2 + $0xf9] sm:$0xff]  ;;  %v2557_v1 = vpack.c.bf16 %v2534_v32, %v2533_v57 }
 0x149   : > { %v832_v43 = vpop.f32.mrf.mxu1  ;;  %8602 = vmatprep.subr.bf16.mxu0 %v9215_v45  ;;  %v2927_v5 = vpack.c.bf16 %v2904_v59, %v2903_v40 }
 0x14a   : > { %v10001_v20 = vadd.f32 %v832_v43, %v526_v7  ;;  %v8236_v46 = vpop.f32.mrf.mxu0  ;;  %8523 = vmatmul.mubr.bf16.gmra.mxu0 %v2554_v52  ;;  %v2535_v43 = vld [vmem:[#allocation2 + $0x108] sm:$0xff]  ;;  %v2906_v7 = vld [vmem:[#allocation2 + $0x111] sm:$0xff] }
 0x14b   : > { %v8284_v15 = vpop.f32.mrf.mxu1  ;;  %8571 = vmatmul.mubr.bf16.gmra.mxu1 %v2924_v58  ;;  %8526 = vmatprep.mubr.bf16.mxu0 %v2555_v56  ;;  %v2905_v56 = vld [vmem:[#allocation2 + $0x109] sm:$0xff]  ;;  %v2558_v32 = vpack.c.bf16 %v2536_v53, %v2535_v43  ;;  %v2912_v53 = vld [vmem:[#allocation2 + $0x159] sm:$0xff] }
 0x14c   : > { %8574 = vmatprep.mubr.bf16.mxu1 %v2925_v29  ;;  %v10003_v6 = vadd.f32 %v8284_v15, %v8236_v46  ;;  %8603 = vmatpush3.bf16.msra.mxu0 %v9215_v45  ;;  %v539_v54 = vpop.f32.mrf.mxu0  ;;  %v9218_v45 = vld [vmem:[#allocation7 + $0x200] sm:$0xff]  }
 0x14d   : > { %v845_v47 = vpop.f32.mrf.mxu1  ;;  %8604 = vmatprep.subr.bf16.mxu0 %v9216_v4 }
 0x14e   : > { %v10005_v30 = vadd.f32 %v845_v47, %v539_v54  ;;  %v8237_v8 = vpop.f32.mrf.mxu0  ;;  %v2537_v47 = vld [vmem:[#allocation2 + $0x120] sm:$0xff]  ;;  %v2928_v54 = vpack.c.bf16 %v2906_v7, %v2905_v56 }
 0x14f   : > { %v8285_v44 = vpop.f32.mrf.mxu1  ;;  %v2540_v7 = vld [vmem:[#allocation2 + $0x140] sm:$0xff] }
 0x150   : > { %v10007_v48 = vadd.f32 %v8285_v44, %v8237_v8  ;;  %8605 = vmatpush3.bf16.msra.mxu0 %v9216_v4  ;;  %v542_v58 = vpop.f32.mrf.mxu0  ;;  %v2908_v4 = vld [vmem:[#allocation2 + $0x129] sm:$0xff] }
 0x151   : > { %v848_v62 = vpop.f32.mrf.mxu1  ;;  %8606 = vmatprep.subr.bf16.mxu0 %v9217_v10  ;;  %v2929_v44 = vpack.c.bf16 %v2908_v4, %v2907_v61  ;;  %v2542_v4 = vld [vmem:[#allocation2 + $0x158] sm:$0xff] }
 0x152   : > { %v10009_v50 = vadd.f32 %v848_v62, %v542_v58  ;;  %v8240_v29 = vpop.f32.mrf.mxu0  ;;  %8527 = vmatmul.mubr.bf16.gmra.mxu0 %v2556_v39  ;;  %v2559_v39 = vpack.c.bf16 %v2538_v55, %v2537_v47  ;;  %v2539_v58 = vld [vmem:[#allocation2 + $0x138] sm:$0xff] }
 0x153   : > { %v8288_v52 = vpop.f32.mrf.mxu1  ;;  %8575 = vmatmul.mubr.bf16.gmra.mxu1 %v2926_v3  ;;  %8530 = vmatprep.mubr.bf16.mxu0 %v2557_v1 }
 0x154   : > { %8578 = vmatprep.mubr.bf16.mxu1 %v2927_v5  ;;  %v10011_v15 = vadd.f32 %v8288_v52, %v8240_v29  ;;  %8607 = vmatpush3.bf16.msra.mxu0 %v9217_v10  ;;  %v555_v9 = vpop.f32.mrf.mxu0  ;;  %v2909_v52 = vld [vmem:[#allocation2 + $0x139] sm:$0xff]  ;;  %v2910_v29 = vld [vmem:[#allocation2 + $0x141] sm:$0xff] }
 0x155   : > { %v861_v46 = vpop.f32.mrf.mxu1  ;;  %8608 = vmatprep.subr.bf16.mxu0 %v9218_v45  ;;  %v2930_v55 = vpack.c.bf16 %v2910_v29, %v2909_v52  ;;  %v2544_v29 = vld [vmem:[#allocation2 + $0x170] sm:$0xff] }
 0x156   : > { %v10013_v40 = vadd.f32 %v861_v46, %v555_v9  ;;  %v8241_v57 = vpop.f32.mrf.mxu0  ;;  %v2911_v46 = vld [vmem:[#allocation2 + $0x151] sm:$0xff] }
 0x157   : > { %v8289_v59 = vpop.f32.mrf.mxu1 }
 0x158   : > { %v10015_v3 = vadd.f32 %v8289_v59, %v8241_v57  ;;  %8609 = vmatpush3.bf16.msra.mxu0 %v9218_v45  ;;  %v558_v5 = vpop.f32.mrf.mxu0  ;;  %v2541_v45 = vld [vmem:[#allocation2 + $0x150] sm:$0xff]  ;;  %v2931_v57 = vpack.c.bf16 %v2912_v53, %v2911_v46 }
 0x159   : > { %v864_v8 = vpop.f32.mrf.mxu1 }
 0x15a   : > { %v10017_v62 = vadd.f32 %v864_v8, %v558_v5  ;;  %v8244_v1 = vpop.f32.mrf.mxu0  ;;  %8531 = vmatmul.mubr.bf16.gmra.mxu0 %v2558_v32  ;;  %v2561_v8 = vpack.c.bf16 %v2542_v4, %v2541_v45 }
 0x15b   : > { %v8292_v10 = vpop.f32.mrf.mxu1  ;;  %8579 = vmatmul.mubr.bf16.gmra.mxu1 %v2928_v54  ;;  %8534 = vmatprep.mubr.bf16.mxu0 %v2559_v39  ;;  %v2560_v54 = vpack.c.bf16 %v2540_v7, %v2539_v58  ;;  %v2543_v58 = vld [vmem:[#allocation2 + $0x168] sm:$0xff] }
 0x15c   : > { %8582 = vmatprep.mubr.bf16.mxu1 %v2929_v44  ;;  %v10019_v56 = vadd.f32 %v8292_v10, %v8244_v1  ;;  %v571_v61 = vpop.f32.mrf.mxu0  ;;  %v2913_v1 = vld [vmem:[#allocation2 + $0x169] sm:$0xff] }
 0x15d   : > { %v877_v43 = vpop.f32.mrf.mxu1 }
 0x15e   : > { %v10021_v9 = vadd.f32 %v877_v43, %v571_v61  ;;  %v8245_v59 = vpop.f32.mrf.mxu0  ;;  %v2914_v43 = vld [vmem:[#allocation2 + $0x171] sm:$0xff] }
 0x15f   : > { %v8293_v47 = vpop.f32.mrf.mxu1  ;;  %v2932_v45 = vpack.c.bf16 %v2914_v43, %v2913_v1  ;;  %v2547_v1 = vld [vmem:[#allocation2 + $0x198] sm:$0xff]  ;;  %v2548_v43 = vld [vmem:[#allocation2 + $0x1a0] sm:$0xff] }
 0x160   : > { %v10023_v32 = vadd.f32 %v8293_v47, %v8245_v59  ;;  %v10027_v5 = vpop.f32.mrf.mxu0  ;;  %v2562_v47 = vpack.c.bf16 %v2544_v29, %v2543_v58  ;;  %v3257_v29 = vld [vmem:[#allocation2 + $0x32] sm:$0xff] }
 0x161   : > { %v10025_v44 = vpop.f32.mrf.mxu1 }
 0x162   : > { %v8248_v10 = vpop.f32.mrf.mxu0  ;;  %8535 = vmatmul.mubr.bf16.gmra.mxu0 %v2560_v54 }
 0x163   : > { %v8296_v39 = vpop.f32.mrf.mxu1  ;;  %8583 = vmatmul.mubr.bf16.gmra.mxu1 %v2930_v55  ;;  %8538 = vmatprep.mubr.bf16.mxu0 %v2561_v8  ;;  %v2917_v8 = vld [vmem:[#allocation2 + $0x199] sm:$0xff] }
 0x164   : > { %8586 = vmatprep.mubr.bf16.mxu1 %v2931_v57  ;;  %v10029_v61 = vadd.f32 %v8296_v39, %v8248_v10  ;;  %v587_v7 = vpop.f32.mrf.mxu0  ;;  %v2918_v10 = vld [vmem:[#allocation2 + $0x1a1] sm:$0xff] }
 0x165   : > { %v893_v52 = vpop.f32.mrf.mxu1 }
 0x166   : > { %v10031_v46 = vadd.f32 %v893_v52, %v587_v7  ;;  %v8249_v4 = vpop.f32.mrf.mxu0 }
 0x167   : > { %v8297_v53 = vpop.f32.mrf.mxu1 }
 0x168   : > { %v10033_v59 = vadd.f32 %v8297_v53, %v8249_v4  ;;  %v10037_v54 = vpop.f32.mrf.mxu0  ;;  %v3258_v53 = vld [vmem:[#allocation2 + $0x3a] sm:$0xff] }
 0x169   : > { %v10035_v55 = vpop.f32.mrf.mxu1  ;;  %12166 = vst [vmem:[#allocation47_spill] sm:$0xff] %v10037_v54 }
 0x16a   : > { %12165 = vst [vmem:[#allocation46_spill] sm:$0xff] %v10035_v55  ;;  %v8252_v39 = vpop.f32.mrf.mxu0  ;;  %8539 = vmatmul.mubr.bf16.gmra.mxu0 %v2562_v47  ;;  %v2564_v47 = vpack.c.bf16 %v2548_v43, %v2547_v1  ;;  %v3262_v1 = vld [vmem:[#allocation2 + $0x6a] sm:$0xff] }
 0x16b   : > { %v8300_v57 = vpop.f32.mrf.mxu1  ;;  %8587 = vmatmul.mubr.bf16.gmra.mxu1 %v2932_v45  ;;  %8542 = vmatprep.mubr.bf16.mxu0 %v9936_v11  ;;  %v2934_v45 = vpack.c.bf16 %v2918_v10, %v2917_v8  ;;  %v3261_v10 = vld [vmem:[#allocation2 + $0x62] sm:$0xff] }
 0x16c   : > { %8590 = vmatprep.mubr.bf16.mxu1 %v9981_v34  ;;  %v10040_v52 = vadd.f32 %v8300_v57, %v8252_v39  ;;  %v603_v58 = vpop.f32.mrf.mxu0  ;;  %v3289_v57 = vpack.c.bf16 %v3258_v53, %v3257_v29 }
 0x16d   : > { %v909_v7 = vpop.f32.mrf.mxu1 }
 0x16e   : > { %v10043_v4 = vadd.f32 %v909_v7, %v603_v58  ;;  %v8253_v60 = vpop.f32.mrf.mxu0  ;;  %v3259_v7 = vld [vmem:[#allocation2 + $0x4a] sm:$0xff]  ;;  %v3260_v58 = vld [vmem:[#allocation2 + $0x52] sm:$0xff] }
 0x16f   : > { %v8301_v31 = vpop.f32.mrf.mxu1  ;;  %v3290_v29 = vpack.c.bf16 %v3260_v58, %v3259_v7 }
 0x170   : > { %v10045_v42 = vadd.f32 %v8301_v31, %v8253_v60  ;;  %v10049_v39 = vpop.f32.mrf.mxu0 }
 0x171   : > { %v10047_v34 = vpop.f32.mrf.mxu1  ;;  %12168 = vst [vmem:[#allocation49_spill] sm:$0xff] %v10049_v39 }
 0x172   : > { %12167 = vst [vmem:[#allocation48_spill] sm:$0xff] %v10047_v34  ;;  %v8256_v11 = vpop.f32.mrf.mxu0  ;;  %8543 = vmatmul.mubr.bf16.gmra.mxu0 %v2564_v47 }
 0x173   : > { %v8304_v41 = vpop.f32.mrf.mxu1  ;;  %8591 = vmatmul.mubr.bf16.gmra.mxu1 %v2934_v45  ;;  %8610 = vmatprep.mubr.bf16.mxu0 %v3289_v57  ;;  %v3291_v45 = vpack.c.bf16 %v3262_v1, %v3261_v10 }
 0x174   : > { %v10051_v36 = vadd.f32 %v8304_v41, %v8256_v11  ;;  %v619_v8 = vpop.f32.mrf.mxu0 }
 0x175   : > { %v925_v35 = vpop.f32.mrf.mxu1 }
 0x176   : > { %v10053_v60 = vadd.f32 %v925_v35, %v619_v8  ;;  %v8257_v43 = vpop.f32.mrf.mxu0  ;;  %v3264_v35 = vld [vmem:[#allocation2 + $0x82] sm:$0xff] }
 0x177   : > { %v8305_v31 = vpop.f32.mrf.mxu1  ;;  %v3292_v1 = vpack.c.bf16 %v3264_v35, %v3263_v26  ;;  %v3267_v26 = vld [vmem:[#allocation2 + $0xaa] sm:$0xff]  ;;  %v3269_v35 = vld [vmem:[#allocation2 + $0xc2] sm:$0xff] }
 0x178   : > { %v10055_v53 = vadd.f32 %v8305_v31, %v8257_v43  ;;  %v10059_v47 = vpop.f32.mrf.mxu0 }
 0x179   : > { %v10057_v28 = vpop.f32.mrf.mxu1  ;;  %12170 = vst [vmem:[#allocation51_spill] sm:$0xff] %v10059_v47 }
 0x17a   : > { %12169 = vst [vmem:[#allocation50_spill] sm:$0xff] %v10057_v28  ;;  %v8324_v11 = vpop.f32.mrf.mxu0  ;;  %8611 = vmatmul.mubr.bf16.vlgmr.msra.gmra.mxu0 %v3290_v29 }
 0x17b   : > { %v8372_v41 = vpop.f32.mrf.mxu1  ;;  %v1344_v57 = vadd.f32 %v8324_v11, %v9987_v33  ;;  %8614 = vmatprep.mubr.bf16.mxu0 %v3291_v45  ;;  %v3293_v33 = vpack.c.bf16 %v3266_v24, %v3265_v25 }
 0x17c   : > { %v1183_v8 = vpop.f32.mrf.mxu0 }
 0x17d   : > { %v1553_v27 = vpop.f32.mrf.mxu1  ;;  %v1342_v7 = vadd.f32 %v1183_v8, %v9989_v63  ;;  %v10063_v58 = vadd.f32 %v8372_v41, %v1344_v57  ;;  %v3270_v8 = vld [vmem:[#allocation2 + $0xca] sm:$0xff] }
 0x17e   : > { %v8325_v10 = vpop.f32.mrf.mxu0 }
 0x17f   : > { %v8373_v31 = vpop.f32.mrf.mxu1  ;;  %v1345_v43 = vadd.f32 %v8325_v10, %v9991_v37  ;;  %v10066_v23 = vadd.f32 %v1553_v27, %v1342_v7  ;;  %v3268_v37 = vld [vmem:[#allocation2 + $0xb2] sm:$0xff] }
 0x180   : > { %v1186_v45 = vpop.f32.mrf.mxu0 }
 0x181   : > { %v10068_v29 = vpop.f32.mrf.mxu1  ;;  %v10071_v11 = vadd.f32 %v1186_v45, %v9993_v0  ;;  %v10073_v22 = vadd.f32 %v8373_v31, %v1345_v43  ;;  %v3294_v31 = vpack.c.bf16 %v3268_v37, %v3267_v26  ;;  %v3271_v26 = vld [vmem:[#allocation2 + $0xda] sm:$0xff]  ;;  %v3273_v37 = vld [vmem:[#allocation2 + $0xf2] sm:$0xff] }
 0x182   : > { %v8328_v63 = vpop.f32.mrf.mxu0  ;;  %8615 = vmatmul.mubr.bf16.gmra.mxu0 %v3292_v1 }
 0x183   : > { %v8376_v21 = vpop.f32.mrf.mxu1  ;;  %v1348_v41 = vadd.f32 %v8328_v63, %v9995_v38  ;;  %8618 = vmatprep.mubr.bf16.mxu0 %v3293_v33  ;;  %v3295_v38 = vpack.c.bf16 %v3270_v8, %v3269_v35 }
 0x184   : > { %v1199_v27 = vpop.f32.mrf.mxu0 }
 0x185   : > { %v1569_v57 = vpop.f32.mrf.mxu1  ;;  %v1346_v24 = vadd.f32 %v1199_v27, %v9997_v2  ;;  %v10077_v25 = vadd.f32 %v8376_v21, %v1348_v41  ;;  %v3274_v27 = vld [vmem:[#allocation2 + $0xfa] sm:$0xff] }
 0x186   : > { %v8329_v7 = vpop.f32.mrf.mxu0 }
 0x187   : > { %v8377_v0 = vpop.f32.mrf.mxu1  ;;  %v1349_v10 = vadd.f32 %v8329_v7, %v9999_v51  ;;  %v10080_v43 = vadd.f32 %v1569_v57, %v1346_v24  ;;  %v3272_v51 = vld [vmem:[#allocation2 + $0xe2] sm:$0xff] }
 0x188   : > { %v1202_v33 = vpop.f32.mrf.mxu0 }
 0x189   : > { %v10082_v1 = vpop.f32.mrf.mxu1  ;;  %v10085_v45 = vadd.f32 %v1202_v33, %v10001_v20  ;;  %v10087_v63 = vadd.f32 %v8377_v0, %v1349_v10  ;;  %v3296_v0 = vpack.c.bf16 %v3272_v51, %v3271_v26  ;;  %v3275_v26 = vld [vmem:[#allocation2 + $0x10a] sm:$0xff]  ;;  %v3277_v51 = vld [vmem:[#allocation2 + $0x122] sm:$0xff] }
 0x18a   : > { %v8332_v2 = vpop.f32.mrf.mxu0  ;;  %8619 = vmatmul.mubr.bf16.gmra.mxu0 %v3294_v31 }
 0x18b   : > { %v8380_v19 = vpop.f32.mrf.mxu1  ;;  %v1352_v21 = vadd.f32 %v8332_v2, %v10003_v6  ;;  %8622 = vmatprep.mubr.bf16.mxu0 %v3295_v38  ;;  %v3297_v6 = vpack.c.bf16 %v3274_v27, %v3273_v37 }
 0x18c   : > { %v1215_v57 = vpop.f32.mrf.mxu0 }
 0x18d   : > { %v1585_v41 = vpop.f32.mrf.mxu1  ;;  %v1350_v35 = vadd.f32 %v1215_v57, %v10005_v30  ;;  %v10091_v8 = vadd.f32 %v8380_v19, %v1352_v21  ;;  %v3278_v57 = vld [vmem:[#allocation2 + $0x12a] sm:$0xff] }
 0x18e   : > { %v8333_v24 = vpop.f32.mrf.mxu0 }
 0x18f   : > { %v8381_v20 = vpop.f32.mrf.mxu1  ;;  %v1353_v7 = vadd.f32 %v8333_v24, %v10007_v48  ;;  %v10094_v10 = vadd.f32 %v1585_v41, %v1350_v35  ;;  %v3276_v48 = vld [vmem:[#allocation2 + $0x112] sm:$0xff] }
 0x190   : > { %v1218_v38 = vpop.f32.mrf.mxu0 }
 0x191   : > { %v10096_v31 = vpop.f32.mrf.mxu1  ;;  %v10099_v33 = vadd.f32 %v1218_v38, %v10009_v50  ;;  %v10101_v2 = vadd.f32 %v8381_v20, %v1353_v7  ;;  %v3298_v20 = vpack.c.bf16 %v3276_v48, %v3275_v26  ;;  %v3279_v26 = vld [vmem:[#allocation2 + $0x13a] sm:$0xff]  ;;  %v3281_v48 = vld [vmem:[#allocation2 + $0x152] sm:$0xff] }
 0x192   : > { %v8336_v30 = vpop.f32.mrf.mxu0  ;;  %8623 = vmatmul.mubr.bf16.gmra.mxu0 %v3296_v0 }
 0x193   : > { %v8384_v18 = vpop.f32.mrf.mxu1  ;;  %v1356_v19 = vadd.f32 %v8336_v30, %v10011_v15  ;;  %8626 = vmatprep.mubr.bf16.mxu0 %v3297_v6  ;;  %v3299_v15 = vpack.c.bf16 %v3278_v57, %v3277_v51 }
 0x194   : > { %v1231_v41 = vpop.f32.mrf.mxu0 }
 0x195   : > { %v1601_v21 = vpop.f32.mrf.mxu1  ;;  %v1354_v37 = vadd.f32 %v1231_v41, %v10013_v40  ;;  %v10105_v27 = vadd.f32 %v8384_v18, %v1356_v19  ;;  %v3282_v41 = vld [vmem:[#allocation2 + $0x15a] sm:$0xff] }
 0x196   : > { %v8337_v35 = vpop.f32.mrf.mxu0 }
 0x197   : > { %v8385_v50 = vpop.f32.mrf.mxu1  ;;  %v1357_v24 = vadd.f32 %v8337_v35, %v10015_v3  ;;  %v10108_v7 = vadd.f32 %v1601_v21, %v1354_v37  ;;  %v3280_v3 = vld [vmem:[#allocation2 + $0x142] sm:$0xff] }
 0x198   : > { %v1234_v6 = vpop.f32.mrf.mxu0 }
 0x199   : > { %v10110_v0 = vpop.f32.mrf.mxu1  ;;  %v10113_v38 = vadd.f32 %v1234_v6, %v10017_v62  ;;  %v10115_v30 = vadd.f32 %v8385_v50, %v1357_v24  ;;  %v3300_v50 = vpack.c.bf16 %v3280_v3, %v3279_v26  ;;  %v3284_v26 = vld [vmem:[#allocation2 + $0x172] sm:$0xff] }
 0x19a   : > { %v8340_v40 = vpop.f32.mrf.mxu0  ;;  %8627 = vmatmul.mubr.bf16.gmra.mxu0 %v3298_v20 }
 0x19b   : > { %v8388_v13 = vpop.f32.mrf.mxu1  ;;  %v1360_v18 = vadd.f32 %v8340_v40, %v10019_v56  ;;  %8630 = vmatprep.mubr.bf16.mxu0 %v3299_v15  ;;  %v3301_v56 = vpack.c.bf16 %v3282_v41, %v3281_v48 }
 0x19c   : > { %v1247_v21 = vpop.f32.mrf.mxu0 }
 0x19d   : > { %v1617_v19 = vpop.f32.mrf.mxu1  ;;  %v1358_v51 = vadd.f32 %v1247_v21, %v10021_v9  ;;  %v10119_v57 = vadd.f32 %v8388_v13, %v1360_v18  ;;  %v3283_v18 = vld [vmem:[#allocation2 + $0x16a] sm:$0xff] }
 0x19e   : > { %v8341_v37 = vpop.f32.mrf.mxu0  ;;  %v3302_v41 = vpack.c.bf16 %v3284_v26, %v3283_v18 }
 0x19f   : > { %v8389_v62 = vpop.f32.mrf.mxu1  ;;  %v1361_v35 = vadd.f32 %v8341_v37, %v10023_v32  ;;  %v10122_v24 = vadd.f32 %v1617_v19, %v1358_v51 }
 0x1a0   : > { %v10126_v15 = vpop.f32.mrf.mxu0 }
 0x1a1   : > { %v10124_v20 = vpop.f32.mrf.mxu1  ;;  %v10128_v6 = vadd.f32 %v8389_v62, %v1361_v35 }
 0x1a2   : > { %12171 = vst [vmem:[#allocation52_spill] sm:$0xff] %v10124_v20  ;;  %v8344_v12 = vpop.f32.mrf.mxu0  ;;  %8631 = vmatmul.mubr.bf16.gmra.mxu0 %v3300_v50 }
 0x1a3   : > { %v8392_v40 = vpop.f32.mrf.mxu1  ;;  %v1364_v13 = vadd.f32 %v8344_v12, %v10029_v61  ;;  %8634 = vmatprep.mubr.bf16.mxu0 %v3301_v56 }
 0x1a4   : > { %v1263_v3 = vpop.f32.mrf.mxu0 }
 0x1a5   : > { %v1633_v9 = vpop.f32.mrf.mxu1  ;;  %v1362_v32 = vadd.f32 %v1263_v3, %v10031_v46  ;;  %v10132_v19 = vadd.f32 %v8392_v40, %v1364_v13  ;;  %v3287_v40 = vld [vmem:[#allocation2 + $0x19a] sm:$0xff]  ;;  %v3288_v13 = vld [vmem:[#allocation2 + $0x1a2] sm:$0xff] }
 0x1a6   : > { %v8345_v48 = vpop.f32.mrf.mxu0 }
 0x1a7   : > { %v8393_v21 = vpop.f32.mrf.mxu1  ;;  %v1365_v51 = vadd.f32 %v8345_v48, %v10033_v59  ;;  %v10135_v62 = vadd.f32 %v1633_v9, %v1362_v32  ;;  %v3304_v32 = vpack.c.bf16 %v3288_v13, %v3287_v40 }
 0x1a8   : > { %v10139_v50 = vpop.f32.mrf.mxu0 }
 0x1a9   : > { %v10137_v37 = vpop.f32.mrf.mxu1  ;;  %12173 = vst [vmem:[#allocation54_spill] sm:$0xff] %v10139_v50  ;;  %v10141_v12 = vadd.f32 %v8393_v21, %v1365_v51 }
 0x1aa   : > { %12172 = vst [vmem:[#allocation53_spill] sm:$0xff] %v10137_v37  ;;  %v8348_v35 = vpop.f32.mrf.mxu0  ;;  %8635 = vmatmul.mubr.bf16.gmra.mxu0 %v3302_v41 }
 0x1ab   : > { %v8396_v61 = vpop.f32.mrf.mxu1  ;;  %v1368_v46 = vadd.f32 %v8348_v35, %v10040_v52  ;;  %8638 = vmatprep.mubr.bf16.mxu0 %v9977_v17 }
 0x1ac   : > { %v1279_v18 = vpop.f32.mrf.mxu0 }
 0x1ad   : > { %v1649_v56 = vpop.f32.mrf.mxu1  ;;  %v1366_v59 = vadd.f32 %v1279_v18, %v10043_v4  ;;  %v10146_v9 = vadd.f32 %v8396_v61, %v1368_v46 }
 0x1ae   : > { %v8349_v3 = vpop.f32.mrf.mxu0 }
 0x1af   : > { %v8397_v26 = vpop.f32.mrf.mxu1  ;;  %v1369_v21 = vadd.f32 %v8349_v3, %v10045_v42  ;;  %v10149_v48 = vadd.f32 %v1649_v56, %v1366_v59 }
 0x1b0   : > { %v10153_v52 = vpop.f32.mrf.mxu0 }
 0x1b1   : > { %v10151_v41 = vpop.f32.mrf.mxu1  ;;  %12175 = vst [vmem:[#allocation56_spill] sm:$0xff] %v10153_v52  ;;  %v10155_v51 = vadd.f32 %v8397_v26, %v1369_v21 }
 0x1b2   : > { %12174 = vst [vmem:[#allocation55_spill] sm:$0xff] %v10151_v41  ;;  %v8352_v35 = vpop.f32.mrf.mxu0  ;;  %8639 = vmatmul.mubr.bf16.gmra.mxu0 %v3304_v32 }
 0x1b3   : > { %v8400_v17 = vpop.f32.mrf.mxu1  ;;  %v1372_v4 = vadd.f32 %v8352_v35, %v10051_v36 }
 0x1b4   : > { %v1295_v46 = vpop.f32.mrf.mxu0 }
 0x1b5   : > { %v1665_v61 = vpop.f32.mrf.mxu1  ;;  %v1370_v18 = vadd.f32 %v1295_v46, %v10053_v60  ;;  %v10159_v40 = vadd.f32 %v8400_v17, %v1372_v4 }
 0x1b6   : > { %v8353_v56 = vpop.f32.mrf.mxu0 }
 0x1b7   : > { %v8401_v42 = vpop.f32.mrf.mxu1  ;;  %v1373_v13 = vadd.f32 %v8353_v56, %v10055_v53  ;;  %v10162_v59 = vadd.f32 %v1665_v61, %v1370_v18 }
 0x1b8   : > { %v10166_v26 = vpop.f32.mrf.mxu0 }
 0x1b9   : > { %v10164_v3 = vpop.f32.mrf.mxu1  ;;  %12177 = vst [vmem:[#allocation58_spill] sm:$0xff] %v10166_v26  ;;  %v10168_v21 = vadd.f32 %v8401_v42, %v1373_v13 }
 0x1ba   : > { %12176 = vst [vmem:[#allocation57_spill] sm:$0xff] %v10164_v3  ;;  %v8420_v36 = vpop.f32.mrf.mxu0 }
 0x1bb   : > { %v8468_v32 = vpop.f32.mrf.mxu1  ;;  %v2084_v35 = vadd.f32 %v8420_v36, %v10063_v58 }
 0x1bc   : > { %v1923_v60 = vpop.f32.mrf.mxu0 }
 0x1bd   : > { %v2293_v16 = vpop.f32.mrf.mxu1  ;;  %v2082_v17 = vadd.f32 %v1923_v60, %v10066_v23  ;;  %v10172_v4 = vadd.f32 %v8468_v32, %v2084_v35 }
 0x1be   : > { %v8421_v53 = vpop.f32.mrf.mxu0 }
 0x1bf   : > { %v8469_v46 = vpop.f32.mrf.mxu1  ;;  %v2085_v61 = vadd.f32 %v8421_v53, %v10073_v22  ;;  %v10175_v18 = vadd.f32 %v2293_v16, %v2082_v17 }
 0x1c0   : > { %v10179_v42 = vpop.f32.mrf.mxu0 }
 0x1c1   : > { %v10177_v56 = vpop.f32.mrf.mxu1  ;;  %v10181_v13 = vadd.f32 %v8469_v46, %v2085_v61 }
 0x1c2   : > { %v8424_v58 = vpop.f32.mrf.mxu0 }
 0x1c3   : > { %v8472_v14 = vpop.f32.mrf.mxu1  ;;  %v2088_v36 = vadd.f32 %v8424_v58, %v10077_v25 }
 0x1c4   : > { %v1939_v23 = vpop.f32.mrf.mxu0 }
 0x1c5   : > { %v10184_v49 = vpop.f32.mrf.mxu1  ;;  %v10187_v32 = vadd.f32 %v1939_v23, %v10080_v43  ;;  %v10189_v35 = vadd.f32 %v8472_v14, %v2088_v36 }
 0x1c6   : > { %v8425_v22 = vpop.f32.mrf.mxu0 }
 0x1c7   : > { %v8473_v16 = vpop.f32.mrf.mxu1  ;;  %v2089_v60 = vadd.f32 %v8425_v22, %v10087_v63 }
 0x1c8   : > { %v10194_v46 = vpop.f32.mrf.mxu0 }
 0x1c9   : > { %v10192_v17 = vpop.f32.mrf.mxu1  ;;  %v10196_v53 = vadd.f32 %v8473_v16, %v2089_v60 }
 0x1ca   : > { %v8428_v25 = vpop.f32.mrf.mxu0 }
 0x1cb   : > { %v8476_v61 = vpop.f32.mrf.mxu1  ;;  %v2092_v58 = vadd.f32 %v8428_v25, %v10091_v8 }
 0x1cc   : > { %v1955_v43 = vpop.f32.mrf.mxu0 }
 0x1cd   : > { %v10199_v3 = vpop.f32.mrf.mxu1  ;;  %v10202_v14 = vadd.f32 %v1955_v43, %v10094_v10  ;;  %v10204_v36 = vadd.f32 %v8476_v61, %v2092_v58 }
 0x1ce   : > { %v8429_v63 = vpop.f32.mrf.mxu0 }
 0x1cf   : > { %v8477_v23 = vpop.f32.mrf.mxu1  ;;  %v2093_v22 = vadd.f32 %v8429_v63, %v10101_v2 }
 0x1d0   : > { %v10209_v16 = vpop.f32.mrf.mxu0 }
 0x1d1   : > { %v10207_v26 = vpop.f32.mrf.mxu1  ;;  %v10211_v60 = vadd.f32 %v8477_v23, %v2093_v22 }
 0x1d2   : > { %v8432_v8 = vpop.f32.mrf.mxu0 }
 0x1d3   : > { %v8480_v28 = vpop.f32.mrf.mxu1  ;;  %v2096_v25 = vadd.f32 %v8432_v8, %v10105_v27 }
 0x1d4   : > { %v1971_v10 = vpop.f32.mrf.mxu0 }
 0x1d5   : > { %v10214_v47 = vpop.f32.mrf.mxu1  ;;  %v10217_v61 = vadd.f32 %v1971_v10, %v10108_v7  ;;  %v10219_v58 = vadd.f32 %v8480_v28, %v2096_v25 }
 0x1d6   : > { %v8433_v2 = vpop.f32.mrf.mxu0 }
 0x1d7   : > { %v8481_v43 = vpop.f32.mrf.mxu1  ;;  %v2097_v63 = vadd.f32 %v8433_v2, %v10115_v30 }
 0x1d8   : > { %v10224_v23 = vpop.f32.mrf.mxu0 }
 0x1d9   : > { %v10222_v41 = vpop.f32.mrf.mxu1  ;;  %v10226_v22 = vadd.f32 %v8481_v43, %v2097_v63 }
 0x1da   : > { %v8436_v27 = vpop.f32.mrf.mxu0 }
 0x1db   : > { %v8484_v52 = vpop.f32.mrf.mxu1  ;;  %v2100_v8 = vadd.f32 %v8436_v27, %v10119_v57 }
 0x1dc   : > { %v1987_v7 = vpop.f32.mrf.mxu0 }
 0x1dd   : > { %v10229_v34 = vpop.f32.mrf.mxu1  ;;  %v10232_v28 = vadd.f32 %v1987_v7, %v10122_v24  ;;  %v10234_v25 = vadd.f32 %v8484_v52, %v2100_v8 }
 0x1de   : > { %12178 = vst [vmem:[#allocation59_spill] sm:$0xff] %v10229_v34  ;;  %v8437_v30 = vpop.f32.mrf.mxu0 }
 0x1df   : > { %12179 = vst [vmem:[#allocation60_spill] sm:$0xff] %v10232_v28  ;;  %v8485_v10 = vpop.f32.mrf.mxu1  ;;  %v2101_v2 = vadd.f32 %v8437_v30, %v10128_v6 }
 0x1e0   : > { %v10239_v43 = vpop.f32.mrf.mxu0 }
 0x1e1   : > { %v10237_v39 = vpop.f32.mrf.mxu1  ;;  %12181 = vst [vmem:[#allocation62_spill] sm:$0xff] %v10239_v43  ;;  %v10241_v63 = vadd.f32 %v8485_v10, %v2101_v2 }
 0x1e2   : > { %12180 = vst [vmem:[#allocation61_spill] sm:$0xff] %v10237_v39  ;;  %v8440_v57 = vpop.f32.mrf.mxu0 }
 0x1e3   : > { %v8488_v37 = vpop.f32.mrf.mxu1  ;;  %v2104_v27 = vadd.f32 %v8440_v57, %v10132_v19 }
 0x1e4   : > { %v2003_v24 = vpop.f32.mrf.mxu0 }
 0x1e5   : > { %v10244_v34 = vpop.f32.mrf.mxu1  ;;  %v10247_v52 = vadd.f32 %v2003_v24, %v10135_v62  ;;  %v10249_v8 = vadd.f32 %v8488_v37, %v2104_v27 }
 0x1e6   : > { %12182 = vst [vmem:[#allocation63_spill] sm:$0xff] %v10244_v34  ;;  %v8441_v6 = vpop.f32.mrf.mxu0 }
 0x1e7   : > { %12183 = vst [vmem:[#allocation64_spill] sm:$0xff] %v10247_v52  ;;  %v8489_v7 = vpop.f32.mrf.mxu1  ;;  %v2105_v30 = vadd.f32 %v8441_v6, %v10141_v12 }
 0x1e8   : > { %v10254_v10 = vpop.f32.mrf.mxu0 }
 0x1e9   : > { %v10252_v39 = vpop.f32.mrf.mxu1  ;;  %12185 = vst [vmem:[#allocation66_spill] sm:$0xff] %v10254_v10  ;;  %v10256_v2 = vadd.f32 %v8489_v7, %v2105_v30 }
 0x1ea   : > { %12184 = vst [vmem:[#allocation65_spill] sm:$0xff] %v10252_v39  ;;  %v8444_v19 = vpop.f32.mrf.mxu0 }
 0x1eb   : > { %v8492_v28 = vpop.f32.mrf.mxu1  ;;  %v2108_v57 = vadd.f32 %v8444_v19, %v10146_v9 }
 0x1ec   : > { %v2019_v62 = vpop.f32.mrf.mxu0 }
 0x1ed   : > { %v10259_v34 = vpop.f32.mrf.mxu1  ;;  %v10262_v37 = vadd.f32 %v2019_v62, %v10149_v48  ;;  %v10264_v27 = vadd.f32 %v8492_v28, %v2108_v57 }
 0x1ee   : > { %12186 = vst [vmem:[#allocation67_spill] sm:$0xff] %v10259_v34  ;;  %v8445_v12 = vpop.f32.mrf.mxu0 }
 0x1ef   : > { %12187 = vst [vmem:[#allocation68_spill] sm:$0xff] %v10262_v37  ;;  %v8493_v24 = vpop.f32.mrf.mxu1  ;;  %v2109_v6 = vadd.f32 %v8445_v12, %v10155_v51 }
 0x1f0   : > { %v10269_v7 = vpop.f32.mrf.mxu0 }
 0x1f1   : > { %v10267_v39 = vpop.f32.mrf.mxu1  ;;  %12189 = vst [vmem:[#allocation70_spill] sm:$0xff] %v10269_v7  ;;  %v10271_v30 = vadd.f32 %v8493_v24, %v2109_v6 }
 0x1f2   : > { %12188 = vst [vmem:[#allocation69_spill] sm:$0xff] %v10267_v39  ;;  %v8448_v9 = vpop.f32.mrf.mxu0 }
 0x1f3   : > { %v8496_v52 = vpop.f32.mrf.mxu1  ;;  %v2112_v19 = vadd.f32 %v8448_v9, %v10159_v40 }
 0x1f4   : > { %v2035_v48 = vpop.f32.mrf.mxu0 }
 0x1f5   : > { %v10274_v34 = vpop.f32.mrf.mxu1  ;;  %v10277_v28 = vadd.f32 %v2035_v48, %v10162_v59  ;;  %v10279_v57 = vadd.f32 %v8496_v52, %v2112_v19 }
 0x1f6   : > { %12190 = vst [vmem:[#allocation71_spill] sm:$0xff] %v10274_v34  ;;  %v8449_v51 = vpop.f32.mrf.mxu0 }
 0x1f7   : > { %12191 = vst [vmem:[#allocation72_spill] sm:$0xff] %v10277_v28  ;;  %v8497_v62 = vpop.f32.mrf.mxu1  ;;  %v2113_v12 = vadd.f32 %v8449_v51, %v10168_v21 }
 0x1f8   : > { %v10284_v24 = vpop.f32.mrf.mxu0 }
 0x1f9   : > { %v10282_v39 = vpop.f32.mrf.mxu1  ;;  %12193 = vst [vmem:[#allocation74_spill] sm:$0xff] %v10284_v24  ;;  %v10286_v6 = vadd.f32 %v8497_v62, %v2113_v12 }
 0x1fa   : > { %12192 = vst [vmem:[#allocation73_spill] sm:$0xff] %v10282_v39  ;;  %v8516_v40 = vpop.f32.mrf.mxu0 }
 0x1fb   : > { %v10288_v37 = vpop.f32.mrf.mxu1  ;;  %v10291_v9 = vadd.f32 %v8516_v40, %v10172_v4 }
 0x1fc   : > { %v2664_v59 = vpop.f32.mrf.mxu0 }
 0x1fd   : > { %v10293_v48 = vpop.f32.mrf.mxu1  ;;  %v10296_v52 = vadd.f32 %v2664_v59, %v10175_v18 }
 0x1fe   : > { %v8517_v19 = vpop.f32.mrf.mxu0 }
 0x1ff   : > { %v10299_v21 = vadd.f32 %v8517_v19, %v10181_v13  ;;  %v10303_v62 = vpop.f32.mrf.mxu1 }
 0x200   : > { %v10301_v51 = vpop.f32.mrf.mxu0 }
 0x201   : > { %v10308_v4 = vpop.f32.mrf.mxu1 }
 0x202   : > { %v8520_v12 = vpop.f32.mrf.mxu0 }
 0x203   : > { %v10306_v39 = vadd.f32 %v8520_v12, %v10189_v35  ;;  %v10315_v59 = vpop.f32.mrf.mxu1 }
 0x204   : > { %v10310_v40 = vpop.f32.mrf.mxu0 }
 0x205   : > { %v10322_v24 = vpop.f32.mrf.mxu1 }
 0x206   : > { %v8521_v34 = vpop.f32.mrf.mxu0 }
 0x207   : > { %v10313_v18 = vadd.f32 %v8521_v34, %v10196_v53  ;;  %v10329_v10 = vpop.f32.mrf.mxu1 }
 0x208   : > { %v10317_v13 = vpop.f32.mrf.mxu0 }
 0x209   : > { %v10336_v43 = vpop.f32.mrf.mxu1 }
 0x20a   : > { %v8524_v19 = vpop.f32.mrf.mxu0 }
 0x20b   : > { %v10320_v28 = vadd.f32 %v8524_v19, %v10204_v36  ;;  %v10343_v54 = vpop.f32.mrf.mxu1 }
 0x20c   : > { %v10324_v35 = vpop.f32.mrf.mxu0 }
 0x20d   : > { %v10350_v20 = vpop.f32.mrf.mxu1 }
 0x20e   : > { %v8525_v12 = vpop.f32.mrf.mxu0 }
 0x20f   : > { %v10327_v7 = vadd.f32 %v8525_v12, %v10211_v60 }
 0x210   : > { %v10331_v34 = vpop.f32.mrf.mxu0 }
 0x211   : > { %12194 = vst [vmem:[#allocation75_spill] sm:$0xff] %v10327_v7 }
 0x212   : > { %v8528_v53 = vpop.f32.mrf.mxu0 }
 0x213   : > { %v10334_v50 = vadd.f32 %v8528_v53, %v10219_v58 }
 0x214   : > { %v10338_v36 = vpop.f32.mrf.mxu0 }
 0x215   : > { %12195 = vst [vmem:[#allocation76_spill] sm:$0xff] %v10334_v50  ;;  %12196 = vst [vmem:[#allocation77_spill] sm:$0xff] %v10338_v36  ;;  %v10357_v36 = vpop.f32.mrf.mxu1 }
 0x216   : > { %v8529_v19 = vpop.f32.mrf.mxu0 }
 0x217   : > { %v10341_v55 = vadd.f32 %v8529_v19, %v10226_v22 }
 0x218   : > { %v10345_v60 = vpop.f32.mrf.mxu0 }
 0x219   : > { %12197 = vst [vmem:[#allocation78_spill] sm:$0xff] %v10341_v55  ;;  %12198 = vst [vmem:[#allocation79_spill] sm:$0xff] %v10345_v60  ;;  %v10364_v60 = vpop.f32.mrf.mxu1 }
 0x21a   : > { %v8532_v12 = vpop.f32.mrf.mxu0 }
 0x21b   : > { %v10348_v7 = vadd.f32 %v8532_v12, %v10234_v25 }
 0x21c   : > { %v10352_v58 = vpop.f32.mrf.mxu0 }
 0x21d   : > { %12199 = vst [vmem:[#allocation80_spill] sm:$0xff] %v10348_v7  ;;  %12200 = vst [vmem:[#allocation81_spill] sm:$0xff] %v10352_v58  ;;  %v10371_v58 = vpop.f32.mrf.mxu1 }
 0x21e   : > { %v8533_v53 = vpop.f32.mrf.mxu0 }
 0x21f   : > { %v10355_v50 = vadd.f32 %v8533_v53, %v10241_v63 }
 0x220   : > { %v10359_v22 = vpop.f32.mrf.mxu0 }
 0x221   : > { %12201 = vst [vmem:[#allocation82_spill] sm:$0xff] %v10355_v50  ;;  %12202 = vst [vmem:[#allocation83_spill] sm:$0xff] %v10359_v22  ;;  %v10378_v22 = vpop.f32.mrf.mxu1 }
 0x222   : > { %v8536_v19 = vpop.f32.mrf.mxu0 }
 0x223   : > { %v10362_v55 = vadd.f32 %v8536_v19, %v10249_v8 }
 0x224   : > { %v10366_v25 = vpop.f32.mrf.mxu0 }
 0x225   : > { %12203 = vst [vmem:[#allocation84_spill] sm:$0xff] %v10362_v55  ;;  %12204 = vst [vmem:[#allocation85_spill] sm:$0xff] %v10366_v25  ;;  %v10385_v25 = vpop.f32.mrf.mxu1 }
 0x226   : > { %v8537_v12 = vpop.f32.mrf.mxu0 }
 0x227   : > { %v10369_v7 = vadd.f32 %v8537_v12, %v10256_v2 }
 0x228   : > { %v10373_v63 = vpop.f32.mrf.mxu0 }
 0x229   : > { %12205 = vst [vmem:[#allocation86_spill] sm:$0xff] %v10369_v7  ;;  %12206 = vst [vmem:[#allocation87_spill] sm:$0xff] %v10373_v63  ;;  %v1713_v7 = vadd.f32 %v10068_v29, %v10071_v11  ;;  %v1717_v29 = vadd.f32 %v10082_v1, %v10085_v45 }
 0x22a   : > { %v8540_v53 = vpop.f32.mrf.mxu0 }
 0x22b   : > { %v10376_v50 = vadd.f32 %v8540_v53, %v10264_v27  ;;  %v10394_v27 = vpop.f32.mrf.mxu1 }
 0x22c   : > { %v10380_v8 = vpop.f32.mrf.mxu0 }
 0x22d   : > { %12207 = vst [vmem:[#allocation88_spill] sm:$0xff] %v10376_v50  ;;  %12208 = vst [vmem:[#allocation89_spill] sm:$0xff] %v10380_v8  ;;  %v2083_v50 = vadd.f32 %v10179_v42, %v1713_v7 }
 0x22e   : > { %v8541_v19 = vpop.f32.mrf.mxu0 }
 0x22f   : > { %v10383_v55 = vadd.f32 %v8541_v19, %v10271_v30  ;;  %v10402_v19 = vpop.f32.mrf.mxu1 }
 0x230   : > { %v10387_v2 = vpop.f32.mrf.mxu0 }
 0x231   : > { %12209 = vst [vmem:[#allocation90_spill] sm:$0xff] %v10383_v55  ;;  %12210 = vst [vmem:[#allocation91_spill] sm:$0xff] %v10387_v2  ;;  %v2453_v2 = vadd.f32 %v10177_v56, %v2083_v50 }
 0x232   : > { %v8544_v12 = vpop.f32.mrf.mxu0 }
 0x233   : > { %v10392_v63 = vadd.f32 %v8544_v12, %v10279_v57  ;;  %v2824_v57 = vadd.f32 %v10301_v51, %v2453_v2  ;;  %v2087_v12 = vadd.f32 %v10194_v46, %v1717_v29  ;;  %v3195_v46 = vadd.f32 %v10288_v37, %v10291_v9 }
 0x234   : > { %v10396_v53 = vpop.f32.mrf.mxu0 }
 0x235   : > { %12211 = vst [vmem:[#allocation92_spill] sm:$0xff] %v10392_v63  ;;  %v10411_v63 = vpop.f32.mrf.mxu1  ;;  %v3194_v50 = vadd.f32 %v10308_v4, %v2824_v57  ;;  %v2457_v56 = vadd.f32 %v10192_v17, %v2087_v12 }
 0x236   : > { %v8545_v8 = vpop.f32.mrf.mxu0 }
 0x237   : > { %v10400_v30 = vadd.f32 %v8545_v8, %v10286_v6  ;;  %v2456_v6 = vadd.f32 %v10184_v49, %v10187_v32  ;;  %v3193_v8 = vadd.f32 %v10293_v48, %v10296_v52  ;;  %v10419_v1 = vpop.f32.mrf.mxu1  ;;  %v1721_v49 = vadd.f32 %v10096_v31, %v10099_v33 }
 0x238   : > { %v10404_v55 = vpop.f32.mrf.mxu0  ;;  %v3196_v48 = vadd.f32 %v10303_v62, %v10299_v21  ;;  %v2828_v17 = vadd.f32 %v10317_v13, %v2457_v56  ;;  %v2460_v21 = vadd.f32 %v10199_v3, %v10202_v14  ;;  %v1725_v3 = vadd.f32 %v10110_v0, %v10113_v38 }
 0x239   : > { %v2827_v51 = vadd.f32 %v10310_v40, %v2456_v6  ;;  %v2091_v9 = vadd.f32 %v10209_v16, %v1721_v49  ;;  %v10438_v4 = vpop.f32.mrf.mxu1 }
 0x23a   : > { %v8612_v11 = vpop.f32.mrf.mxu0  ;;  %v3198_v62 = vadd.f32 %v10336_v43, %v2828_v17  ;;  %v3200_v43 = vadd.f32 %v10329_v10, %v10313_v18  ;;  %v12212_v17 = vld [vmem:[#allocation77_spill] sm:$0xff] }
 0x23b   : > { %v10433_v52 = vadd.f32 %v8612_v11, %v3195_v46  ;;  %v3197_v57 = vadd.f32 %v10322_v24, %v2827_v51  ;;  %v2461_v16 = vadd.f32 %v10207_v26, %v2091_v9  ;;  %v3199_v24 = vadd.f32 %v10315_v59, %v10306_v39 }
 0x23c   : > { %v3404_v42 = vpop.f32.mrf.mxu0  ;;  %v989_v39 = vadd.f32 %v10025_v44, %v10027_v5  ;;  %v2095_v59 = vadd.f32 %v10224_v23, %v1725_v3  ;;  %v2464_v51 = vadd.f32 %v10214_v47, %v10217_v61  ;;  %v12213_v47 = vld [vmem:[#allocation52_spill] sm:$0xff] }
 0x23d   : > { %v10424_v2 = vadd.f32 %v3404_v42, %v3193_v8  ;;  %v10451_v42 = vpop.f32.mrf.mxu1  ;;  %v2832_v26 = vadd.f32 %v10331_v34, %v2461_v16 }
 0x23e   : > { %v8613_v7 = vpop.f32.mrf.mxu0  ;;  %v1359_v18 = vadd.f32 %v10126_v15, %v989_v39  ;;  %v2465_v23 = vadd.f32 %v10222_v41, %v2095_v59  ;;  %v2835_v15 = vadd.f32 %v12212_v17, %v2464_v51  ;;  %v12225_v17 = vld [vmem:[#allocation53_spill] sm:$0xff] }
 0x23f   : > { %v10441_v12 = vadd.f32 %v8613_v7, %v3196_v48  ;;  %v2831_v7 = vadd.f32 %v10324_v35, %v2460_v21  ;;  %v10470_v35 = vpop.f32.mrf.mxu1  ;;  %v3202_v49 = vadd.f32 %v10364_v60, %v2832_v26  ;;  %v3203_v48 = vadd.f32 %v10343_v54, %v10320_v28  ;;  %v12217_v54 = vld [vmem:[#allocation46_spill] sm:$0xff] }
 0x240   : > { %v3407_v45 = vpop.f32.mrf.mxu0  ;;  %v1729_v61 = vadd.f32 %v12213_v47, %v1359_v18 }
 0x241   : > { %v10426_v29 = vadd.f32 %v3407_v45, %v3194_v50  ;;  %v3201_v0 = vadd.f32 %v10350_v20, %v2831_v7  ;;  %v3205_v7 = vadd.f32 %v10378_v22, %v2835_v15 }
 0x242   : > { %v8616_v32 = vpop.f32.mrf.mxu0 }
 0x243   : > { %v3659_v37 = vadd.f32 %v10426_v29, %v10424_v2  ;;  %v10464_v56 = vadd.f32 %v8616_v32, %v3199_v24  ;;  %v10484_v32 = vpop.f32.mrf.mxu1 }
 0x244   : > { %v3420_v40 = vpop.f32.mrf.mxu0 }
 0x245   : > { %v3660_v31 = vadd.f32 %v3659_v37, %v10433_v52  ;;  %v10447_v13 = vadd.f32 %v3420_v40, %v3197_v57  ;;  %v12214_v40 = vld [vmem:[#allocation75_spill] sm:$0xff] }
 0x246   : > { %v8617_v33 = vpop.f32.mrf.mxu0  ;;  %v3204_v57 = vadd.f32 %v10357_v36, %v12214_v40  ;;  %v12219_v36 = vld [vmem:[#allocation54_spill] sm:$0xff] }
 0x247   : > { %v3661_v11 = vadd.f32 %v3660_v31, %v10441_v12  ;;  %v10473_v38 = vadd.f32 %v8617_v33, %v3200_v43  ;;  %v12215_v31 = vld [vmem:[#allocation79_spill] sm:$0xff] }
 0x248   : > { %v3423_v6 = vpop.f32.mrf.mxu0  ;;  %v2836_v41 = vadd.f32 %v12215_v31, %v2465_v23 }
 0x249   : > { %v3662_v8 = vadd.f32 %v3661_v11, %v10447_v13  ;;  %v10457_v50 = vadd.f32 %v3423_v6, %v3198_v62  ;;  %v12216_v62 = vld [vmem:[#allocation47_spill] sm:$0xff]  ;;  %v12218_v11 = vld [vmem:[#allocation62_spill] sm:$0xff]  ;;  %v3117_v6 = vpop.f32.mrf.mxu1 }
 0x24a   : > { %v8620_v14 = vpop.f32.mrf.mxu0  ;;  %v993_v28 = vadd.f32 %v12217_v54, %v12216_v62  ;;  %v2099_v16 = vadd.f32 %v12218_v11, %v1729_v61  ;;  %v3206_v59 = vadd.f32 %v10394_v27, %v2836_v41  ;;  %v12227_v61 = vld [vmem:[#allocation83_spill] sm:$0xff]  ;;  %v12228_v41 = vld [vmem:[#allocation49_spill] sm:$0xff]  ;;  %v12230_v62 = vld [vmem:[#allocation66_spill] sm:$0xff] }
 0x24b   : > { %v3663_v45 = vadd.f32 %v3662_v8, %v10457_v50  ;;  %v10496_v33 = vadd.f32 %v8620_v14, %v3203_v48  ;;  %v12220_v14 = vld [vmem:[#allocation60_spill] sm:$0xff]  ;;  %v10514_v51 = vpop.f32.mrf.mxu1 }
 0x24c   : > { %v3436_v46 = vpop.f32.mrf.mxu0  ;;  %v1363_v43 = vadd.f32 %v12219_v36, %v993_v28 }
 0x24d   : > { %v3664_v10 = vadd.f32 %v3663_v45, %v10464_v56  ;;  %v10480_v44 = vadd.f32 %v3436_v46, %v3201_v0  ;;  %v12221_v45 = vld [vmem:[#allocation59_spill] sm:$0xff]  ;;  %v3130_v28 = vpop.f32.mrf.mxu1 }
 0x24e   : > { %v8621_v34 = vpop.f32.mrf.mxu0  ;;  %v2468_v39 = vadd.f32 %v12221_v45, %v12220_v14  ;;  %v1733_v27 = vadd.f32 %v12225_v17, %v1363_v43  ;;  %v12233_v43 = vld [vmem:[#allocation63_spill] sm:$0xff] }
 0x24f   : > { %v3665_v5 = vadd.f32 %v3664_v10, %v10473_v38  ;;  %v10503_v8 = vadd.f32 %v8621_v34, %v3204_v57  ;;  %v12222_v10 = vld [vmem:[#allocation61_spill] sm:$0xff]  ;;  %v12223_v34 = vld [vmem:[#allocation76_spill] sm:$0xff] }
 0x250   : > { %v3439_v20 = vpop.f32.mrf.mxu0  ;;  %v2469_v18 = vadd.f32 %v12222_v10, %v2099_v16  ;;  %v2103_v54 = vadd.f32 %v12230_v62, %v1733_v27  ;;  %v12238_v27 = vld [vmem:[#allocation82_spill] sm:$0xff] }
 0x251   : > { %v3666_v37 = vadd.f32 %v3665_v5, %v10480_v44  ;;  %v10490_v9 = vadd.f32 %v3439_v20, %v3202_v49  ;;  %v3207_v49 = vadd.f32 %v10371_v58, %v12223_v34  ;;  %v12224_v5 = vld [vmem:[#allocation81_spill] sm:$0xff]  ;;  %v12229_v58 = vld [vmem:[#allocation48_spill] sm:$0xff] }
 0x252   : > { %v8624_v60 = vpop.f32.mrf.mxu0  ;;  %v2839_v23 = vadd.f32 %v12224_v5, %v2468_v39  ;;  %v2840_v40 = vadd.f32 %v12227_v61, %v2469_v18  ;;  %v8589_v18 = vpop.f32.mrf.mxu1  ;;  %v12236_v34 = vld [vmem:[#allocation85_spill] sm:$0xff] }
 0x253   : > { %v3667_v21 = vadd.f32 %v3666_v37, %v10490_v9  ;;  %v12226_v37 = vld [vmem:[#allocation78_spill] sm:$0xff]  ;;  %v10526_v57 = vadd.f32 %v8624_v60, %v3207_v49  ;;  %v12232_v60 = vld [vmem:[#allocation64_spill] sm:$0xff] }
 0x254   : > { %v3452_v24 = vpop.f32.mrf.mxu0  ;;  %v3208_v47 = vadd.f32 %v10385_v25, %v12226_v37  ;;  %v3209_v16 = vadd.f32 %v10411_v63, %v2839_v23  ;;  %v12231_v25 = vld [vmem:[#allocation56_spill] sm:$0xff]  ;;  %v2472_v14 = vadd.f32 %v12233_v43, %v12232_v60  ;;  %v3210_v45 = vadd.f32 %v10438_v4, %v2840_v40  ;;  %v12245_v43 = vld [vmem:[#allocation67_spill] sm:$0xff] }
 0x255   : > { %v3668_v3 = vadd.f32 %v3667_v21, %v10496_v33  ;;  %v10510_v46 = vadd.f32 %v3452_v24, %v3205_v7  ;;  %v997_v21 = vadd.f32 %v12229_v58, %v12228_v41  ;;  %v3212_v37 = vadd.f32 %v10419_v1, %v12238_v27  ;;  %v12240_v41 = vld [vmem:[#allocation51_spill] sm:$0xff]  ;;  %v12243_v1 = vld [vmem:[#allocation58_spill] sm:$0xff] }
 0x256   : > { %v8625_v26 = vpop.f32.mrf.mxu0  ;;  %v2843_v49 = vadd.f32 %v12236_v34, %v2472_v14  ;;  %v12248_v34 = vld [vmem:[#allocation89_spill] sm:$0xff] }
 0x257   : > { %v3669_v0 = vadd.f32 %v3668_v3, %v10503_v8  ;;  %v10533_v24 = vadd.f32 %v8625_v26, %v3208_v47  ;;  %v1367_v3 = vadd.f32 %v12231_v25, %v997_v21  ;;  %v12235_v26 = vld [vmem:[#allocation80_spill] sm:$0xff]  ;;  %v12239_v47 = vld [vmem:[#allocation87_spill] sm:$0xff]  ;;  %v12242_v21 = vld [vmem:[#allocation70_spill] sm:$0xff] }
 0x258   : > { %v3455_v22 = vpop.f32.mrf.mxu0 }
 0x259   : > { %v3670_v20 = vadd.f32 %v3669_v0, %v10510_v46  ;;  %v10520_v48 = vadd.f32 %v3455_v22, %v3206_v59  ;;  %v12234_v0 = vld [vmem:[#allocation65_spill] sm:$0xff]  ;;  %v3211_v22 = vadd.f32 %v10402_v19, %v12235_v26  ;;  %v12241_v19 = vld [vmem:[#allocation50_spill] sm:$0xff] }
 0x25a   : > { %v8628_v15 = vpop.f32.mrf.mxu0  ;;  %v2473_v10 = vadd.f32 %v12234_v0, %v2103_v54  ;;  %v1001_v58 = vadd.f32 %v12241_v19, %v12240_v41  ;;  %v3133_v54 = vpop.f32.mrf.mxu1 }
 0x25b   : > { %v3671_v31 = vadd.f32 %v3670_v20, %v10520_v48  ;;  %v12237_v20 = vld [vmem:[#allocation55_spill] sm:$0xff]  ;;  %v10554_v40 = vadd.f32 %v8628_v15, %v3211_v22  ;;  %v12244_v15 = vld [vmem:[#allocation68_spill] sm:$0xff] }
 0x25c   : > { %v3468_v11 = vpop.f32.mrf.mxu0  ;;  %v1737_v17 = vadd.f32 %v12237_v20, %v1367_v3  ;;  %v2844_v61 = vadd.f32 %v12239_v47, %v2473_v10  ;;  %v1371_v3 = vadd.f32 %v12243_v1, %v1001_v58  ;;  %v2476_v14 = vadd.f32 %v12245_v43, %v12244_v15  ;;  %v12246_v10 = vld [vmem:[#allocation69_spill] sm:$0xff]  ;;  %v8592_v26 = vpop.f32.mrf.mxu1  ;;  %v12252_v58 = vld [vmem:[#allocation74_spill] sm:$0xff]  ;;  %v12253_v15 = vld [vmem:[#allocation72_spill] sm:$0xff] }
 0x25d   : > { %v3672_v7 = vadd.f32 %v3671_v31, %v10526_v57  ;;  %v10540_v39 = vadd.f32 %v3468_v11, %v3209_v16  ;;  %v3213_v16 = vadd.f32 %v10470_v35, %v2843_v49  ;;  %v12247_v35 = vld [vmem:[#allocation84_spill] sm:$0xff]  ;;  %v9223_v1 = vld [vmem:[#allocation9 + $0x78] sm:$0xff]   ;;  %v12254_v43 = vld [vmem:[#allocation71_spill] sm:$0xff] }
 0x25e   : > { %v8629_v36 = vpop.f32.mrf.mxu0  ;;  %v2107_v62 = vadd.f32 %v12242_v21, %v1737_v17  ;;  %v2847_v49 = vadd.f32 %v12248_v34, %v2476_v14  ;;  %v12249_v17 = vld [vmem:[#allocation57_spill] sm:$0xff]  ;;  %v3146_v21 = vpop.f32.mrf.mxu1  ;;  %8690 = vmatprep.subr.bf16.mxu0 %v9223_v1 }
 0x25f   : > { %v3673_v59 = vadd.f32 %v3672_v7, %v10533_v24  ;;  %v10561_v7 = vadd.f32 %v8629_v36, %v3212_v37  ;;  %v3215_v36 = vadd.f32 %v10451_v42, %v12247_v35  ;;  %v1741_v27 = vadd.f32 %v12249_v17, %v1371_v3  ;;  %v12250_v37 = vld [vmem:[#allocation86_spill] sm:$0xff]  ;;  %8691 = vmatpush3.bf16.msra.mxu0 %v9223_v1 }
 0x260   : > { %v3471_v63 = vpop.f32.mrf.mxu0  ;;  %v3216_v47 = vadd.f32 %v10484_v32, %v12250_v37  ;;  %v2480_v32 = vadd.f32 %v12254_v43, %v12253_v15 }
 0x261   : > { %v3674_v5 = vadd.f32 %v3673_v59, %v10540_v39  ;;  %v10548_v23 = vadd.f32 %v3471_v63, %v3210_v45  ;;  %v3214_v45 = vadd.f32 %v3117_v6, %v2844_v61  ;;  %v2477_v63 = vadd.f32 %v12246_v10, %v2107_v62  ;;  %v12251_v61 = vld [vmem:[#allocation91_spill] sm:$0xff] }
 0x262   : > { %v8632_v4 = vpop.f32.mrf.mxu0  ;;  %v2111_v42 = vadd.f32 %v12252_v58, %v1741_v27  ;;  %v2851_v35 = vadd.f32 %v10396_v53, %v2480_v32  ;;  %v9226_v58 = vld [vmem:[#allocation9 + $0x68] sm:$0xff]  }
 0x263   : > { %v3675_v31 = vadd.f32 %v3674_v5, %v10548_v23  ;;  %v10581_v41 = vadd.f32 %v8632_v4, %v3215_v36 }
 0x264   : > { %v3484_v11 = vpop.f32.mrf.mxu0 }
 0x265   : > { %v3676_v25 = vadd.f32 %v3675_v31, %v10554_v40  ;;  %v10567_v59 = vadd.f32 %v3484_v11, %v3213_v16  ;;  %v2848_v31 = vadd.f32 %v12251_v61, %v2477_v63  ;;  %v3217_v11 = vadd.f32 %v3130_v28, %v2847_v49  ;;  %v8593_v63 = vpop.f32.mrf.mxu1  ;;  %v12256_v28 = vld [vmem:[#allocation88_spill] sm:$0xff] }
 0x266   : > { %v8633_v60 = vpop.f32.mrf.mxu0 }
 0x267   : > { %v3677_v0 = vadd.f32 %v3676_v25, %v10561_v7  ;;  %v10585_v16 = vadd.f32 %v8633_v60, %v3216_v47  ;;  %v3218_v14 = vadd.f32 %v3133_v54, %v2848_v31  ;;  %v3219_v60 = vadd.f32 %v10514_v51, %v12256_v28  ;;  %v9224_v54 = vld [vmem:[#allocation9 + $0x70] sm:$0xff]   ;;  %v3149_v61 = vpop.f32.mrf.mxu1 }
 0x268   : > { %v3487_v22 = vpop.f32.mrf.mxu0  ;;  %8692 = vmatprep.subr.bf16.mxu0 %v9224_v54  ;;  %v3221_v51 = vadd.f32 %v3146_v21, %v2851_v35  ;;  %v9227_v21 = vld [vmem:[#allocation9 + $0x60] sm:$0xff]   ;;  %v9221_v35 = vld [vmem:[#allocation9 + $0x28] sm:$0xff]  }
 0x269   : > { %v3678_v5 = vadd.f32 %v3677_v0, %v10567_v59  ;;  %v10575_v20 = vadd.f32 %v3487_v22, %v3214_v45  ;;  %v12255_v0 = vld [vmem:[#allocation73_spill] sm:$0xff]  ;;  %8693 = vmatpush3.bf16.msra.mxu0 %v9224_v54 }
 0x26a   : > { %v8636_v6 = vpop.f32.mrf.mxu0  ;;  %v2481_v10 = vadd.f32 %v12255_v0, %v2111_v42  ;;  %8694 = vmatprep.subr.bf16.mxu0 %v9226_v58  ;;  %v9219_v0 = vld [vmem:[#allocation9 + $0x38] sm:$0xff]  }
 0x26b   : > { %v3679_v19 = vadd.f32 %v3678_v5, %v10575_v20  ;;  %v12257_v5 = vld [vmem:[#allocation90_spill] sm:$0xff]  ;;  %v10602_v37 = vadd.f32 %v8636_v6, %v3219_v60  ;;  %v12258_v6 = vld [vmem:[#allocation92_spill] sm:$0xff]  ;;  %8642 = vmatprep.subr.bf16.mxu1 %v9219_v0 }
 0x26c   : > { %v3500_v62 = vpop.f32.mrf.mxu0  ;;  %v3220_v17 = vadd.f32 %v8589_v18, %v12257_v5  ;;  %v2852_v27 = vadd.f32 %v10404_v55, %v2481_v10  ;;  %v9229_v10 = vld [vmem:[#allocation9 + $0x58] sm:$0xff]   ;;  %8643 = vmatpush3.bf16.msra.mxu1 %v9219_v0  ;;  %v9222_v5 = vld [vmem:[#allocation9 + $0x20] sm:$0xff]  }
 0x26d   : > { %v3680_v25 = vadd.f32 %v3679_v19, %v10581_v41  ;;  %v10590_v45 = vadd.f32 %v3500_v62, %v3217_v11  ;;  %8695 = vmatpush3.bf16.msra.mxu0 %v9226_v58 }
 0x26e   : > { %v8637_v3 = vpop.f32.mrf.mxu0  ;;  %v3222_v62 = vadd.f32 %v3149_v61, %v2852_v27  ;;  %8696 = vmatprep.subr.bf16.mxu0 %v9227_v21 }
 0x26f   : > { %v3681_v4 = vadd.f32 %v3680_v25, %v10585_v16  ;;  %v10605_v53 = vadd.f32 %v8637_v3, %v3220_v17  ;;  %v3223_v25 = vadd.f32 %v8592_v26, %v12258_v6  ;;  %v3224_v3 = vadd.f32 %v8593_v63, %v10400_v30  ;;  %v9220_v30 = vld [vmem:[#allocation9 + $0x30] sm:$0xff]   ;;  %v9233_v17 = vld [vmem:[#allocation9 + $0x40] sm:$0xff]  }
 0x270   : > { %v3503_v22 = vpop.f32.mrf.mxu0  ;;  %v9230_v63 = vld [vmem:[#allocation9 + $0x50] sm:$0xff]   ;;  %8644 = vmatprep.subr.bf16.mxu1 %v9220_v30 }
 0x271   : > { %v3682_v36 = vadd.f32 %v3681_v4, %v10590_v45  ;;  %v10598_v34 = vadd.f32 %v3503_v22, %v3218_v14  ;;  %8697 = vmatpush3.bf16.msra.mxu0 %v9227_v21  ;;  %8645 = vmatpush3.bf16.msra.mxu1 %v9220_v30 }
 0x272   : > { %v8640_v49 = vpop.f32.mrf.mxu0  ;;  %8698 = vmatprep.subr.bf16.mxu0 %v9229_v10  ;;  %8646 = vmatprep.subr.bf16.mxu1 %v9221_v35 }
 0x273   : > { %v3683_v47 = vadd.f32 %v3682_v36, %v10598_v34  ;;  %v10616_v43 = vadd.f32 %v8640_v49, %v3223_v25  ;;  %v9232_v36 = vld [vmem:[#allocation9 + $0x48] sm:$0xff]   ;;  %v10701_v25 = vld [vmem:[#allocation9 + $0xb8] sm:$0xff]  }
 0x274   : > { %v3516_v31 = vpop.f32.mrf.mxu0 }
 0x275   : > { %v3684_v19 = vadd.f32 %v3683_v47, %v10602_v37  ;;  %v10608_v11 = vadd.f32 %v3516_v31, %v3221_v51  ;;  %8699 = vmatpush3.bf16.msra.mxu0 %v9229_v10  ;;  %8647 = vmatpush3.bf16.msra.mxu1 %v9221_v35  ;;  %v9225_v47 = vld [vmem:[#allocation9 + $0x18] sm:$0xff]   ;;  %v9228_v31 = vld [vmem:[#allocation9 + $0x10] sm:$0xff]  }
 0x276   : > { %v8641_v42 = vpop.f32.mrf.mxu0  ;;  %8700 = vmatprep.subr.bf16.mxu0 %v9230_v63  ;;  %8648 = vmatprep.subr.bf16.mxu1 %v9222_v5 }
 0x277   : > { %v3685_v55 = vadd.f32 %v3684_v19, %v10605_v53  ;;  %v10619_v14 = vadd.f32 %v8641_v42, %v3224_v3 }
 0x278   : > { %v3519_v18 = vpop.f32.mrf.mxu0 }
 0x279   : > { %v3686_v1 = vadd.f32 %v3685_v55, %v10608_v11  ;;  %v10613_v15 = vadd.f32 %v3519_v18, %v3222_v62  ;;  %8701 = vmatpush3.bf16.msra.mxu0 %v9230_v63  ;;  %8649 = vmatpush3.bf16.msra.mxu1 %v9222_v5  ;;  %v9231_v62 = vld [vmem:[#allocation9 + $0x8] sm:$0xff]  }
 0x27a   : > { %8702 = vmatprep.subr.bf16.mxu0 %v9232_v36  ;;  %8650 = vmatprep.subr.bf16.mxu1 %v9225_v47 }
 0x27b   : > { %v3687_v32 = vadd.f32 %v3686_v1, %v10613_v15 }
 0x27d   : > { %v3688_v4 = vadd.f32 %v3687_v32, %v10616_v43  ;;  %8703 = vmatpush3.bf16.msra.mxu0 %v9232_v36  ;;  %8651 = vmatpush3.bf16.msra.mxu1 %v9225_v47 }
 0x27e   : > { %8704 = vmatprep.subr.bf16.mxu0 %v9233_v17  ;;  %8652 = vmatprep.subr.bf16.mxu1 %v9228_v31 }
 0x27f   : > { %v3689_v26 = vadd.f32 %v3688_v4, %v10619_v14 }
 0x281   : > { %v3690_v22 = vrot.slane %v3689_v26, 4  ;;  %8705 = vmatpush3.bf16.msra.mxu0 %v9233_v17  ;;  %8653 = vmatpush3.bf16.msra.mxu1 %v9228_v31 }
 0x282   : > { %8654 = vmatprep.subr.bf16.mxu1 %v9231_v62 }
 0x283   : > { %v3691_v28 = vadd.f32 %v3690_v22, %v3689_v26 }
 0x285   : > { %v3692_v60 = vrot.slane %v3691_v28, 2  ;;  %8655 = vmatpush3.bf16.msra.mxu1 %v9231_v62 }
 0x287   : > { %v3693_v54 = vadd.f32 %v3692_v60, %v3691_v28  ;;  %v10742_v60 = vld [vmem:[#allocation9 + $0xf8] sm:$0xff]  }
 0x288   : > { %8786 = vmatprep.subr.bf16.mxu0 %v10742_v60 }
 0x289   : > { %v3694_v49 = vrot.slane %v3693_v54, 1 }
 0x28b   : > { %v3695_v27 = vadd.f32 %v3694_v49, %v3693_v54 }
 0x28d   : > { %v3696_v61 = vmul.f32 0.00390625, %v3695_v27 }
 0x28f   : > { %v10624_v51 = vsub.f32 %v10480_v44, %v3696_v61  ;;  %v10627_v19 = vsub.f32 %v10490_v9, %v3696_v61  ;;  %v10630_v58 = vsub.f32 %v10496_v33, %v3696_v61  ;;  %v10633_v42 = vsub.f32 %v10503_v8, %v3696_v61 }
 0x290   : > { %v10636_v55 = vsub.f32 %v10510_v46, %v3696_v61  ;;  %v10639_v18 = vsub.f32 %v10520_v48, %v3696_v61  ;;  %v10642_v44 = vsub.f32 %v10526_v57, %v3696_v61  ;;  %v10645_v9 = vsub.f32 %v10533_v24, %v3696_v61 }
 0x291   : > { %v10648_v33 = vsub.f32 %v10540_v39, %v3696_v61  ;;  %v10651_v8 = vsub.f32 %v10548_v23, %v3696_v61  ;;  %v10654_v6 = vsub.f32 %v10554_v40, %v3696_v61  ;;  %v10657_v46 = vsub.f32 %v10561_v7, %v3696_v61 }
 0x292   : > { %v10660_v48 = vsub.f32 %v10567_v59, %v3696_v61  ;;  %v10663_v57 = vsub.f32 %v10575_v20, %v3696_v61  ;;  %v10666_v24 = vsub.f32 %v10581_v41, %v3696_v61  ;;  %v10669_v39 = vsub.f32 %v10585_v16, %v3696_v61  ;;  %v9234_v20 = vld [vmem:[#allocation9] sm:$0xff]  }
 0x293   : > { %v10672_v23 = vsub.f32 %v10590_v45, %v3696_v61  ;;  %v10675_v40 = vsub.f32 %v10598_v34, %v3696_v61  ;;  %v10678_v7 = vsub.f32 %v10602_v37, %v3696_v61  ;;  %v10681_v59 = vsub.f32 %v10605_v53, %v3696_v61  ;;  %8656 = vmatprep.subr.bf16.mxu1 %v9234_v20 }
 0x294   : > { %v10684_v41 = vsub.f32 %v10608_v11, %v3696_v61  ;;  %v10687_v16 = vsub.f32 %v10613_v15, %v3696_v61  ;;  %v10690_v45 = vsub.f32 %v10616_v43, %v3696_v61  ;;  %v10693_v34 = vsub.f32 %v10619_v14, %v3696_v61  ;;  %8657 = vmatpush3.bf16.msra.mxu1 %v9234_v20 }
 0x295   : > { %v10696_v37 = vsub.f32 %v10424_v2, %v3696_v61  ;;  %v10699_v53 = vsub.f32 %v10426_v29, %v3696_v61  ;;  %v10704_v11 = vsub.f32 %v10433_v52, %v3696_v61  ;;  %v10711_v2 = vsub.f32 %v10441_v12, %v3696_v61  ;;  %8738 = vmatprep.subr.bf16.mxu1 %v10701_v25 }
 0x296   : > { %v10715_v29 = vsub.f32 %v10447_v13, %v3696_v61  ;;  %v10720_v3 = vsub.f32 %v10457_v50, %v3696_v61  ;;  %v10725_v14 = vsub.f32 %v10464_v56, %v3696_v61  ;;  %v10730_v13 = vsub.f32 %v10473_v38, %v3696_v61 }
 0x297   : > { %v3729_v1 = vmul.f32 %v10696_v37, %v10696_v37  ;;  %v3730_v15 = vmul.f32 %v10699_v53, %v10699_v53  ;;  %v3731_v21 = vmul.f32 %v10704_v11, %v10704_v11  ;;  %v3732_v43 = vmul.f32 %v10711_v2, %v10711_v2 }
 0x298   : > { %v3733_v12 = vmul.f32 %v10715_v29, %v10715_v29  ;;  %v3734_v0 = vmul.f32 %v10720_v3, %v10720_v3  ;;  %v3735_v50 = vmul.f32 %v10725_v14, %v10725_v14  ;;  %v3736_v22 = vmul.f32 %v10730_v13, %v10730_v13 }
 0x299   : > { %v3761_v52 = vadd.f32 %v3730_v15, %v3729_v1  ;;  %v3737_v30 = vmul.f32 %v10624_v51, %v10624_v51  ;;  %v3738_v38 = vmul.f32 %v10627_v19, %v10627_v19  ;;  %v3739_v35 = vmul.f32 %v10630_v58, %v10630_v58 }
 0x29a   : > { %v3740_v54 = vmul.f32 %v10633_v42, %v10633_v42  ;;  %v3741_v5 = vmul.f32 %v10636_v55, %v10636_v55  ;;  %v3742_v27 = vmul.f32 %v10639_v18, %v10639_v18  ;;  %v3743_v61 = vmul.f32 %v10642_v44, %v10642_v44 }
 0x29b   : > { %v3762_v32 = vadd.f32 %v3761_v52, %v3731_v21  ;;  %v3744_v62 = vmul.f32 %v10645_v9, %v10645_v9  ;;  %v3745_v1 = vmul.f32 %v10648_v33, %v10648_v33  ;;  %v3746_v21 = vmul.f32 %v10651_v8, %v10651_v8 }
 0x29d   : > { %v3763_v4 = vadd.f32 %v3762_v32, %v3732_v43  ;;  %v3747_v43 = vmul.f32 %v10654_v6, %v10654_v6 }
 0x29f   : > { %v3764_v10 = vadd.f32 %v3763_v4, %v3733_v12  ;;  %v3748_v12 = vmul.f32 %v10657_v46, %v10657_v46 }
 0x2a1   : > { %v3765_v26 = vadd.f32 %v3764_v10, %v3734_v0  ;;  %v3749_v0 = vmul.f32 %v10660_v48, %v10660_v48 }
 0x2a3   : > { %v3766_v56 = vadd.f32 %v3765_v26, %v3735_v50  ;;  %v3750_v50 = vmul.f32 %v10663_v57, %v10663_v57 }
 0x2a5   : > { %v3767_v63 = vadd.f32 %v3766_v56, %v3736_v22  ;;  %v3751_v22 = vmul.f32 %v10666_v24, %v10666_v24 }
 0x2a7   : > { %v3768_v28 = vadd.f32 %v3767_v63, %v3737_v30  ;;  %v3752_v30 = vmul.f32 %v10669_v39, %v10669_v39 }
 0x2a9   : > { %v3769_v36 = vadd.f32 %v3768_v28, %v3738_v38  ;;  %v3753_v38 = vmul.f32 %v10672_v23, %v10672_v23 }
 0x2ab   : > { %v3770_v49 = vadd.f32 %v3769_v36, %v3739_v35  ;;  %v3754_v35 = vmul.f32 %v10675_v40, %v10675_v40 }
 0x2ad   : > { %v3771_v17 = vadd.f32 %v3770_v49, %v3740_v54  ;;  %v3755_v54 = vmul.f32 %v10678_v7, %v10678_v7 }
 0x2af   : > { %v3772_v47 = vadd.f32 %v3771_v17, %v3741_v5  ;;  %v3756_v5 = vmul.f32 %v10681_v59, %v10681_v59 }
 0x2b1   : > { %v3773_v31 = vadd.f32 %v3772_v47, %v3742_v27  ;;  %v3757_v27 = vmul.f32 %v10684_v41, %v10684_v41 }
 0x2b3   : > { %v3774_v20 = vadd.f32 %v3773_v31, %v3743_v61  ;;  %v3758_v61 = vmul.f32 %v10687_v16, %v10687_v16 }
 0x2b5   : > { %v3775_v15 = vadd.f32 %v3774_v20, %v3744_v62  ;;  %v3759_v62 = vmul.f32 %v10690_v45, %v10690_v45 }
 0x2b7   : > { %v3776_v52 = vadd.f32 %v3775_v15, %v3745_v1  ;;  %v3760_v1 = vmul.f32 %v10693_v34, %v10693_v34 }
 0x2b9   : > { %v3777_v32 = vadd.f32 %v3776_v52, %v3746_v21 }
 0x2bb   : > { %v3778_v4 = vadd.f32 %v3777_v32, %v3747_v43 }
 0x2bd   : > { %v3779_v10 = vadd.f32 %v3778_v4, %v3748_v12 }
 0x2bf   : > { %v3780_v26 = vadd.f32 %v3779_v10, %v3749_v0 }
 0x2c1   : > { %v3781_v56 = vadd.f32 %v3780_v26, %v3750_v50 }
 0x2c3   : > { %v3782_v63 = vadd.f32 %v3781_v56, %v3751_v22 }
 0x2c5   : > { %v3783_v28 = vadd.f32 %v3782_v63, %v3752_v30 }
 0x2c7   : > { %v3784_v36 = vadd.f32 %v3783_v28, %v3753_v38 }
 0x2c9   : > { %v3785_v49 = vadd.f32 %v3784_v36, %v3754_v35 }
 0x2cb   : > { %v3786_v17 = vadd.f32 %v3785_v49, %v3755_v54 }
 0x2cd   : > { %v3787_v47 = vadd.f32 %v3786_v17, %v3756_v5 }
 0x2cf   : > { %v3788_v31 = vadd.f32 %v3787_v47, %v3757_v27 }
 0x2d1   : > { %v3789_v20 = vadd.f32 %v3788_v31, %v3758_v61 }
 0x2d3   : > { %v3790_v15 = vadd.f32 %v3789_v20, %v3759_v62 }
 0x2d5   : > { %v3791_v21 = vadd.f32 %v3790_v15, %v3760_v1 }
 0x2d7   : > { %v3792_v52 = vrot.slane %v3791_v21, 4 }
 0x2d9   : > { %v3793_v43 = vadd.f32 %v3792_v52, %v3791_v21 }
 0x2db   : > { %v3794_v32 = vrot.slane %v3793_v43, 2 }
 0x2dd   : > { %v3795_v12 = vadd.f32 %v3794_v32, %v3793_v43 }
 0x2df   : > { %v3796_v4 = vrot.slane %v3795_v12, 1 }
 0x2e1   : > { %v3797_v0 = vadd.f32 %v3796_v4, %v3795_v12 }
 0x2e3   : > { %v3798_v10 = vmul.f32 0.00390625, %v3797_v0 }
 0x2e5   : > { %v3799_v50 = vadd.f32 1e-05, %v3798_v10 }
 0x2e7   : > { %9291 = vrsqrt.f32 %v3799_v50 }
 0x2f4   : > { %v9292_v26 = vpop.eup %9291 }
 0x2f5   : > { %v3830_v22 = vmul.f32 %v9292_v26, %v10687_v16  ;;  %v10791_v56 = vmul.f32 %v9292_v26, %v10696_v37  ;;  %v10794_v30 = vmul.f32 %v9292_v26, %v10699_v53  ;;  %v3803_v63 = vmul.f32 %v9292_v26, %v10704_v11 }
 0x2f6   : > { %v3804_v38 = vmul.f32 %v9292_v26, %v10711_v2  ;;  %v10799_v28 = vmul.f32 %v9292_v26, %v10715_v29  ;;  %v10802_v35 = vmul.f32 %v9292_v26, %v10720_v3  ;;  %v10805_v36 = vmul.f32 %v9292_v26, %v10725_v14 }
 0x2f7   : > { %v10807_v16 = vmax.f32 %v3830_v22, 0.0  ;;  %v10810_v37 = vmul.f32 %v9292_v26, %v10730_v13  ;;  %v10813_v53 = vmul.f32 %v9292_v26, %v10624_v51  ;;  %v10816_v11 = vmul.f32 %v9292_v26, %v10627_v19 }
 0x2f8   : > { %v10819_v2 = vmul.f32 %v9292_v26, %v10630_v58  ;;  %v10822_v29 = vmul.f32 %v9292_v26, %v10633_v42  ;;  %v10825_v3 = vmul.f32 %v9292_v26, %v10636_v55  ;;  %v10828_v14 = vmul.f32 %v9292_v26, %v10639_v18 }
 0x2f9   : > { %3900 = vst [vmem:[#allocation2 + $0x1a1] sm:$0xff] %v10807_v16  ;;  %v10832_v51 = vmul.f32 %v9292_v26, %v10642_v44  ;;  %v10835_v19 = vmul.f32 %v9292_v26, %v10645_v9  ;;  %v10838_v58 = vmul.f32 %v9292_v26, %v10648_v33  ;;  %v10841_v42 = vmul.f32 %v9292_v26, %v10651_v8 }
 0x2fa   : > { %3894 = vst [vmem:[#allocation2 + $0x171] sm:$0xff] %v10807_v16  ;;  %v10845_v55 = vmul.f32 %v9292_v26, %v10654_v6  ;;  %v10848_v18 = vmul.f32 %v9292_v26, %v10657_v46  ;;  %v10851_v44 = vmul.f32 %v9292_v26, %v10660_v48  ;;  %v10854_v9 = vmul.f32 %v9292_v26, %v10663_v57 }
 0x2fb   : > { %v10857_v33 = vmul.f32 %v9292_v26, %v10666_v24  ;;  %v10860_v8 = vmul.f32 %v9292_v26, %v10669_v39  ;;  %v10863_v13 = vmul.f32 %v9292_v26, %v10672_v23  ;;  %v10866_v6 = vmul.f32 %v9292_v26, %v10675_v40 }
 0x2fc   : > { %v10869_v46 = vmul.f32 %v9292_v26, %v10678_v7  ;;  %v10872_v48 = vmul.f32 %v9292_v26, %v10681_v59  ;;  %v3829_v57 = vmul.f32 %v9292_v26, %v10684_v41  ;;  %v10876_v24 = vmul.f32 %v9292_v26, %v10690_v45 }
 0x2fd   : > { %v10879_v39 = vmul.f32 %v9292_v26, %v10693_v34  ;;  %v3833_v23 = vmax.f32 %v10791_v56, 0.0  ;;  %v3834_v54 = vmax.f32 %v10794_v30, 0.0  ;;  %v3835_v40 = vmax.f32 %v3803_v63, 0.0 }
 0x2fe   : > { %v3836_v49 = vmax.f32 %v3804_v38, 0.0  ;;  %v3837_v7 = vmax.f32 %v10799_v28, 0.0  ;;  %v3838_v5 = vmax.f32 %v10802_v35, 0.0  ;;  %v3839_v59 = vmax.f32 %v10805_v36, 0.0  ;;  %v9236_v28 = vld [vmem:[#allocation9 + $0xb0] sm:$0xff]  }
 0x2ff   : > { %v3840_v41 = vmax.f32 %v10810_v37, 0.0  ;;  %v3841_v45 = vmax.f32 %v10813_v53, 0.0  ;;  %v3842_v17 = vmax.f32 %v10816_v11, 0.0  ;;  %v3843_v34 = vmax.f32 %v10819_v2, 0.0  ;;  %3865 = vst [vmem:[#allocation2 + $0x19] sm:$0xff] %v3833_v23  ;;  %3866 = vst [vmem:[#allocation2 + $0x21] sm:$0xff] %v3834_v54 }
 0x300   : > { %3867 = vst [vmem:[#allocation2 + $0x31] sm:$0xff] %v3835_v40  ;;  %3897 = vst [vmem:[#allocation2 + $0x1] sm:$0xff] %v3835_v40  ;;  %v3844_v27 = vmax.f32 %v10822_v29, 0.0  ;;  %v3845_v47 = vmax.f32 %v10825_v3, 0.0  ;;  %v3846_v61 = vmax.f32 %v10828_v14, 0.0  ;;  %v3847_v31 = vmax.f32 %v10832_v51, 0.0 }
 0x301   : > { %3868 = vst [vmem:[#allocation2 + $0x39] sm:$0xff] %v3836_v49  ;;  %3869 = vst [vmem:[#allocation2 + $0x49] sm:$0xff] %v3837_v7  ;;  %v3952_v62 = vld [vmem:[#allocation2 + $0x177] sm:$0x1]  ;;  %v3848_v20 = vmax.f32 %v10835_v19, 0.0  ;;  %v3849_v1 = vmax.f32 %v10838_v58, 0.0 }
 0x302   : > { %3870 = vst [vmem:[#allocation2 + $0x51] sm:$0xff] %v3838_v5  ;;  %3871 = vst [vmem:[#allocation2 + $0x61] sm:$0xff] %v3839_v59  ;;  %v3850_v15 = vmax.f32 %v10841_v42, 0.0  ;;  %v3851_v21 = vmax.f32 %v10845_v55, 0.0  ;;  %v3852_v52 = vmax.f32 %v10848_v18, 0.0  ;;  %v3853_v43 = vmax.f32 %v10851_v44, 0.0 }
 0x303   : > { %3898 = vst [vmem:[#allocation2 + $0x9] sm:$0xff] %v3836_v49  ;;  %3872 = vst [vmem:[#allocation2 + $0x69] sm:$0xff] %v3840_v41  ;;  %v3854_v32 = vmax.f32 %v10854_v9, 0.0  ;;  %v3855_v12 = vmax.f32 %v10857_v33, 0.0  ;;  %v3856_v4 = vmax.f32 %v10860_v8, 0.0  ;;  %v3857_v0 = vmax.f32 %v10863_v13, 0.0 }
 0x304   : > { %3873 = vst [vmem:[#allocation2 + $0x79] sm:$0xff] %v3841_v45  ;;  %3874 = vst [vmem:[#allocation2 + $0x81] sm:$0xff] %v3842_v17  ;;  %v3858_v10 = vmax.f32 %v10866_v6, 0.0  ;;  %v3859_v50 = vmax.f32 %v10869_v46, 0.0  ;;  %v3860_v26 = vmax.f32 %v10872_v48, 0.0  ;;  %v10941_v22 = vmax.f32 %v3829_v57, 0.0 }
 0x305   : > { %3875 = vst [vmem:[#allocation2 + $0x91] sm:$0xff] %v3843_v34  ;;  %3970 = vst [vmem:[#allocation2 + $0x179] sm:$0x1] %v3952_v62  ;;  %v3863_v63 = vmax.f32 %v10876_v24, 0.0  ;;  %v3864_v38 = vmax.f32 %v10879_v39, 0.0  ;;  %v4310_v8 = vpack.c.bf16 %v3836_v49, %v3835_v40  ;;  %v4311_v13 = vpack.c.bf16 %v3834_v54, %v3833_v23  ;;  %v9240_v48 = vld [vmem:[#allocation9 + $0xf0] sm:$0xff]  }
 0x306   : > { %3876 = vst [vmem:[#allocation2 + $0x99] sm:$0xff] %v3844_v27  ;;  %3877 = vst [vmem:[#allocation2 + $0xa9] sm:$0xff] %v3845_v47  ;;  %v3954_v33 = vld [vmem:[#allocation2 + $0x1a7] sm:$0x1]  ;;  %v3902_v46 = vld [vmem:[#allocation2 + $0x1a] sm:$0x1]  ;;  %v10957_v24 = vpack.c.bf16 %v3856_v4, %v3855_v12  ;;  %v10959_v39 = vpack.c.bf16 %v3858_v10, %v3857_v0  ;;  %v10961_v23 = vpack.c.bf16 %v3860_v26, %v3859_v50 }
 0x307   : > { %3878 = vst [vmem:[#allocation2 + $0xb1] sm:$0xff] %v3846_v61  ;;  %3879 = vst [vmem:[#allocation2 + $0xc1] sm:$0xff] %v3847_v31  ;;  %v3901_v6 = vld [vmem:[#allocation2 + $0x2] sm:$0x1]  ;;  %8706 = vmatprep.mubr.bf16.mxu0 %v4310_v8  ;;  %v3903_v57 = vld [vmem:[#allocation2 + $0x32] sm:$0x1]  ;;  %v4325_v54 = vpack.c.bf16 %v10807_v16, %v10941_v22  ;;  %v4321_v18 = vpack.c.bf16 %v3854_v32, %v3853_v43 }
 0x308   : > { %3880 = vst [vmem:[#allocation2 + $0xc9] sm:$0xff] %v3848_v20  ;;  %3881 = vst [vmem:[#allocation2 + $0xd9] sm:$0xff] %v3849_v1  ;;  %8707 = vmatmul.mubr.bf16.vlgmr.msra.gmra.mxu0 %v4311_v13  ;;  %v3904_v56 = vld [vmem:[#allocation2 + $0x4a] sm:$0x1]  ;;  %v9249_v14 = vld [vmem:[#allocation9 + $0xc0] sm:$0xff]  }
 0x309   : > { %3882 = vst [vmem:[#allocation2 + $0xe1] sm:$0xff] %v3850_v15  ;;  %3883 = vst [vmem:[#allocation2 + $0xf1] sm:$0xff] %v3851_v21  ;;  %v3905_v30 = vld [vmem:[#allocation2 + $0x62] sm:$0x1]  ;;  %8710 = vmatprep.mubr.bf16.mxu0 %v4310_v8  ;;  %8787 = vmatpush3.bf16.msra.mxu0 %v10742_v60  ;;  %v4313_v60 = vpack.c.bf16 %v3838_v5, %v3837_v7  ;;  %v9245_v37 = vld [vmem:[#allocation9 + $0xd8] sm:$0xff]  }
 0x30a   : > { %3884 = vst [vmem:[#allocation2 + $0xf9] sm:$0xff] %v3852_v52  ;;  %3885 = vst [vmem:[#allocation2 + $0x109] sm:$0xff] %v3853_v43  ;;  %8788 = vmatprep.subr.bf16.mxu0 %v9240_v48  ;;  %v3937_v5 = vld [vmem:[#allocation2 + $0xf] sm:$0x1]  ;;  %v9250_v58 = vld [vmem:[#allocation9 + $0x80] sm:$0xff]  }
 0x30b   : > { %3886 = vst [vmem:[#allocation2 + $0x111] sm:$0xff] %v3854_v32  ;;  %3887 = vst [vmem:[#allocation2 + $0x121] sm:$0xff] %v3855_v12  ;;  %v3906_v40 = vld [vmem:[#allocation2 + $0x7a] sm:$0x1]  ;;  %v3982_v11 = vld [vmem:[#allocation2 + $0x68] sm:$0xff] }
 0x30c   : > { %3888 = vst [vmem:[#allocation2 + $0x129] sm:$0xff] %v3856_v4  ;;  %3889 = vst [vmem:[#allocation2 + $0x139] sm:$0xff] %v3857_v0  ;;  %v3907_v49 = vld [vmem:[#allocation2 + $0x92] sm:$0x1]  ;;  %v9242_v12 = vld [vmem:[#allocation9 + $0xe8] sm:$0xff]  }
 0x30d   : > { %3890 = vst [vmem:[#allocation2 + $0x141] sm:$0xff] %v3858_v10  ;;  %3891 = vst [vmem:[#allocation2 + $0x151] sm:$0xff] %v3859_v50  ;;  %v3908_v62 = vld [vmem:[#allocation2 + $0xaa] sm:$0x1]  ;;  %8789 = vmatpush3.bf16.msra.mxu0 %v9240_v48  ;;  %v4314_v48 = vpack.c.bf16 %v3840_v41, %v3839_v59  ;;  %v9237_v59 = vld [vmem:[#allocation9 + $0xa8] sm:$0xff]  }
 0x30e   : > { %3972 = vst [vmem:[#allocation2 + $0x1a9] sm:$0x1] %v3954_v33  ;;  %3899 = vst [vmem:[#allocation2 + $0x199] sm:$0xff] %v10941_v22  ;;  %v3909_v4 = vld [vmem:[#allocation2 + $0xc2] sm:$0x1]  ;;  %v3974_v50 = vld [vmem:[#allocation2 + $0x8] sm:$0xff]  ;;  %8790 = vmatprep.subr.bf16.mxu0 %v9242_v12 }
 0x30f   : > { %3892 = vst [vmem:[#allocation2 + $0x159] sm:$0xff] %v3860_v26  ;;  %3893 = vst [vmem:[#allocation2 + $0x169] sm:$0xff] %v10941_v22  ;;  %v3910_v0 = vld [vmem:[#allocation2 + $0xda] sm:$0x1]  ;;  %v3976_v26 = vld [vmem:[#allocation2 + $0x20] sm:$0xff] }
 0x310   : > { %3895 = vst [vmem:[#allocation2 + $0x181] sm:$0xff] %v3863_v63  ;;  %3896 = vst [vmem:[#allocation2 + $0x189] sm:$0xff] %v3864_v38  ;;  %v3911_v10 = vld [vmem:[#allocation2 + $0xf2] sm:$0x1]  ;;  %8711 = vmatmul.mubr.bf16.gmra.mxu0 %v4313_v60  ;;  %v3943_v2 = vld [vmem:[#allocation2 + $0x9f] sm:$0x1] }
 0x311   : > { %3919 = vst [vmem:[#allocation2] sm:$0x1] %v3901_v6  ;;  %3920 = vst [vmem:[#allocation2 + $0x18] sm:$0x1] %v3902_v46  ;;  %v3912_v63 = vld [vmem:[#allocation2 + $0x10a] sm:$0x1]  ;;  %8714 = vmatprep.mubr.bf16.mxu0 %v4314_v48  ;;  %8791 = vmatpush3.bf16.msra.mxu0 %v9242_v12 }
 0x312   : > { %3921 = vst [vmem:[#allocation2 + $0x30] sm:$0x1] %v3903_v57  ;;  %3922 = vst [vmem:[#allocation2 + $0x48] sm:$0x1] %v3904_v56  ;;  %v3913_v8 = vld [vmem:[#allocation2 + $0x122] sm:$0x1] }
 0x313   : > { %3923 = vst [vmem:[#allocation2 + $0x60] sm:$0x1] %v3905_v30  ;;  %3924 = vst [vmem:[#allocation2 + $0x78] sm:$0x1] %v3906_v40  ;;  %v3914_v57 = vld [vmem:[#allocation2 + $0x13a] sm:$0x1] }
 0x314   : > { %3925 = vst [vmem:[#allocation2 + $0x90] sm:$0x1] %v3907_v49  ;;  %3926 = vst [vmem:[#allocation2 + $0xa8] sm:$0x1] %v3908_v62  ;;  %v3978_v56 = vld [vmem:[#allocation2 + $0x38] sm:$0xff]  ;;  %v9243_v30 = vld [vmem:[#allocation9 + $0xe0] sm:$0xff]   ;;  %v4315_v49 = vpack.c.bf16 %v3842_v17, %v3841_v45 }
 0x315   : > { %3927 = vst [vmem:[#allocation2 + $0xc0] sm:$0x1] %v3909_v4  ;;  %3928 = vst [vmem:[#allocation2 + $0xd8] sm:$0x1] %v3910_v0  ;;  %v3915_v7 = vld [vmem:[#allocation2 + $0x152] sm:$0x1]  ;;  %8792 = vmatprep.subr.bf16.mxu0 %v9243_v30  ;;  %v4316_v0 = vpack.c.bf16 %v3844_v27, %v3843_v34 }
 0x316   : > { %3929 = vst [vmem:[#allocation2 + $0xf0] sm:$0x1] %v3911_v10  ;;  %3930 = vst [vmem:[#allocation2 + $0x108] sm:$0x1] %v3912_v63  ;;  %v3916_v36 = vld [vmem:[#allocation2 + $0x16a] sm:$0x1]  ;;  %8793 = vmatpush3.bf16.msra.mxu0 %v9243_v30 }
 0x317   : > { %3931 = vst [vmem:[#allocation2 + $0x120] sm:$0x1] %v3913_v8  ;;  %3932 = vst [vmem:[#allocation2 + $0x138] sm:$0x1] %v3914_v57  ;;  %v3938_v40 = vld [vmem:[#allocation2 + $0x27] sm:$0x1]  ;;  %8794 = vmatprep.subr.bf16.mxu0 %v9245_v37  ;;  %v4317_v8 = vpack.c.bf16 %v3846_v61, %v3845_v47  ;;  %v4318_v57 = vpack.c.bf16 %v3848_v20, %v3847_v31 }
 0x318   : > { %v3973_v38 = vld [vmem:[#allocation2] sm:$0xff]  ;;  %v3975_v33 = vld [vmem:[#allocation2 + $0x18] sm:$0xff]  ;;  %3933 = vst [vmem:[#allocation2 + $0x150] sm:$0x1] %v3915_v7  ;;  %3934 = vst [vmem:[#allocation2 + $0x168] sm:$0x1] %v3916_v36  ;;  %8715 = vmatmul.mubr.bf16.gmra.mxu0 %v4315_v49  ;;  %v4319_v36 = vpack.c.bf16 %v3850_v15, %v3849_v1 }
 0x319   : > { %v4005_v13 = vpack.c.bf16 %v3974_v50, %v3973_v38  ;;  %v10970_v6 = vpack.c.bf16 %v3976_v26, %v3975_v33  ;;  %v3977_v46 = vld [vmem:[#allocation2 + $0x30] sm:$0xff]  ;;  %3955 = vst [vmem:[#allocation2 + $0x11] sm:$0x1] %v3937_v5  ;;  %v3979_v41 = vld [vmem:[#allocation2 + $0x48] sm:$0xff]  ;;  %3956 = vst [vmem:[#allocation2 + $0x29] sm:$0x1] %v3938_v40  ;;  %8718 = vmatprep.mubr.bf16.mxu0 %v4316_v0 }
 0x31a   : > { %v10976_v35 = vpack.c.bf16 %v3978_v56, %v3977_v46  ;;  %v3981_v62 = vld [vmem:[#allocation2 + $0x60] sm:$0xff]  ;;  %v9238_v12 = vld [vmem:[#allocation9 + $0xa0] sm:$0xff]   ;;  %v3939_v4 = vld [vmem:[#allocation2 + $0x3f] sm:$0x1]  ;;  %8795 = vmatpush3.bf16.msra.mxu0 %v9245_v37  ;;  %3961 = vst [vmem:[#allocation2 + $0xa1] sm:$0x1] %v3943_v2 }
 0x31b   : > { %8658 = vmatprep.mubr.bf16.mxu1 %v4005_v13  ;;  %v9246_v10 = vld [vmem:[#allocation9 + $0xd0] sm:$0xff]   ;;  %3957 = vst [vmem:[#allocation2 + $0x41] sm:$0x1] %v3939_v4  ;;  %v3940_v50 = vld [vmem:[#allocation2 + $0x57] sm:$0x1]  ;;  %v10991_v26 = vpack.c.bf16 %v3982_v11, %v3981_v62  ;;  %v9248_v34 = vld [vmem:[#allocation9 + $0xc8] sm:$0xff]  }
 0x31c   : > { %8659 = vmatmul.mubr.bf16.vlgmr.msra.gmra.mxu1 %v10970_v6  ;;  %3958 = vst [vmem:[#allocation2 + $0x59] sm:$0x1] %v3940_v50  ;;  %v3941_v45 = vld [vmem:[#allocation2 + $0x6f] sm:$0x1]  ;;  %v3942_v17 = vld [vmem:[#allocation2 + $0x87] sm:$0x1]  ;;  %8796 = vmatprep.subr.bf16.mxu0 %v9246_v10 }
 0x31d   : > { %8662 = vmatprep.mubr.bf16.mxu1 %v10976_v35  ;;  %8739 = vmatpush3.bf16.msra.mxu1 %v10701_v25  ;;  %v3980_v25 = vld [vmem:[#allocation2 + $0x50] sm:$0xff]  ;;  %3959 = vst [vmem:[#allocation2 + $0x71] sm:$0x1] %v3941_v45  ;;  %3960 = vst [vmem:[#allocation2 + $0x89] sm:$0x1] %v3942_v17  ;;  %v9241_v63 = vld [vmem:[#allocation9 + $0x98] sm:$0xff]  }
 0x31e   : > { %8740 = vmatprep.subr.bf16.mxu1 %v9236_v28  ;;  %v10989_v53 = vpack.c.bf16 %v3980_v25, %v3979_v41  ;;  %v3944_v29 = vld [vmem:[#allocation2 + $0xb7] sm:$0x1]  ;;  %v3945_v27 = vld [vmem:[#allocation2 + $0xcf] sm:$0x1]  ;;  %v3946_v38 = vld [vmem:[#allocation2 + $0xe7] sm:$0x1]  ;;  %8797 = vmatpush3.bf16.msra.mxu0 %v9246_v10 }
 0x31f   : > { %3962 = vst [vmem:[#allocation2 + $0xb9] sm:$0x1] %v3944_v29  ;;  %3963 = vst [vmem:[#allocation2 + $0xd1] sm:$0x1] %v3945_v27  ;;  %v3983_v33 = vld [vmem:[#allocation2 + $0x78] sm:$0xff]  ;;  %v3985_v13 = vld [vmem:[#allocation2 + $0x90] sm:$0xff]  ;;  %8798 = vmatprep.subr.bf16.mxu0 %v9248_v34 }
 0x320   : > { %3964 = vst [vmem:[#allocation2 + $0xe9] sm:$0x1] %v3946_v38  ;;  %v3947_v60 = vld [vmem:[#allocation2 + $0xff] sm:$0x1]  ;;  %v3948_v46 = vld [vmem:[#allocation2 + $0x117] sm:$0x1]  ;;  %8719 = vmatmul.mubr.bf16.gmra.mxu0 %v4317_v8 }
 0x321   : > { %8741 = vmatpush3.bf16.msra.mxu1 %v9236_v28  ;;  %3965 = vst [vmem:[#allocation2 + $0x101] sm:$0x1] %v3947_v60  ;;  %v3984_v48 = vld [vmem:[#allocation2 + $0x80] sm:$0xff]  ;;  %3966 = vst [vmem:[#allocation2 + $0x119] sm:$0x1] %v3948_v46  ;;  %v3986_v3 = vld [vmem:[#allocation2 + $0x98] sm:$0xff]  ;;  %8722 = vmatprep.mubr.bf16.mxu0 %v4318_v57 }
 0x322   : > { %8742 = vmatprep.subr.bf16.mxu1 %v9237_v59  ;;  %v9244_v56 = vld [vmem:[#allocation9 + $0x90] sm:$0xff]   ;;  %v3949_v28 = vld [vmem:[#allocation2 + $0x12f] sm:$0x1]  ;;  %v11003_v30 = vpack.c.bf16 %v3984_v48, %v3983_v33  ;;  %v11005_v61 = vpack.c.bf16 %v3986_v3, %v3985_v13  ;;  %8799 = vmatpush3.bf16.msra.mxu0 %v9248_v34  ;;  %v3951_v19 = vld [vmem:[#allocation2 + $0x15f] sm:$0x1] }
 0x323   : > { %3967 = vst [vmem:[#allocation2 + $0x131] sm:$0x1] %v3949_v28  ;;  %v3950_v47 = vld [vmem:[#allocation2 + $0x147] sm:$0x1]  ;;  %v3917_v51 = vld [vmem:[#allocation2 + $0x182] sm:$0x1]  ;;  %8800 = vmatprep.subr.bf16.mxu0 %v9249_v14 }
 0x324   : > { %8663 = vmatmul.mubr.bf16.gmra.mxu1 %v10989_v53  ;;  %3968 = vst [vmem:[#allocation2 + $0x149] sm:$0x1] %v3950_v47  ;;  %3935 = vst [vmem:[#allocation2 + $0x180] sm:$0x1] %v3917_v51  ;;  %v11009_v31 = vld [vmem:[#allocation9 + $0x178] sm:$0xff]   ;;  %v9247_v20 = vld [vmem:[#allocation9 + $0x88] sm:$0xff]  }
 0x325   : > { %8666 = vmatprep.mubr.bf16.mxu1 %v10991_v26  ;;  %8743 = vmatpush3.bf16.msra.mxu1 %v9237_v59  ;;  %3969 = vst [vmem:[#allocation2 + $0x161] sm:$0x1] %v3951_v19  ;;  %v3987_v7 = vld [vmem:[#allocation2 + $0xa8] sm:$0xff]  ;;  %v3989_v37 = vld [vmem:[#allocation2 + $0xc0] sm:$0xff]  ;;  %v3988_v5 = vld [vmem:[#allocation2 + $0xb0] sm:$0xff]  ;;  %v4320_v59 = vpack.c.bf16 %v3852_v52, %v3851_v21 }
 0x326   : > { %8744 = vmatprep.subr.bf16.mxu1 %v9238_v12  ;;  %8801 = vmatpush3.bf16.msra.mxu0 %v9249_v14  ;;  %v11020_v41 = vpack.c.bf16 %v3988_v5, %v3987_v7  ;;  %v3990_v40 = vld [vmem:[#allocation2 + $0xc8] sm:$0xff]  ;;  %v3991_v55 = vld [vmem:[#allocation2 + $0xd8] sm:$0xff]  ;;  %v3993_v1 = vld [vmem:[#allocation2 + $0xf0] sm:$0xff] }
 0x327   : > { %8882 = vmatprep.subr.bf16.mxu0 %v11009_v31  ;;  %v11022_v49 = vpack.c.bf16 %v3990_v40, %v3989_v37  ;;  %v11026_v42 = vld [vmem:[#allocation9 + $0x138] sm:$0xff]   ;;  %v3992_v15 = vld [vmem:[#allocation2 + $0xe0] sm:$0xff]  ;;  %v3994_v52 = vld [vmem:[#allocation2 + $0xf8] sm:$0xff] }
 0x328   : > { %8723 = vmatmul.mubr.bf16.gmra.mxu0 %v4319_v36  ;;  %v11032_v21 = vpack.c.bf16 %v3992_v15, %v3991_v55  ;;  %v11035_v62 = vpack.c.bf16 %v3994_v52, %v3993_v1  ;;  %v3953_v44 = vld [vmem:[#allocation2 + $0x18f] sm:$0x1]  ;;  %v3997_v43 = vld [vmem:[#allocation2 + $0x120] sm:$0xff]  ;;  %v3996_v32 = vld [vmem:[#allocation2 + $0x110] sm:$0xff] }
 0x329   : > { %8745 = vmatpush3.bf16.msra.mxu1 %v9238_v12  ;;  %8726 = vmatprep.mubr.bf16.mxu0 %v4320_v59  ;;  %3971 = vst [vmem:[#allocation2 + $0x191] sm:$0x1] %v3953_v44  ;;  %v3995_v9 = vld [vmem:[#allocation2 + $0x108] sm:$0xff]  ;;  %v4001_v0 = vld [vmem:[#allocation2 + $0x150] sm:$0xff]  ;;  %v4000_v10 = vld [vmem:[#allocation2 + $0x140] sm:$0xff] }
 0x32a   : > { %8746 = vmatprep.subr.bf16.mxu1 %v9241_v63  ;;  %v11040_v12 = vpack.c.bf16 %v3996_v32, %v3995_v9  ;;  %v3998_v4 = vld [vmem:[#allocation2 + $0x128] sm:$0xff]  ;;  %v4002_v11 = vld [vmem:[#allocation2 + $0x158] sm:$0xff]  ;;  %v9256_v2 = vld [vmem:[#allocation9 + $0x170] sm:$0xff]  }
 0x32b   : > { %v11043_v25 = vpack.c.bf16 %v3998_v4, %v3997_v43  ;;  %v11053_v45 = vpack.c.bf16 %v4002_v11, %v4001_v0  ;;  %v4649_v17 = vld [vmem:[#allocation2 + $0xa] sm:$0xff]  ;;  %v4648_v16 = vld [vmem:[#allocation2 + $0x2] sm:$0xff]  ;;  %v4653_v27 = vld [vmem:[#allocation2 + $0x3a] sm:$0xff] }
 0x32c   : > { %8667 = vmatmul.mubr.bf16.gmra.mxu1 %v11003_v30  ;;  %v4004_v29 = vld [vmem:[#allocation2 + $0x170] sm:$0xff]  ;;  %v4680_v22 = vpack.c.bf16 %v4649_v17, %v4648_v16  ;;  %v4650_v38 = vld [vmem:[#allocation2 + $0x1a] sm:$0xff]  ;;  %v9261_v8 = vld [vmem:[#allocation9 + $0x158] sm:$0xff]  }
 0x32d   : > { %8670 = vmatprep.mubr.bf16.mxu1 %v11005_v61  ;;  %8747 = vmatpush3.bf16.msra.mxu1 %v9241_v63  ;;  %v9259_v63 = vld [vmem:[#allocation9 + $0x160] sm:$0xff]   ;;  %v9252_v60 = vld [vmem:[#allocation9 + $0x130] sm:$0xff]   ;;  %v9253_v13 = vld [vmem:[#allocation9 + $0x128] sm:$0xff]  }
 0x32e   : > { %8748 = vmatprep.subr.bf16.mxu1 %v9244_v56  ;;  %v4655_v46 = vld [vmem:[#allocation2 + $0x52] sm:$0xff]  ;;  %v9262_v48 = vld [vmem:[#allocation9 + $0x150] sm:$0xff]   ;;  %v4654_v57 = vld [vmem:[#allocation2 + $0x4a] sm:$0xff] }
 0x32f   : > { %v4656_v28 = vld [vmem:[#allocation2 + $0x62] sm:$0xff]  ;;  %v9264_v14 = vld [vmem:[#allocation9 + $0x148] sm:$0xff]   ;;  %v9265_v19 = vld [vmem:[#allocation9 + $0x140] sm:$0xff]  }
 0x330   : > { %8727 = vmatmul.mubr.bf16.gmra.mxu0 %v4321_v18  ;;  %v9257_v47 = vld [vmem:[#allocation9 + $0x118] sm:$0xff]   ;;  %v4660_v7 = vld [vmem:[#allocation2 + $0x92] sm:$0xff]  ;;  %v9260_v36 = vld [vmem:[#allocation9 + $0x110] sm:$0xff]  }
 0x331   : > { %8749 = vmatpush3.bf16.msra.mxu1 %v9244_v56  ;;  %8730 = vmatprep.mubr.bf16.mxu0 %v10957_v24  ;;  %v3999_v24 = vld [vmem:[#allocation2 + $0x138] sm:$0xff]  ;;  %v11073_v56 = vpack.c.bf16 %v4655_v46, %v4654_v57  ;;  %v4659_v51 = vld [vmem:[#allocation2 + $0x82] sm:$0xff]  ;;  %v4665_v40 = vld [vmem:[#allocation2 + $0xca] sm:$0xff] }
 0x332   : > { %8750 = vmatprep.subr.bf16.mxu1 %v9247_v20  ;;  %v11048_v50 = vpack.c.bf16 %v4000_v10, %v3999_v24  ;;  %v11088_v5 = vld [vmem:[#allocation9 + $0x1f8] sm:$0xff]   ;;  %v9263_v59 = vld [vmem:[#allocation9 + $0x108] sm:$0xff]   ;;  %v9266_v55 = vld [vmem:[#allocation9 + $0x100] sm:$0xff]  }
 0x333   : > { %v11100_v1 = vld [vmem:[#allocation9 + $0x1b8] sm:$0xff]   ;;  %v4666_v52 = vld [vmem:[#allocation2 + $0xda] sm:$0xff]  ;;  %v4668_v44 = vld [vmem:[#allocation2 + $0xf2] sm:$0xff] }
 0x334   : > { %8671 = vmatmul.mubr.bf16.gmra.mxu1 %v11020_v41  ;;  %v4667_v15 = vld [vmem:[#allocation2 + $0xe2] sm:$0xff]  ;;  %v4671_v43 = vld [vmem:[#allocation2 + $0x112] sm:$0xff]  ;;  %v4673_v32 = vld [vmem:[#allocation2 + $0x12a] sm:$0xff] }
 0x335   : > { %8674 = vmatprep.mubr.bf16.mxu1 %v11022_v49  ;;  %8751 = vmatpush3.bf16.msra.mxu1 %v9247_v20  ;;  %v4672_v24 = vld [vmem:[#allocation2 + $0x122] sm:$0xff] }
 0x336   : > { %8752 = vmatprep.subr.bf16.mxu1 %v9250_v58  ;;  %v5048_v0 = vld [vmem:[#allocation2 + $0x180] sm:$0xff] }
 0x337   : > { %v4675_v10 = vld [vmem:[#allocation2 + $0x142] sm:$0xff] }
 0x338   : > { %8731 = vmatmul.mubr.bf16.gmra.mxu0 %v10959_v39  ;;  %v3918_v39 = vld [vmem:[#allocation2 + $0x19a] sm:$0x1]  ;;  %v5389_v16 = vld [vmem:[#allocation2 + $0x21] sm:$0xff] }
 0x339   : > { %8753 = vmatpush3.bf16.msra.mxu1 %v9250_v58  ;;  %8734 = vmatprep.mubr.bf16.mxu0 %v10961_v23  ;;  %3936 = vst [vmem:[#allocation2 + $0x198] sm:$0x1] %v3918_v39  ;;  %v4003_v23 = vld [vmem:[#allocation2 + $0x168] sm:$0xff]  ;;  %v4677_v39 = vld [vmem:[#allocation2 + $0x15a] sm:$0xff] }
 0x33a   : > { %8834 = vmatprep.subr.bf16.mxu1 %v11026_v42  ;;  %v11058_v34 = vpack.c.bf16 %v4004_v29, %v4003_v23  ;;  %v4662_v58 = vld [vmem:[#allocation2 + $0xaa] sm:$0xff]  ;;  %v4674_v23 = vld [vmem:[#allocation2 + $0x13a] sm:$0xff]  ;;  %v4679_v29 = vld [vmem:[#allocation2 + $0x172] sm:$0xff] }
 0x33b   : > { %v11121_v17 = vpack.c.bf16 %v4675_v10, %v4674_v23  ;;  %v5394_v57 = vld [vmem:[#allocation2 + $0x61] sm:$0xff]  ;;  %v5415_v23 = vld [vmem:[#allocation2 + $0x159] sm:$0xff] }
 0x33c   : > { %8675 = vmatmul.mubr.bf16.gmra.mxu1 %v11032_v21 }
 0x33d   : > { %8678 = vmatprep.mubr.bf16.mxu1 %v11035_v62 }
 0x340   : > { %8735 = vmatmul.mubr.bf16.gmra.mxu0 %v4325_v54  ;;  %v9258_v54 = vld [vmem:[#allocation9 + $0x168] sm:$0xff]  }
 0x341   : > { %8802 = vmatprep.mubr.bf16.mxu0 %v10970_v6  ;;  %v4651_v6 = vld [vmem:[#allocation2 + $0x22] sm:$0xff] }
 0x342   : > { %v11064_v33 = vpack.c.bf16 %v4651_v6, %v4650_v38  ;;  %v5390_v38 = vld [vmem:[#allocation2 + $0x31] sm:$0xff] }
 0x344   : > { %8679 = vmatmul.mubr.bf16.gmra.mxu1 %v11040_v12 }
 0x345   : > { %8682 = vmatprep.mubr.bf16.mxu1 %v11043_v25 }
 0x348   : > { %8803 = vmatmul.mubr.bf16.vlgmr.msra.gmra.mxu0 %v10976_v35  ;;  %v4652_v35 = vld [vmem:[#allocation2 + $0x32] sm:$0xff] }
 0x349   : > { %8806 = vmatprep.mubr.bf16.mxu0 %v10989_v53  ;;  %8883 = vmatpush3.bf16.msra.mxu0 %v11009_v31  ;;  %v11067_v53 = vpack.c.bf16 %v4653_v27, %v4652_v35  ;;  %v4658_v31 = vld [vmem:[#allocation2 + $0x7a] sm:$0xff]  ;;  %v5392_v35 = vld [vmem:[#allocation2 + $0x49] sm:$0xff] }
 0x34a   : > { %8884 = vmatprep.subr.bf16.mxu0 %v9256_v2  ;;  %v11081_v20 = vpack.c.bf16 %v4659_v51, %v4658_v31  ;;  %v5398_v31 = vld [vmem:[#allocation2 + $0x91] sm:$0xff] }
 0x34c   : > { %8683 = vmatmul.mubr.bf16.gmra.mxu1 %v11048_v50 }
 0x34d   : > { %8686 = vmatprep.mubr.bf16.mxu1 %v11053_v45  ;;  %8885 = vmatpush3.bf16.msra.mxu0 %v9256_v2 }
 0x34e   : > { %8886 = vmatprep.subr.bf16.mxu0 %v9258_v54 }
 0x350   : > { %8807 = vmatmul.mubr.bf16.gmra.mxu0 %v10991_v26  ;;  %v4657_v26 = vld [vmem:[#allocation2 + $0x6a] sm:$0xff] }
 0x351   : > { %8810 = vmatprep.mubr.bf16.mxu0 %v11003_v30  ;;  %8887 = vmatpush3.bf16.msra.mxu0 %v9258_v54  ;;  %v9254_v30 = vld [vmem:[#allocation9 + $0x120] sm:$0xff]   ;;  %v11076_v3 = vpack.c.bf16 %v4657_v26, %v4656_v28  ;;  %v9277_v26 = vld [vmem:[#allocation9 + $0x1d8] sm:$0xff]   ;;  %v5396_v28 = vld [vmem:[#allocation2 + $0x79] sm:$0xff] }
 0x352   : > { %8888 = vmatprep.subr.bf16.mxu0 %v9259_v63  ;;  %v4678_v54 = vld [vmem:[#allocation2 + $0x16a] sm:$0xff] }
 0x353   : > { %v11129_v6 = vpack.c.bf16 %v4679_v29, %v4678_v54  ;;  %v5416_v29 = vld [vmem:[#allocation2 + $0x169] sm:$0xff] }
 0x354   : > { %8687 = vmatmul.mubr.bf16.gmra.mxu1 %v11058_v34  ;;  %v5419_v54 = vld [vmem:[#allocation2 + $0x189] sm:$0xff] }
 0x355   : > { %8754 = vmatprep.mubr.bf16.mxu1 %v4680_v22  ;;  %8889 = vmatpush3.bf16.msra.mxu0 %v9259_v63  ;;  %v9272_v22 = vld [vmem:[#allocation9 + $0x1f0] sm:$0xff]   ;;  %v9274_v63 = vld [vmem:[#allocation9 + $0x1e8] sm:$0xff]  }
 0x356   : > { %8890 = vmatprep.subr.bf16.mxu0 %v9261_v8 }
 0x358   : > { %8811 = vmatmul.mubr.bf16.gmra.mxu0 %v11005_v61  ;;  %v4661_v61 = vld [vmem:[#allocation2 + $0x9a] sm:$0xff] }
 0x359   : > { %8814 = vmatprep.mubr.bf16.mxu0 %v11020_v41  ;;  %8891 = vmatpush3.bf16.msra.mxu0 %v9261_v8  ;;  %v11084_v37 = vpack.c.bf16 %v4661_v61, %v4660_v7  ;;  %v4663_v41 = vld [vmem:[#allocation2 + $0xb2] sm:$0xff]  ;;  %v5400_v7 = vld [vmem:[#allocation2 + $0xa9] sm:$0xff] }
 0x35a   : > { %8892 = vmatprep.subr.bf16.mxu0 %v9262_v48  ;;  %v9275_v8 = vld [vmem:[#allocation9 + $0x1e0] sm:$0xff]   ;;  %v9280_v61 = vld [vmem:[#allocation9 + $0x1c8] sm:$0xff]  }
 0x35c   : > { %8755 = vmatmul.mubr.bf16.vlgmr.msra.gmra.mxu1 %v11064_v33 }
 0x35d   : > { %8758 = vmatprep.mubr.bf16.mxu1 %v11067_v53  ;;  %8835 = vmatpush3.bf16.msra.mxu1 %v11026_v42  ;;  %v4664_v42 = vld [vmem:[#allocation2 + $0xc2] sm:$0xff] }
 0x35e   : > { %8836 = vmatprep.subr.bf16.mxu1 %v9252_v60  ;;  %8893 = vmatpush3.bf16.msra.mxu0 %v9262_v48  ;;  %v11095_v18 = vpack.c.bf16 %v4665_v40, %v4664_v42  ;;  %v9269_v48 = vld [vmem:[#allocation9 + $0x1a8] sm:$0xff]  }
 0x35f   : > { %8894 = vmatprep.subr.bf16.mxu0 %v9264_v14  ;;  %v9279_v40 = vld [vmem:[#allocation9 + $0x188] sm:$0xff]  }
 0x360   : > { %8815 = vmatmul.mubr.bf16.gmra.mxu0 %v11022_v49  ;;  %v11092_v49 = vpack.c.bf16 %v4663_v41, %v4662_v58  ;;  %v5402_v58 = vld [vmem:[#allocation2 + $0xc1] sm:$0xff]  ;;  %v5404_v42 = vld [vmem:[#allocation2 + $0xd9] sm:$0xff] }
 0x361   : > { %8837 = vmatpush3.bf16.msra.mxu1 %v9252_v60  ;;  %8818 = vmatprep.mubr.bf16.mxu0 %v11032_v21  ;;  %v4669_v21 = vld [vmem:[#allocation2 + $0xfa] sm:$0xff]  ;;  %v5393_v60 = vld [vmem:[#allocation2 + $0x51] sm:$0xff] }
 0x362   : > { %8838 = vmatprep.subr.bf16.mxu1 %v9253_v13  ;;  %8895 = vmatpush3.bf16.msra.mxu0 %v9264_v14  ;;  %v11106_v9 = vpack.c.bf16 %v4669_v21, %v4668_v44  ;;  %v11138_v46 = vpack.c.bf16 %v5393_v60, %v5392_v35  ;;  %v11168_v21 = vld [vmem:[#allocation9 + $0x238] sm:$0xff]  }
 0x363   : > { %8896 = vmatprep.subr.bf16.mxu0 %v9265_v19  ;;  %v5408_v44 = vld [vmem:[#allocation2 + $0x109] sm:$0xff] }
 0x364   : > { %8759 = vmatmul.mubr.bf16.gmra.mxu1 %v11073_v56 }
 0x365   : > { %8762 = vmatprep.mubr.bf16.mxu1 %v11076_v3  ;;  %8839 = vmatpush3.bf16.msra.mxu1 %v9253_v13 }
 0x366   : > { %8840 = vmatprep.subr.bf16.mxu1 %v9254_v30  ;;  %8897 = vmatpush3.bf16.msra.mxu0 %v9265_v19  ;;  %v9273_v19 = vld [vmem:[#allocation9 + $0x198] sm:$0xff]  }
 0x367   : > { %8978 = vmatprep.subr.bf16.mxu0 %v11088_v5 }
 0x368   : > { %8819 = vmatmul.mubr.bf16.gmra.mxu0 %v11035_v62  ;;  %v11102_v62 = vpack.c.bf16 %v4667_v15, %v4666_v52  ;;  %v5406_v52 = vld [vmem:[#allocation2 + $0xf1] sm:$0xff] }
 0x369   : > { %8841 = vmatpush3.bf16.msra.mxu1 %v9254_v30  ;;  %8822 = vmatprep.mubr.bf16.mxu0 %v11040_v12  ;;  %v4670_v12 = vld [vmem:[#allocation2 + $0x10a] sm:$0xff]  ;;  %v5397_v30 = vld [vmem:[#allocation2 + $0x81] sm:$0xff] }
 0x36a   : > { %8842 = vmatprep.subr.bf16.mxu1 %v9257_v47  ;;  %v11111_v4 = vpack.c.bf16 %v4671_v43, %v4670_v12  ;;  %v11147_v51 = vpack.c.bf16 %v5397_v30, %v5396_v28  ;;  %v5409_v43 = vld [vmem:[#allocation2 + $0x111] sm:$0xff]  ;;  %v5410_v12 = vld [vmem:[#allocation2 + $0x121] sm:$0xff] }
 0x36b   : > { %v9284_v28 = vld [vmem:[#allocation9 + $0x230] sm:$0xff]  }
 0x36c   : > { %8763 = vmatmul.mubr.bf16.gmra.mxu1 %v11081_v20 }
 0x36d   : > { %8766 = vmatprep.mubr.bf16.mxu1 %v11084_v37  ;;  %8843 = vmatpush3.bf16.msra.mxu1 %v9257_v47  ;;  %v9270_v47 = vld [vmem:[#allocation9 + $0x1a0] sm:$0xff]  }
 0x36e   : > { %8844 = vmatprep.subr.bf16.mxu1 %v9260_v36 }
 0x370   : > { %8823 = vmatmul.mubr.bf16.gmra.mxu0 %v11043_v25  ;;  %v11114_v25 = vpack.c.bf16 %v4673_v32, %v4672_v24  ;;  %v11174_v32 = vpack.c.bf16 %v5409_v43, %v5408_v44  ;;  %v5412_v24 = vld [vmem:[#allocation2 + $0x139] sm:$0xff] }
 0x371   : > { %8845 = vmatpush3.bf16.msra.mxu1 %v9260_v36  ;;  %8826 = vmatprep.mubr.bf16.mxu0 %v11048_v50  ;;  %v5049_v50 = vld [vmem:[#allocation2 + $0x188] sm:$0xff]  ;;  %v5401_v36 = vld [vmem:[#allocation2 + $0xb1] sm:$0xff] }
 0x372   : > { %8846 = vmatprep.subr.bf16.mxu1 %v9263_v59  ;;  %v11119_v11 = vpack.c.bf16 %v5049_v50, %v5048_v0  ;;  %v11155_v41 = vpack.c.bf16 %v5401_v36, %v5400_v7  ;;  %v5413_v0 = vld [vmem:[#allocation2 + $0x141] sm:$0xff]  ;;  %v6136_v36 = vld [vmem:[#allocation2 + $0x90] sm:$0xff] }
 0x373   : > { %v11182_v50 = vpack.c.bf16 %v5413_v0, %v5412_v24 }
 0x374   : > { %8767 = vmatmul.mubr.bf16.gmra.mxu1 %v11092_v49 }
 0x375   : > { %8770 = vmatprep.mubr.bf16.mxu1 %v11095_v18  ;;  %8847 = vmatpush3.bf16.msra.mxu1 %v9263_v59  ;;  %v9276_v59 = vld [vmem:[#allocation9 + $0x190] sm:$0xff]  }
 0x376   : > { %8848 = vmatprep.subr.bf16.mxu1 %v9266_v55 }
 0x378   : > { %8827 = vmatmul.mubr.bf16.gmra.mxu0 %v11053_v45  ;;  %v4676_v45 = vld [vmem:[#allocation2 + $0x152] sm:$0xff] }
 0x379   : > { %8849 = vmatpush3.bf16.msra.mxu1 %v9266_v55  ;;  %8830 = vmatprep.mubr.bf16.mxu0 %v11058_v34  ;;  %v11124_v2 = vpack.c.bf16 %v4677_v39, %v4676_v45  ;;  %v5388_v34 = vld [vmem:[#allocation2 + $0x19] sm:$0xff]  ;;  %v5405_v55 = vld [vmem:[#allocation2 + $0xe1] sm:$0xff]  ;;  %v5414_v39 = vld [vmem:[#allocation2 + $0x151] sm:$0xff] }
 0x37a   : > { %8930 = vmatprep.subr.bf16.mxu1 %v11100_v1  ;;  %v5420_v27 = vpack.c.bf16 %v5389_v16, %v5388_v34  ;;  %v11163_v15 = vpack.c.bf16 %v5405_v55, %v5404_v42  ;;  %v5417_v34 = vld [vmem:[#allocation2 + $0x171] sm:$0xff]  ;;  %v11189_v16 = vpack.c.bf16 %v5415_v23, %v5414_v39 }
 0x37b   : > { %v9286_v42 = vld [vmem:[#allocation9 + $0x220] sm:$0xff]  }
 0x37c   : > { %8771 = vmatmul.mubr.bf16.gmra.mxu1 %v11102_v62 }
 0x37d   : > { %8774 = vmatprep.mubr.bf16.mxu1 %v11106_v9 }
 0x380   : > { %8831 = vmatmul.mubr.bf16.gmra.mxu0 %v11119_v11 }
 0x381   : > { %8898 = vmatprep.mubr.bf16.mxu0 %v11064_v33  ;;  %v5391_v33 = vld [vmem:[#allocation2 + $0x39] sm:$0xff] }
 0x382   : > { %v11135_v13 = vpack.c.bf16 %v5391_v33, %v5390_v38  ;;  %v6129_v38 = vld [vmem:[#allocation2 + $0x38] sm:$0xff] }
 0x384   : > { %8775 = vmatmul.mubr.bf16.gmra.mxu1 %v11111_v4 }
 0x385   : > { %8778 = vmatprep.mubr.bf16.mxu1 %v11114_v25 }
 0x388   : > { %8899 = vmatmul.mubr.bf16.vlgmr.msra.gmra.mxu0 %v11067_v53  ;;  %v9268_v53 = vld [vmem:[#allocation9 + $0x1b0] sm:$0xff]  }
 0x389   : > { %8902 = vmatprep.mubr.bf16.mxu0 %v11073_v56  ;;  %8979 = vmatpush3.bf16.msra.mxu0 %v11088_v5  ;;  %v5395_v56 = vld [vmem:[#allocation2 + $0x69] sm:$0xff] }
 0x38a   : > { %8980 = vmatprep.subr.bf16.mxu0 %v9272_v22  ;;  %v11144_v14 = vpack.c.bf16 %v5395_v56, %v5394_v57  ;;  %v6133_v56 = vld [vmem:[#allocation2 + $0x68] sm:$0xff] }
 0x38c   : > { %8779 = vmatmul.mubr.bf16.gmra.mxu1 %v11121_v17 }
 0x38d   : > { %8782 = vmatprep.mubr.bf16.mxu1 %v11124_v2  ;;  %8981 = vmatpush3.bf16.msra.mxu0 %v9272_v22  ;;  %v5418_v22 = vld [vmem:[#allocation2 + $0x181] sm:$0xff] }
 0x38e   : > { %8982 = vmatprep.subr.bf16.mxu0 %v9274_v63 }
 0x390   : > { %8903 = vmatmul.mubr.bf16.gmra.mxu0 %v11076_v3  ;;  %v9278_v3 = vld [vmem:[#allocation9 + $0x1d0] sm:$0xff]  }
 0x391   : > { %8906 = vmatprep.mubr.bf16.mxu0 %v11081_v20  ;;  %8983 = vmatpush3.bf16.msra.mxu0 %v9274_v63  ;;  %v5399_v20 = vld [vmem:[#allocation2 + $0x99] sm:$0xff]  ;;  %v11197_v63 = vpack.c.bf16 %v5419_v54, %v5418_v22 }
 0x392   : > { %8984 = vmatprep.subr.bf16.mxu0 %v9275_v8  ;;  %v11152_v5 = vpack.c.bf16 %v5399_v20, %v5398_v31  ;;  %v9288_v22 = vld [vmem:[#allocation9 + $0x210] sm:$0xff]  }
 0x394   : > { %8783 = vmatmul.mubr.bf16.gmra.mxu1 %v11129_v6 }
 0x395   : > { %8850 = vmatprep.mubr.bf16.mxu1 %v5420_v27  ;;  %8985 = vmatpush3.bf16.msra.mxu0 %v9275_v8  ;;  %v6130_v8 = vld [vmem:[#allocation2 + $0x48] sm:$0xff] }
 0x396   : > { %8986 = vmatprep.subr.bf16.mxu0 %v9277_v26 }
 0x398   : > { %8907 = vmatmul.mubr.bf16.gmra.mxu0 %v11084_v37  ;;  %v9281_v37 = vld [vmem:[#allocation9 + $0x1c0] sm:$0xff]  }
 0x399   : > { %8910 = vmatprep.mubr.bf16.mxu0 %v11092_v49  ;;  %8987 = vmatpush3.bf16.msra.mxu0 %v9277_v26  ;;  %v5403_v49 = vld [vmem:[#allocation2 + $0xc9] sm:$0xff] }
 0x39a   : > { %8988 = vmatprep.subr.bf16.mxu0 %v9278_v3  ;;  %v6131_v26 = vld [vmem:[#allocation2 + $0x50] sm:$0xff] }
 0x39b   : > { %v6161_v57 = vpack.c.bf16 %v6131_v26, %v6130_v8  ;;  %v9289_v8 = vld [vmem:[#allocation9 + $0x208] sm:$0xff]  }
 0x39c   : > { %8851 = vmatmul.mubr.bf16.vlgmr.msra.gmra.mxu1 %v11135_v13 }
 0x39d   : > { %8854 = vmatprep.mubr.bf16.mxu1 %v11138_v46  ;;  %8931 = vmatpush3.bf16.msra.mxu1 %v11100_v1  ;;  %v9282_v1 = vld [vmem:[#allocation9 + $0x180] sm:$0xff]  }
 0x39e   : > { %8932 = vmatprep.subr.bf16.mxu1 %v9268_v53  ;;  %8989 = vmatpush3.bf16.msra.mxu0 %v9278_v3 }
 0x39f   : > { %8990 = vmatprep.subr.bf16.mxu0 %v9280_v61 }
 0x3a0   : > { %8911 = vmatmul.mubr.bf16.gmra.mxu0 %v11095_v18  ;;  %v11160_v18 = vpack.c.bf16 %v5403_v49, %v5402_v58  ;;  %v6137_v49 = vld [vmem:[#allocation2 + $0x98] sm:$0xff] }
 0x3a1   : > { %8933 = vmatpush3.bf16.msra.mxu1 %v9268_v53  ;;  %8914 = vmatprep.mubr.bf16.mxu0 %v11102_v62  ;;  %v5407_v62 = vld [vmem:[#allocation2 + $0xf9] sm:$0xff] }
 0x3a2   : > { %8934 = vmatprep.subr.bf16.mxu1 %v9269_v48  ;;  %8991 = vmatpush3.bf16.msra.mxu0 %v9280_v61  ;;  %v6132_v53 = vld [vmem:[#allocation2 + $0x60] sm:$0xff] }
 0x3a3   : > { %8992 = vmatprep.subr.bf16.mxu0 %v9281_v37 }
 0x3a4   : > { %8855 = vmatmul.mubr.bf16.gmra.mxu1 %v11144_v14 }
 0x3a5   : > { %8858 = vmatprep.mubr.bf16.mxu1 %v11147_v51  ;;  %8935 = vmatpush3.bf16.msra.mxu1 %v9269_v48 }
 0x3a6   : > { %8936 = vmatprep.subr.bf16.mxu1 %v9270_v47  ;;  %8993 = vmatpush3.bf16.msra.mxu0 %v9281_v37 }
 0x3a8   : > { %8915 = vmatmul.mubr.bf16.gmra.mxu0 %v11106_v9  ;;  %v11170_v9 = vpack.c.bf16 %v5407_v62, %v5406_v52 }
 0x3a9   : > { %8937 = vmatpush3.bf16.msra.mxu1 %v9270_v47  ;;  %8918 = vmatprep.mubr.bf16.mxu0 %v11111_v4  ;;  %v5411_v4 = vld [vmem:[#allocation2 + $0x129] sm:$0xff] }
 0x3aa   : > { %8938 = vmatprep.subr.bf16.mxu1 %v9273_v19  ;;  %v11179_v10 = vpack.c.bf16 %v5411_v4, %v5410_v12  ;;  %v9287_v12 = vld [vmem:[#allocation9 + $0x218] sm:$0xff]  }
 0x3ab   : > { %v6138_v4 = vld [vmem:[#allocation2 + $0xa8] sm:$0xff] }
 0x3ac   : > { %8859 = vmatmul.mubr.bf16.gmra.mxu1 %v11152_v5 }
 0x3ad   : > { %8862 = vmatprep.mubr.bf16.mxu1 %v11155_v41  ;;  %8939 = vmatpush3.bf16.msra.mxu1 %v9273_v19  ;;  %v9285_v19 = vld [vmem:[#allocation9 + $0x228] sm:$0xff]  }
 0x3ae   : > { %8940 = vmatprep.subr.bf16.mxu1 %v9276_v59 }
 0x3b0   : > { %8919 = vmatmul.mubr.bf16.gmra.mxu0 %v11114_v25  ;;  %v5789_v25 = vld [vmem:[#allocation2 + $0x18a] sm:$0xff] }
 0x3b1   : > { %8941 = vmatpush3.bf16.msra.mxu1 %v9276_v59  ;;  %8922 = vmatprep.mubr.bf16.mxu0 %v11121_v17  ;;  %v5788_v17 = vld [vmem:[#allocation2 + $0x182] sm:$0xff] }
 0x3b2   : > { %8942 = vmatprep.subr.bf16.mxu1 %v9279_v40  ;;  %v11187_v45 = vpack.c.bf16 %v5789_v25, %v5788_v17  ;;  %v6140_v25 = vld [vmem:[#allocation2 + $0xc0] sm:$0xff] }
 0x3b4   : > { %8863 = vmatmul.mubr.bf16.gmra.mxu1 %v11160_v18 }
 0x3b5   : > { %8866 = vmatprep.mubr.bf16.mxu1 %v11163_v15  ;;  %8943 = vmatpush3.bf16.msra.mxu1 %v9279_v40 }
 0x3b6   : > { %8944 = vmatprep.subr.bf16.mxu1 %v9282_v1 }
 0x3b8   : > { %8923 = vmatmul.mubr.bf16.gmra.mxu0 %v11124_v2  ;;  %v11192_v2 = vpack.c.bf16 %v5417_v34, %v5416_v29  ;;  %v6141_v34 = vld [vmem:[#allocation2 + $0xc8] sm:$0xff] }
 0x3b9   : > { %8945 = vmatpush3.bf16.msra.mxu1 %v9282_v1  ;;  %8926 = vmatprep.mubr.bf16.mxu0 %v11129_v6  ;;  %v6128_v6 = vld [vmem:[#allocation2 + $0x30] sm:$0xff]  ;;  %v6164_v1 = vpack.c.bf16 %v6137_v49, %v6136_v36 }
 0x3ba   : > { %9026 = vmatprep.subr.bf16.mxu1 %v11168_v21  ;;  %v6160_v33 = vpack.c.bf16 %v6129_v38, %v6128_v6  ;;  %v6166_v6 = vpack.c.bf16 %v6141_v34, %v6140_v25 }
 0x3bc   : > { %8867 = vmatmul.mubr.bf16.gmra.mxu1 %v11170_v9 }
 0x3bd   : > { %8870 = vmatprep.mubr.bf16.mxu1 %v11174_v32 }
 0x3c0   : > { %8927 = vmatmul.mubr.bf16.gmra.mxu0 %v11187_v45 }
 0x3c1   : > { %8994 = vmatprep.mubr.bf16.mxu0 %v11135_v13 }
 0x3c4   : > { %8871 = vmatmul.mubr.bf16.gmra.mxu1 %v11179_v10 }
 0x3c5   : > { %8874 = vmatprep.mubr.bf16.mxu1 %v11182_v50 }
 0x3c8   : > { %v8708_v27 = vpop.f32.mrf.mxu0  ;;  %8995 = vmatmul.mubr.bf16.vlgmr.msra.gmra.mxu0 %v11138_v46  ;;  %v6162_v46 = vpack.c.bf16 %v6133_v56, %v6132_v53 }
 0x3c9   : > { %8998 = vmatprep.mubr.bf16.mxu0 %v11144_v14 }
 0x3ca   : > { %v4425_v35 = vpop.f32.mrf.mxu0 }
 0x3cc   : > { %8875 = vmatmul.mubr.bf16.gmra.mxu1 %v11189_v16  ;;  %v8709_v60 = vpop.f32.mrf.mxu0 }
 0x3cd   : > { %8878 = vmatprep.mubr.bf16.mxu1 %v11192_v2 }
 0x3ce   : > { %v4428_v13 = vpop.f32.mrf.mxu0 }
 0x3d0   : > { %v8712_v48 = vpop.f32.mrf.mxu0  ;;  %8999 = vmatmul.mubr.bf16.gmra.mxu0 %v11147_v51  ;;  %v6134_v51 = vld [vmem:[#allocation2 + $0x78] sm:$0xff] }
 0x3d1   : > { %9002 = vmatprep.mubr.bf16.mxu0 %v11152_v5  ;;  %v6135_v5 = vld [vmem:[#allocation2 + $0x80] sm:$0xff] }
 0x3d2   : > { %v4441_v3 = vpop.f32.mrf.mxu0  ;;  %v6163_v58 = vpack.c.bf16 %v6135_v5, %v6134_v51 }
 0x3d4   : > { %8879 = vmatmul.mubr.bf16.gmra.mxu1 %v11197_v63  ;;  %v8713_v61 = vpop.f32.mrf.mxu0 }
 0x3d5   : > { %8946 = vmatprep.mubr.bf16.mxu1 %v6160_v33 }
 0x3d6   : > { %v4444_v7 = vpop.f32.mrf.mxu0 }
 0x3d8   : > { %v8716_v40 = vpop.f32.mrf.mxu0  ;;  %9003 = vmatmul.mubr.bf16.gmra.mxu0 %v11155_v41 }
 0x3d9   : > { %9006 = vmatprep.mubr.bf16.mxu0 %v11160_v18  ;;  %v6139_v18 = vld [vmem:[#allocation2 + $0xb0] sm:$0xff] }
 0x3da   : > { %v4457_v52 = vpop.f32.mrf.mxu0  ;;  %v6165_v29 = vpack.c.bf16 %v6139_v18, %v6138_v4 }
 0x3dc   : > { %v8660_v30 = vpop.f32.mrf.mxu1  ;;  %8947 = vmatmul.mubr.bf16.vlgmr.msra.gmra.mxu1 %v6161_v57  ;;  %v8717_v43 = vpop.f32.mrf.mxu0 }
 0x3dd   : > { %v11204_v14 = vadd.f32 %v8708_v27, %v8660_v30  ;;  %8950 = vmatprep.mubr.bf16.mxu1 %v6162_v46  ;;  %9027 = vmatpush3.bf16.msra.mxu1 %v11168_v21  ;;  %v6145_v30 = vld [vmem:[#allocation2 + $0xf8] sm:$0xff] }
 0x3de   : > { %v4119_v47 = vpop.f32.mrf.mxu1  ;;  %9028 = vmatprep.subr.bf16.mxu1 %v9284_v28  ;;  %v4460_v0 = vpop.f32.mrf.mxu0 }
 0x3df   : > { %v11207_v31 = vadd.f32 %v4425_v35, %v4119_v47 }
 0x3e0   : > { %v8661_v20 = vpop.f32.mrf.mxu1  ;;  %v8720_v17 = vpop.f32.mrf.mxu0  ;;  %9007 = vmatmul.mubr.bf16.gmra.mxu0 %v11163_v15 }
 0x3e1   : > { %v11209_v37 = vadd.f32 %v8709_v60, %v8661_v20  ;;  %9029 = vmatpush3.bf16.msra.mxu1 %v9284_v28  ;;  %9010 = vmatprep.mubr.bf16.mxu0 %v11170_v9  ;;  %v6143_v9 = vld [vmem:[#allocation2 + $0xe0] sm:$0xff] }
 0x3e2   : > { %v4122_v59 = vpop.f32.mrf.mxu1  ;;  %9030 = vmatprep.subr.bf16.mxu1 %v9285_v19  ;;  %v4473_v38 = vpop.f32.mrf.mxu0 }
 0x3e3   : > { %v11212_v55 = vadd.f32 %v4428_v13, %v4122_v59  ;;  %v6142_v13 = vld [vmem:[#allocation2 + $0xd8] sm:$0xff] }
 0x3e4   : > { %v8664_v21 = vpop.f32.mrf.mxu1  ;;  %8951 = vmatmul.mubr.bf16.gmra.mxu1 %v6163_v58  ;;  %v8721_v60 = vpop.f32.mrf.mxu0  ;;  %v6167_v46 = vpack.c.bf16 %v6143_v9, %v6142_v13  ;;  %v6148_v58 = vld [vmem:[#allocation2 + $0x120] sm:$0xff] }
 0x3e5   : > { %v11215_v62 = vadd.f32 %v8712_v48, %v8664_v21  ;;  %8954 = vmatprep.mubr.bf16.mxu1 %v6164_v1  ;;  %9031 = vmatpush3.bf16.msra.mxu1 %v9285_v19  ;;  %v6144_v48 = vld [vmem:[#allocation2 + $0xf0] sm:$0xff] }
 0x3e6   : > { %v4135_v44 = vpop.f32.mrf.mxu1  ;;  %9032 = vmatprep.subr.bf16.mxu1 %v9286_v42  ;;  %v4476_v26 = vpop.f32.mrf.mxu0 }
 0x3e7   : > { %v11217_v41 = vadd.f32 %v4441_v3, %v4135_v44  ;;  %v9290_v3 = vld [vmem:[#allocation9 + $0x200] sm:$0xff]  }
 0x3e8   : > { %v8665_v24 = vpop.f32.mrf.mxu1  ;;  %v8724_v28 = vpop.f32.mrf.mxu0  ;;  %9011 = vmatmul.mubr.bf16.gmra.mxu0 %v11174_v32  ;;  %v6146_v32 = vld [vmem:[#allocation2 + $0x108] sm:$0xff] }
 0x3e9   : > { %v11219_v39 = vadd.f32 %v8713_v61, %v8665_v24  ;;  %9033 = vmatpush3.bf16.msra.mxu1 %v9286_v42  ;;  %v6168_v61 = vpack.c.bf16 %v6145_v30, %v6144_v48  ;;  %9014 = vmatprep.mubr.bf16.mxu0 %v11179_v10  ;;  %v6147_v42 = vld [vmem:[#allocation2 + $0x110] sm:$0xff]  ;;  %v6529_v48 = vld [vmem:[#allocation2 + $0x1a1] sm:$0xff] }
 0x3ea   : > { %v4138_v23 = vpop.f32.mrf.mxu1  ;;  %9034 = vmatprep.subr.bf16.mxu1 %v9287_v12  ;;  %v4489_v51 = vpop.f32.mrf.mxu0  ;;  %v6169_v21 = vpack.c.bf16 %v6147_v42, %v6146_v32 }
 0x3eb   : > { %v11222_v54 = vadd.f32 %v4444_v7, %v4138_v23  ;;  %v6150_v23 = vld [vmem:[#allocation2 + $0x138] sm:$0xff] }
 0x3ec   : > { %v8668_v27 = vpop.f32.mrf.mxu1  ;;  %8955 = vmatmul.mubr.bf16.gmra.mxu1 %v6165_v29  ;;  %v8725_v36 = vpop.f32.mrf.mxu0 }
 0x3ed   : > { %v11225_v33 = vadd.f32 %v8716_v40, %v8668_v27  ;;  %8958 = vmatprep.mubr.bf16.mxu1 %v6166_v6  ;;  %9035 = vmatpush3.bf16.msra.mxu1 %v9287_v12 }
 0x3ee   : > { %v4151_v35 = vpop.f32.mrf.mxu1  ;;  %9036 = vmatprep.subr.bf16.mxu1 %v9288_v22  ;;  %v4492_v40 = vpop.f32.mrf.mxu0 }
 0x3ef   : > { %v11227_v15 = vadd.f32 %v4457_v52, %v4151_v35  ;;  %v6149_v52 = vld [vmem:[#allocation2 + $0x128] sm:$0xff] }
 0x3f0   : > { %v8669_v53 = vpop.f32.mrf.mxu1  ;;  %v8728_v1 = vpop.f32.mrf.mxu0  ;;  %9015 = vmatmul.mubr.bf16.gmra.mxu0 %v11182_v50  ;;  %v6152_v50 = vld [vmem:[#allocation2 + $0x150] sm:$0xff] }
 0x3f1   : > { %v11229_v57 = vadd.f32 %v8717_v43, %v8669_v53  ;;  %9037 = vmatpush3.bf16.msra.mxu1 %v9288_v22  ;;  %v6170_v43 = vpack.c.bf16 %v6149_v52, %v6148_v58  ;;  %9018 = vmatprep.mubr.bf16.mxu0 %v11189_v16  ;;  %v6151_v22 = vld [vmem:[#allocation2 + $0x140] sm:$0xff] }
 0x3f2   : > { %v4154_v56 = vpop.f32.mrf.mxu1  ;;  %9038 = vmatprep.subr.bf16.mxu1 %v9289_v8  ;;  %v4505_v4 = vpop.f32.mrf.mxu0  ;;  %v6171_v16 = vpack.c.bf16 %v6151_v22, %v6150_v23 }
 0x3f3   : > { %v11232_v47 = vadd.f32 %v4460_v0, %v4154_v56 }
 0x3f4   : > { %v8672_v19 = vpop.f32.mrf.mxu1  ;;  %8959 = vmatmul.mubr.bf16.gmra.mxu1 %v6167_v46  ;;  %v8729_v25 = vpop.f32.mrf.mxu0  ;;  %v6154_v46 = vld [vmem:[#allocation2 + $0x168] sm:$0xff] }
 0x3f5   : > { %v11235_v20 = vadd.f32 %v8720_v17, %v8672_v19  ;;  %8962 = vmatprep.mubr.bf16.mxu1 %v6168_v61  ;;  %9039 = vmatpush3.bf16.msra.mxu1 %v9289_v8  ;;  %v6155_v19 = vld [vmem:[#allocation2 + $0x170] sm:$0xff] }
 0x3f6   : > { %v4167_v7 = vpop.f32.mrf.mxu1  ;;  %9040 = vmatprep.subr.bf16.mxu1 %v9290_v3  ;;  %v4508_v29 = vpop.f32.mrf.mxu0 }
 0x3f7   : > { %v11237_v5 = vadd.f32 %v4473_v38, %v4167_v7  ;;  %v6153_v38 = vld [vmem:[#allocation2 + $0x158] sm:$0xff]  ;;  %v6173_v7 = vpack.c.bf16 %v6155_v19, %v6154_v46 }
 0x3f8   : > { %v8673_v59 = vpop.f32.mrf.mxu1  ;;  %v8732_v27 = vpop.f32.mrf.mxu0  ;;  %9019 = vmatmul.mubr.bf16.gmra.mxu0 %v11192_v2 }
 0x3f9   : > { %v11239_v49 = vadd.f32 %v8721_v60, %v8673_v59  ;;  %9041 = vmatpush3.bf16.msra.mxu1 %v9290_v3  ;;  %v6172_v60 = vpack.c.bf16 %v6153_v38, %v6152_v50  ;;  %9022 = vmatprep.mubr.bf16.mxu0 %v11197_v63 }
 0x3fa   : > { %v4170_v10 = vpop.f32.mrf.mxu1  ;;  %v4521_v13 = vpop.f32.mrf.mxu0 }
 0x3fb   : > { %v11242_v44 = vadd.f32 %v4476_v26, %v4170_v10  ;;  %v6528_v26 = vld [vmem:[#allocation2 + $0x199] sm:$0xff] }
 0x3fc   : > { %v8676_v12 = vpop.f32.mrf.mxu1  ;;  %8963 = vmatmul.mubr.bf16.gmra.mxu1 %v6169_v21  ;;  %v8733_v56 = vpop.f32.mrf.mxu0  ;;  %v6545_v3 = vpack.c.bf16 %v6529_v48, %v6528_v26  ;;  %v6873_v26 = vld [vmem:[#allocation2 + $0x6a] sm:$0xff] }
 0x3fd   : > { %v11245_v24 = vadd.f32 %v8724_v28, %v8676_v12  ;;  %8966 = vmatprep.mubr.bf16.mxu1 %v6170_v43  ;;  %v6869_v43 = vld [vmem:[#allocation2 + $0x3a] sm:$0xff] }
 0x3fe   : > { %v4183_v0 = vpop.f32.mrf.mxu1  ;;  %v4524_v30 = vpop.f32.mrf.mxu0 }
 0x3ff   : > { %v11247_v18 = vadd.f32 %v4489_v51, %v4183_v0 }
 0x400   : > { %v8677_v17 = vpop.f32.mrf.mxu1  ;;  %v8736_v51 = vpop.f32.mrf.mxu0  ;;  %9023 = vmatmul.mubr.bf16.gmra.mxu0 %v6545_v3 }
 0x401   : > { %v11249_v34 = vadd.f32 %v8725_v36, %v8677_v17  ;;  %v6868_v17 = vld [vmem:[#allocation2 + $0x32] sm:$0xff] }
 0x402   : > { %v4186_v6 = vpop.f32.mrf.mxu1  ;;  %v4537_v59 = vpop.f32.mrf.mxu0  ;;  %v6900_v50 = vpack.c.bf16 %v6869_v43, %v6868_v17 }
 0x403   : > { %v11252_v35 = vadd.f32 %v4492_v40, %v4186_v6 }
 0x404   : > { %v8680_v8 = vpop.f32.mrf.mxu1  ;;  %8967 = vmatmul.mubr.bf16.gmra.mxu1 %v6171_v16  ;;  %v8737_v42 = vpop.f32.mrf.mxu0 }
 0x405   : > { %v11255_v53 = vadd.f32 %v8728_v1, %v8680_v8  ;;  %8970 = vmatprep.mubr.bf16.mxu1 %v6172_v60  ;;  %v6158_v1 = vld [vmem:[#allocation2 + $0x198] sm:$0xff] }
 0x406   : > { %v4199_v9 = vpop.f32.mrf.mxu1  ;;  %v4540_v52 = vpop.f32.mrf.mxu0  ;;  %v6871_v60 = vld [vmem:[#allocation2 + $0x52] sm:$0xff] }
 0x407   : > { %v11257_v28 = vadd.f32 %v4505_v4, %v4199_v9  ;;  %v6159_v4 = vld [vmem:[#allocation2 + $0x1a0] sm:$0xff]  ;;  %v6870_v9 = vld [vmem:[#allocation2 + $0x4a] sm:$0xff] }
 0x408   : > { %v8681_v2 = vpop.f32.mrf.mxu1  ;;  %v6175_v23 = vpack.c.bf16 %v6159_v4, %v6158_v1  ;;  %v6877_v4 = vld [vmem:[#allocation2 + $0x9a] sm:$0xff] }
 0x409   : > { %v11259_v61 = vadd.f32 %v8729_v25, %v8681_v2  ;;  %v8804_v25 = vpop.f32.mrf.mxu0  ;;  %v6901_v2 = vpack.c.bf16 %v6871_v60, %v6870_v9 }
 0x40a   : > { %v4202_v63 = vpop.f32.mrf.mxu1 }
 0x40b   : > { %v11261_v36 = vadd.f32 %v4508_v29, %v4202_v63 }
 0x40c   : > { %v8684_v32 = vpop.f32.mrf.mxu1  ;;  %8971 = vmatmul.mubr.bf16.gmra.mxu1 %v6173_v7 }
 0x40d   : > { %v11263_v40 = vadd.f32 %v8732_v27, %v8684_v32  ;;  %8974 = vmatprep.mubr.bf16.mxu1 %v11119_v11  ;;  %v5165_v11 = vpop.f32.mrf.mxu0 }
 0x40e   : > { %v4215_v58 = vpop.f32.mrf.mxu1 }
 0x40f   : > { %v11266_v10 = vadd.f32 %v4521_v13, %v4215_v58  ;;  %v8805_v16 = vpop.f32.mrf.mxu0 }
 0x410   : > { %v8685_v21 = vpop.f32.mrf.mxu1 }
 0x411   : > { %v11268_v12 = vadd.f32 %v8733_v56, %v8685_v21  ;;  %v5168_v13 = vpop.f32.mrf.mxu0 }
 0x412   : > { %v4218_v0 = vpop.f32.mrf.mxu1 }
 0x413   : > { %v11270_v29 = vadd.f32 %v4524_v30, %v4218_v0  ;;  %v8808_v46 = vpop.f32.mrf.mxu0  ;;  %v6872_v30 = vld [vmem:[#allocation2 + $0x62] sm:$0xff]  ;;  %v6874_v0 = vld [vmem:[#allocation2 + $0x7a] sm:$0xff] }
 0x414   : > { %v8688_v22 = vpop.f32.mrf.mxu1  ;;  %8975 = vmatmul.mubr.bf16.gmra.mxu1 %v6175_v23  ;;  %v6902_v19 = vpack.c.bf16 %v6873_v26, %v6872_v30 }
 0x415   : > { %v11272_v6 = vadd.f32 %v8736_v51, %v8688_v22  ;;  %9042 = vmatprep.mubr.bf16.mxu1 %v6900_v50  ;;  %v5181_v51 = vpop.f32.mrf.mxu0 }
 0x416   : > { %v4231_v27 = vpop.f32.mrf.mxu1 }
 0x417   : > { %v11274_v38 = vadd.f32 %v4537_v59, %v4231_v27  ;;  %v8809_v59 = vpop.f32.mrf.mxu0 }
 0x418   : > { %v8689_v8 = vpop.f32.mrf.mxu1 }
 0x419   : > { %v11276_v48 = vadd.f32 %v8737_v42, %v8689_v8  ;;  %v6875_v42 = vld [vmem:[#allocation2 + $0x82] sm:$0xff]  ;;  %v5184_v43 = vpop.f32.mrf.mxu0 }
 0x41a   : > { %v4234_v56 = vpop.f32.mrf.mxu1  ;;  %v6903_v22 = vpack.c.bf16 %v6875_v42, %v6874_v0 }
 0x41b   : > { %v11278_v3 = vadd.f32 %v4540_v52, %v4234_v56  ;;  %v8812_v50 = vpop.f32.mrf.mxu0 }
 0x41c   : > { %v8756_v63 = vpop.f32.mrf.mxu1  ;;  %9043 = vmatmul.mubr.bf16.vlgmr.msra.gmra.mxu1 %v6901_v2  ;;  %v6879_v2 = vld [vmem:[#allocation2 + $0xb2] sm:$0xff] }
 0x41d   : > { %v4956_v7 = vadd.f32 %v8756_v63, %v11204_v14  ;;  %9046 = vmatprep.mubr.bf16.mxu1 %v6902_v19  ;;  %v6876_v14 = vld [vmem:[#allocation2 + $0x92] sm:$0xff]  ;;  %v6881_v63 = vld [vmem:[#allocation2 + $0xca] sm:$0xff] }
 0x41e   : > { %v4795_v32 = vpop.f32.mrf.mxu1  ;;  %v6904_v60 = vpack.c.bf16 %v6877_v4, %v6876_v14  ;;  %v6883_v14 = vld [vmem:[#allocation2 + $0xe2] sm:$0xff] }
 0x41f   : > { %v4954_v58 = vadd.f32 %v4795_v32, %v11207_v31  ;;  %v11282_v1 = vadd.f32 %v8804_v25, %v4956_v7  ;;  %v5197_v25 = vpop.f32.mrf.mxu0  ;;  %v6878_v7 = vld [vmem:[#allocation2 + $0xaa] sm:$0xff] }
 0x420   : > { %v8757_v21 = vpop.f32.mrf.mxu1  ;;  %v6905_v42 = vpack.c.bf16 %v6879_v2, %v6878_v7 }
 0x421   : > { %v4957_v52 = vadd.f32 %v8757_v21, %v11209_v37  ;;  %v11285_v23 = vadd.f32 %v5165_v11, %v4954_v58  ;;  %v8813_v11 = vpop.f32.mrf.mxu0 }
 0x422   : > { %v4798_v17 = vpop.f32.mrf.mxu1 }
 0x423   : > { %v4955_v27 = vadd.f32 %v4798_v17, %v11212_v55  ;;  %v11288_v8 = vadd.f32 %v8805_v16, %v4957_v52  ;;  %v5200_v55 = vpop.f32.mrf.mxu0 }
 0x424   : > { %v8760_v31 = vpop.f32.mrf.mxu1  ;;  %9047 = vmatmul.mubr.bf16.gmra.mxu1 %v6903_v22 }
 0x425   : > { %v4960_v26 = vadd.f32 %v8760_v31, %v11215_v62  ;;  %9050 = vmatprep.mubr.bf16.mxu1 %v6904_v60  ;;  %v11291_v9 = vadd.f32 %v5168_v13, %v4955_v27  ;;  %v8816_v62 = vpop.f32.mrf.mxu0  ;;  %v6880_v13 = vld [vmem:[#allocation2 + $0xc2] sm:$0xff]  ;;  %v6885_v31 = vld [vmem:[#allocation2 + $0xfa] sm:$0xff] }
 0x426   : > { %v4811_v37 = vpop.f32.mrf.mxu1  ;;  %v6906_v4 = vpack.c.bf16 %v6881_v63, %v6880_v13  ;;  %v6887_v13 = vld [vmem:[#allocation2 + $0x112] sm:$0xff] }
 0x427   : > { %v4958_v56 = vadd.f32 %v4811_v37, %v11217_v41  ;;  %v11294_v30 = vadd.f32 %v8808_v46, %v4960_v26  ;;  %v5213_v46 = vpop.f32.mrf.mxu0  ;;  %v6882_v26 = vld [vmem:[#allocation2 + $0xda] sm:$0xff] }
 0x428   : > { %v8761_v19 = vpop.f32.mrf.mxu1  ;;  %v6907_v2 = vpack.c.bf16 %v6883_v14, %v6882_v26 }
 0x429   : > { %v4961_v16 = vadd.f32 %v8761_v19, %v11219_v39  ;;  %v11297_v32 = vadd.f32 %v5181_v51, %v4958_v56  ;;  %v8817_v51 = vpop.f32.mrf.mxu0 }
 0x42a   : > { %v4814_v58 = vpop.f32.mrf.mxu1 }
 0x42b   : > { %v4959_v21 = vadd.f32 %v4814_v58, %v11222_v54  ;;  %v11300_v52 = vadd.f32 %v8809_v59, %v4961_v16  ;;  %v5216_v54 = vpop.f32.mrf.mxu0 }
 0x42c   : > { %v8764_v41 = vpop.f32.mrf.mxu1  ;;  %9051 = vmatmul.mubr.bf16.gmra.mxu1 %v6905_v42 }
 0x42d   : > { %v4964_v0 = vadd.f32 %v8764_v41, %v11225_v33  ;;  %9054 = vmatprep.mubr.bf16.mxu1 %v6906_v4  ;;  %v11303_v17 = vadd.f32 %v5184_v43, %v4959_v21  ;;  %v8820_v33 = vpop.f32.mrf.mxu0  ;;  %v6884_v43 = vld [vmem:[#allocation2 + $0xf2] sm:$0xff]  ;;  %v6889_v41 = vld [vmem:[#allocation2 + $0x12a] sm:$0xff] }
 0x42e   : > { %v4827_v39 = vpop.f32.mrf.mxu1  ;;  %v6908_v63 = vpack.c.bf16 %v6885_v31, %v6884_v43  ;;  %v6891_v43 = vld [vmem:[#allocation2 + $0x142] sm:$0xff] }
 0x42f   : > { %v4962_v22 = vadd.f32 %v4827_v39, %v11227_v15  ;;  %v11306_v27 = vadd.f32 %v8812_v50, %v4964_v0  ;;  %v5229_v50 = vpop.f32.mrf.mxu0  ;;  %v6886_v0 = vld [vmem:[#allocation2 + $0x10a] sm:$0xff] }
 0x430   : > { %v8765_v60 = vpop.f32.mrf.mxu1  ;;  %v6909_v14 = vpack.c.bf16 %v6887_v13, %v6886_v0 }
 0x431   : > { %v4965_v59 = vadd.f32 %v8765_v60, %v11229_v57  ;;  %v11309_v37 = vadd.f32 %v5197_v25, %v4962_v22  ;;  %v8821_v25 = vpop.f32.mrf.mxu0 }
 0x432   : > { %v4830_v56 = vpop.f32.mrf.mxu1 }
 0x433   : > { %v4963_v19 = vadd.f32 %v4830_v56, %v11232_v47  ;;  %v11312_v16 = vadd.f32 %v8813_v11, %v4965_v59  ;;  %v5232_v47 = vpop.f32.mrf.mxu0 }
 0x434   : > { %v8768_v15 = vpop.f32.mrf.mxu1  ;;  %9055 = vmatmul.mubr.bf16.gmra.mxu1 %v6907_v2 }
 0x435   : > { %v4968_v7 = vadd.f32 %v8768_v15, %v11235_v20  ;;  %9058 = vmatprep.mubr.bf16.mxu1 %v6908_v63  ;;  %v11315_v58 = vadd.f32 %v5200_v55, %v4963_v19  ;;  %v8824_v20 = vpop.f32.mrf.mxu0  ;;  %v6888_v55 = vld [vmem:[#allocation2 + $0x122] sm:$0xff]  ;;  %v6893_v15 = vld [vmem:[#allocation2 + $0x15a] sm:$0xff] }
 0x436   : > { %v4843_v57 = vpop.f32.mrf.mxu1  ;;  %v6910_v31 = vpack.c.bf16 %v6889_v41, %v6888_v55  ;;  %v6895_v55 = vld [vmem:[#allocation2 + $0x172] sm:$0xff] }
 0x437   : > { %v4966_v42 = vadd.f32 %v4843_v57, %v11237_v5  ;;  %v11318_v21 = vadd.f32 %v8816_v62, %v4968_v7  ;;  %v5245_v62 = vpop.f32.mrf.mxu0  ;;  %v6890_v7 = vld [vmem:[#allocation2 + $0x13a] sm:$0xff] }
 0x438   : > { %v8769_v4 = vpop.f32.mrf.mxu1  ;;  %v6911_v13 = vpack.c.bf16 %v6891_v43, %v6890_v7  ;;  %v6899_v7 = vld [vmem:[#allocation2 + $0x1a2] sm:$0xff] }
 0x439   : > { %v4969_v11 = vadd.f32 %v8769_v4, %v11239_v49  ;;  %v11321_v39 = vadd.f32 %v5213_v46, %v4966_v42  ;;  %v8825_v46 = vpop.f32.mrf.mxu0 }
 0x43a   : > { %v4846_v22 = vpop.f32.mrf.mxu1 }
 0x43b   : > { %v4967_v60 = vadd.f32 %v4846_v22, %v11242_v44  ;;  %v11324_v59 = vadd.f32 %v8817_v51, %v4969_v11  ;;  %v5248_v44 = vpop.f32.mrf.mxu0 }
 0x43c   : > { %v8772_v5 = vpop.f32.mrf.mxu1  ;;  %9059 = vmatmul.mubr.bf16.gmra.mxu1 %v6909_v14 }
 0x43d   : > { %v4972_v26 = vadd.f32 %v8772_v5, %v11245_v24  ;;  %9062 = vmatprep.mubr.bf16.mxu1 %v6910_v31  ;;  %v11327_v56 = vadd.f32 %v5216_v54, %v4967_v60  ;;  %v8828_v24 = vpop.f32.mrf.mxu0  ;;  %v6892_v54 = vld [vmem:[#allocation2 + $0x152] sm:$0xff]  ;;  %v6894_v5 = vld [vmem:[#allocation2 + $0x16a] sm:$0xff] }
 0x43e   : > { %v4859_v49 = vpop.f32.mrf.mxu1  ;;  %v6912_v41 = vpack.c.bf16 %v6893_v15, %v6892_v54  ;;  %v6898_v54 = vld [vmem:[#allocation2 + $0x19a] sm:$0xff] }
 0x43f   : > { %v4970_v2 = vadd.f32 %v4859_v49, %v11247_v18  ;;  %v11330_v19 = vadd.f32 %v8820_v33, %v4972_v26  ;;  %v5261_v33 = vpop.f32.mrf.mxu0 }
 0x440   : > { %v8773_v63 = vpop.f32.mrf.mxu1 }
 0x441   : > { %v4973_v51 = vadd.f32 %v8773_v63, %v11249_v34  ;;  %v11333_v57 = vadd.f32 %v5229_v50, %v4970_v2  ;;  %v8829_v50 = vpop.f32.mrf.mxu0 }
 0x442   : > { %v4862_v42 = vpop.f32.mrf.mxu1 }
 0x443   : > { %v4971_v4 = vadd.f32 %v4862_v42, %v11252_v35  ;;  %v11336_v11 = vadd.f32 %v8821_v25, %v4973_v51  ;;  %v5264_v35 = vpop.f32.mrf.mxu0 }
 0x444   : > { %v8776_v18 = vpop.f32.mrf.mxu1  ;;  %9063 = vmatmul.mubr.bf16.gmra.mxu1 %v6911_v13 }
 0x445   : > { %v4976_v0 = vadd.f32 %v8776_v18, %v11255_v53  ;;  %9066 = vmatprep.mubr.bf16.mxu1 %v6912_v41  ;;  %v11339_v22 = vadd.f32 %v5232_v47, %v4971_v4  ;;  %v8832_v2 = vpop.f32.mrf.mxu0  ;;  %v6913_v53 = vpack.c.bf16 %v6895_v55, %v6894_v5  ;;  %v6915_v18 = vpack.c.bf16 %v6899_v7, %v6898_v54 }
 0x446   : > { %v4875_v34 = vpop.f32.mrf.mxu1 }
 0x447   : > { %v4974_v14 = vadd.f32 %v4875_v34, %v11257_v28  ;;  %v11342_v60 = vadd.f32 %v8824_v20, %v4976_v0  ;;  %v5277_v28 = vpop.f32.mrf.mxu0 }
 0x448   : > { %v8777_v31 = vpop.f32.mrf.mxu1 }
 0x449   : > { %v4977_v25 = vadd.f32 %v8777_v31, %v11259_v61  ;;  %v11345_v26 = vadd.f32 %v5245_v62, %v4974_v14  ;;  %v8833_v51 = vpop.f32.mrf.mxu0 }
 0x44a   : > { %v4878_v49 = vpop.f32.mrf.mxu1 }
 0x44b   : > { %v4975_v47 = vadd.f32 %v4878_v49, %v11261_v36  ;;  %v11348_v43 = vadd.f32 %v8825_v46, %v4977_v25  ;;  %v5280_v36 = vpop.f32.mrf.mxu0 }
 0x44c   : > { %v8780_v63 = vpop.f32.mrf.mxu1  ;;  %9067 = vmatmul.mubr.bf16.gmra.mxu1 %v6913_v53 }
 0x44d   : > { %v4980_v20 = vadd.f32 %v8780_v63, %v11263_v40  ;;  %9070 = vmatprep.mubr.bf16.mxu1 %v11187_v45  ;;  %v11352_v15 = vadd.f32 %v5248_v44, %v4975_v47  ;;  %v8900_v40 = vpop.f32.mrf.mxu0 }
 0x44e   : > { %v4891_v61 = vpop.f32.mrf.mxu1 }
 0x44f   : > { %v4978_v62 = vadd.f32 %v4891_v61, %v11266_v10  ;;  %v11355_v42 = vadd.f32 %v8828_v24, %v4980_v20  ;;  %v5905_v10 = vpop.f32.mrf.mxu0 }
 0x450   : > { %v8781_v13 = vpop.f32.mrf.mxu1 }
 0x451   : > { %v4981_v46 = vadd.f32 %v8781_v13, %v11268_v12  ;;  %v11358_v4 = vadd.f32 %v5261_v33, %v4978_v62  ;;  %v8901_v55 = vpop.f32.mrf.mxu0 }
 0x452   : > { %v4894_v41 = vpop.f32.mrf.mxu1 }
 0x453   : > { %v4979_v45 = vadd.f32 %v4894_v41, %v11270_v29  ;;  %v11361_v44 = vadd.f32 %v8829_v50, %v4981_v46  ;;  %v11369_v25 = vpop.f32.mrf.mxu0 }
 0x454   : > { %v8784_v0 = vpop.f32.mrf.mxu1  ;;  %9071 = vmatmul.mubr.bf16.gmra.mxu1 %v6915_v18 }
 0x455   : > { %v4984_v24 = vadd.f32 %v8784_v0, %v11272_v6  ;;  %v11364_v34 = vadd.f32 %v5264_v35, %v4979_v45  ;;  %v8904_v49 = vpop.f32.mrf.mxu0 }
 0x456   : > { %v4907_v14 = vpop.f32.mrf.mxu1 }
 0x457   : > { %v4982_v12 = vadd.f32 %v4907_v14, %v11274_v38  ;;  %v11367_v33 = vadd.f32 %v8832_v2, %v4984_v24  ;;  %v11377_v47 = vpop.f32.mrf.mxu0 }
 0x458   : > { %v8785_v31 = vpop.f32.mrf.mxu1 }
 0x459   : > { %v4985_v29 = vadd.f32 %v8785_v31, %v11276_v48  ;;  %v11372_v50 = vadd.f32 %v5277_v28, %v4982_v12  ;;  %v8905_v20 = vpop.f32.mrf.mxu0 }
 0x45a   : > { %v4910_v5 = vpop.f32.mrf.mxu1 }
 0x45b   : > { %v4983_v53 = vadd.f32 %v4910_v5, %v11278_v3  ;;  %v11375_v6 = vadd.f32 %v8833_v51, %v4985_v29  ;;  %v11385_v62 = vpop.f32.mrf.mxu0 }
 0x45c   : > { %v8852_v35 = vpop.f32.mrf.mxu1 }
 0x45d   : > { %v5696_v38 = vadd.f32 %v8852_v35, %v11282_v1  ;;  %v11380_v2 = vadd.f32 %v5280_v36, %v4983_v53  ;;  %v8908_v13 = vpop.f32.mrf.mxu0 }
 0x45e   : > { %v5535_v63 = vpop.f32.mrf.mxu1 }
 0x45f   : > { %v5694_v61 = vadd.f32 %v5535_v63, %v11285_v23  ;;  %v11383_v48 = vadd.f32 %v8900_v40, %v5696_v38  ;;  %v11395_v54 = vpop.f32.mrf.mxu0 }
 0x460   : > { %v8853_v28 = vpop.f32.mrf.mxu1 }
 0x461   : > { %v5697_v3 = vadd.f32 %v8853_v28, %v11288_v8  ;;  %v11388_v51 = vadd.f32 %v5905_v10, %v5694_v61  ;;  %v8909_v40 = vpop.f32.mrf.mxu0 }
 0x462   : > { %v5538_v7 = vpop.f32.mrf.mxu1 }
 0x463   : > { %v11391_v46 = vadd.f32 %v5538_v7, %v11291_v9  ;;  %v11393_v1 = vadd.f32 %v8901_v55, %v5697_v3  ;;  %v11403_v0 = vpop.f32.mrf.mxu0 }
 0x464   : > { %v8856_v36 = vpop.f32.mrf.mxu1 }
 0x465   : > { %v5700_v23 = vadd.f32 %v8856_v36, %v11294_v30  ;;  %v8912_v24 = vpop.f32.mrf.mxu0 }
 0x466   : > { %v5551_v41 = vpop.f32.mrf.mxu1 }
 0x467   : > { %v11399_v18 = vadd.f32 %v5551_v41, %v11297_v32  ;;  %v11401_v8 = vadd.f32 %v8904_v49, %v5700_v23  ;;  %v11411_v12 = vpop.f32.mrf.mxu0 }
 0x468   : > { %v8857_v45 = vpop.f32.mrf.mxu1 }
 0x469   : > { %v5701_v9 = vadd.f32 %v8857_v45, %v11300_v52  ;;  %v8913_v29 = vpop.f32.mrf.mxu0 }
 0x46a   : > { %v5554_v10 = vpop.f32.mrf.mxu1 }
 0x46b   : > { %v11407_v14 = vadd.f32 %v5554_v10, %v11303_v17  ;;  %v11409_v55 = vadd.f32 %v8905_v20, %v5701_v9  ;;  %v11419_v53 = vpop.f32.mrf.mxu0 }
 0x46c   : > { %v8860_v30 = vpop.f32.mrf.mxu1 }
 0x46d   : > { %v5704_v32 = vadd.f32 %v8860_v30, %v11306_v27  ;;  %v8916_v38 = vpop.f32.mrf.mxu0 }
 0x46e   : > { %v5567_v31 = vpop.f32.mrf.mxu1 }
 0x46f   : > { %v11415_v5 = vadd.f32 %v5567_v31, %v11309_v37  ;;  %v11417_v49 = vadd.f32 %v8908_v13, %v5704_v32  ;;  %v11427_v61 = vpop.f32.mrf.mxu0 }
 0x470   : > { %v8861_v52 = vpop.f32.mrf.mxu1 }
 0x471   : > { %v5705_v17 = vadd.f32 %v8861_v52, %v11312_v16  ;;  %v8917_v3 = vpop.f32.mrf.mxu0 }
 0x472   : > { %v5570_v35 = vpop.f32.mrf.mxu1 }
 0x473   : > { %v11423_v63 = vadd.f32 %v5570_v35, %v11315_v58  ;;  %v11425_v20 = vadd.f32 %v8909_v40, %v5705_v17  ;;  %v11435_v36 = vpop.f32.mrf.mxu0 }
 0x474   : > { %v8864_v27 = vpop.f32.mrf.mxu1 }
 0x475   : > { %v5708_v37 = vadd.f32 %v8864_v27, %v11318_v21  ;;  %v8920_v41 = vpop.f32.mrf.mxu0 }
 0x476   : > { %v5583_v28 = vpop.f32.mrf.mxu1 }
 0x477   : > { %v11431_v7 = vadd.f32 %v5583_v28, %v11321_v39  ;;  %v11433_v13 = vadd.f32 %v8912_v24, %v5708_v37  ;;  %v11443_v9 = vpop.f32.mrf.mxu0 }
 0x478   : > { %v8865_v16 = vpop.f32.mrf.mxu1  ;;  %12259 = vst [vmem:[#allocation77_spill] sm:$0xff] %v11443_v9 }
 0x479   : > { %v5709_v58 = vadd.f32 %v8865_v16, %v11324_v59  ;;  %v8921_v24 = vpop.f32.mrf.mxu0 }
 0x47a   : > { %v5586_v23 = vpop.f32.mrf.mxu1 }
 0x47b   : > { %v11439_v40 = vadd.f32 %v5586_v23, %v11327_v56  ;;  %v11441_v45 = vadd.f32 %v8913_v29, %v5709_v58  ;;  %v11451_v31 = vpop.f32.mrf.mxu0 }
 0x47c   : > { %v8868_v21 = vpop.f32.mrf.mxu1  ;;  %12260 = vst [vmem:[#allocation52_spill] sm:$0xff] %v11451_v31 }
 0x47d   : > { %v5712_v39 = vadd.f32 %v8868_v21, %v11330_v19  ;;  %v8924_v29 = vpop.f32.mrf.mxu0 }
 0x47e   : > { %v5599_v10 = vpop.f32.mrf.mxu1 }
 0x47f   : > { %v11447_v30 = vadd.f32 %v5599_v10, %v11333_v57  ;;  %v11449_v32 = vadd.f32 %v8916_v38, %v5712_v39  ;;  %v11459_v27 = vpop.f32.mrf.mxu0 }
 0x480   : > { %v8869_v59 = vpop.f32.mrf.mxu1  ;;  %12261 = vst [vmem:[#allocation75_spill] sm:$0xff] %v11459_v27 }
 0x481   : > { %v5713_v56 = vadd.f32 %v8869_v59, %v11336_v11  ;;  %v8925_v38 = vpop.f32.mrf.mxu0 }
 0x482   : > { %v5602_v52 = vpop.f32.mrf.mxu1 }
 0x483   : > { %v11455_v17 = vadd.f32 %v5602_v52, %v11339_v22  ;;  %v11457_v35 = vadd.f32 %v8917_v3, %v5713_v56  ;;  %v11467_v58 = vpop.f32.mrf.mxu0 }
 0x484   : > { %v8872_v19 = vpop.f32.mrf.mxu1  ;;  %12263 = vst [vmem:[#allocation47_spill] sm:$0xff] %v11467_v58 }
 0x485   : > { %v5716_v57 = vadd.f32 %v8872_v19, %v11342_v60  ;;  %v8928_v60 = vpop.f32.mrf.mxu0 }
 0x486   : > { %v5615_v37 = vpop.f32.mrf.mxu1 }
 0x487   : > { %v11463_v28 = vadd.f32 %v5615_v37, %v11345_v26  ;;  %v11465_v16 = vadd.f32 %v8920_v41, %v5716_v57  ;;  %v11481_v56 = vpop.f32.mrf.mxu0 }
 0x488   : > { %v8873_v11 = vpop.f32.mrf.mxu1  ;;  %12266 = vst [vmem:[#allocation54_spill] sm:$0xff] %v11481_v56 }
 0x489   : > { %12262 = vst [vmem:[#allocation79_spill] sm:$0xff] %v11463_v28  ;;  %v5717_v22 = vadd.f32 %v8873_v11, %v11348_v43  ;;  %v8929_v57 = vpop.f32.mrf.mxu0 }
 0x48a   : > { %v5618_v23 = vpop.f32.mrf.mxu1 }
 0x48b   : > { %v11471_v3 = vadd.f32 %v5618_v23, %v11352_v15  ;;  %v11473_v21 = vadd.f32 %v8921_v24, %v5717_v22  ;;  %v11495_v22 = vpop.f32.mrf.mxu0 }
 0x48c   : > { %v8876_v39 = vpop.f32.mrf.mxu1  ;;  %12269 = vst [vmem:[#allocation61_spill] sm:$0xff] %v11495_v22 }
 0x48d   : > { %12264 = vst [vmem:[#allocation46_spill] sm:$0xff] %v11471_v3  ;;  %v5720_v10 = vadd.f32 %v8876_v39, %v11355_v42 }
 0x48e   : > { %v5631_v59 = vpop.f32.mrf.mxu1 }
 0x48f   : > { %v11477_v26 = vadd.f32 %v5631_v59, %v11358_v4  ;;  %v11479_v41 = vadd.f32 %v8924_v29, %v5720_v10  ;;  %v11503_v10 = vpop.f32.mrf.mxu0 }
 0x490   : > { %v8877_v52 = vpop.f32.mrf.mxu1 }
 0x491   : > { %12265 = vst [vmem:[#allocation62_spill] sm:$0xff] %v11477_v26  ;;  %v5721_v43 = vadd.f32 %v8877_v52, %v11361_v44  ;;  %v11511_v52 = vpop.f32.mrf.mxu0 }
 0x492   : > { %v5634_v19 = vpop.f32.mrf.mxu1 }
 0x493   : > { %v11485_v15 = vadd.f32 %v5634_v19, %v11364_v34  ;;  %v11487_v24 = vadd.f32 %v8925_v38, %v5721_v43  ;;  %v11516_v19 = vpop.f32.mrf.mxu0 }
 0x494   : > { %v8880_v37 = vpop.f32.mrf.mxu1 }
 0x495   : > { %12267 = vst [vmem:[#allocation60_spill] sm:$0xff] %v11485_v15  ;;  %v5724_v42 = vadd.f32 %v8880_v37, %v11367_v33 }
 0x496   : > { %v5647_v11 = vpop.f32.mrf.mxu1 }
 0x497   : > { %v11491_v4 = vadd.f32 %v5647_v11, %v11372_v50  ;;  %v11493_v29 = vadd.f32 %v8928_v60, %v5724_v42 }
 0x498   : > { %v8881_v23 = vpop.f32.mrf.mxu1 }
 0x499   : > { %12268 = vst [vmem:[#allocation59_spill] sm:$0xff] %v11491_v4  ;;  %v5725_v44 = vadd.f32 %v8881_v23, %v11375_v6 }
 0x49a   : > { %v5650_v39 = vpop.f32.mrf.mxu1 }
 0x49b   : > { %v11499_v34 = vadd.f32 %v5650_v39, %v11380_v2  ;;  %v11501_v38 = vadd.f32 %v8929_v57, %v5725_v44 }
 0x49c   : > { %v8948_v33 = vpop.f32.mrf.mxu1 }
 0x49d   : > { %12270 = vst [vmem:[#allocation76_spill] sm:$0xff] %v11499_v34  ;;  %v11506_v59 = vadd.f32 %v8948_v33, %v11383_v48  ;;  %v6648_v48 = vpop.f32.mrf.mxu0 }
 0x49e   : > { %v6275_v50 = vpop.f32.mrf.mxu1 }
 0x49f   : > { %v11509_v60 = vadd.f32 %v6275_v50, %v11388_v51  ;;  %v11528_v44 = vpop.f32.mrf.mxu0 }
 0x4a0   : > { %v8949_v43 = vpop.f32.mrf.mxu1 }
 0x4a1   : > { %v11514_v6 = vadd.f32 %v8949_v43, %v11393_v1  ;;  %v11535_v50 = vpop.f32.mrf.mxu0 }
 0x4a2   : > { %v6278_v2 = vpop.f32.mrf.mxu1 }
 0x4a4   : > { %v8952_v57 = vpop.f32.mrf.mxu1 }
 0x4a5   : > { %v11519_v37 = vadd.f32 %v8952_v57, %v11401_v8 }
 0x4a6   : > { %v11521_v42 = vpop.f32.mrf.mxu1 }
 0x4a8   : > { %v8953_v11 = vpop.f32.mrf.mxu1 }
 0x4a9   : > { %v11524_v51 = vadd.f32 %v8953_v11, %v11409_v55  ;;  %v11542_v55 = vpop.f32.mrf.mxu0 }
 0x4aa   : > { %v11526_v23 = vpop.f32.mrf.mxu1 }
 0x4ac   : > { %v8956_v1 = vpop.f32.mrf.mxu1 }
 0x4ad   : > { %v11531_v39 = vadd.f32 %v8956_v1, %v11417_v49  ;;  %v11549_v49 = vpop.f32.mrf.mxu0 }
 0x4ae   : > { %v11533_v33 = vpop.f32.mrf.mxu1 }
 0x4b0   : > { %v8957_v8 = vpop.f32.mrf.mxu1 }
 0x4b1   : > { %v11538_v43 = vadd.f32 %v8957_v8, %v11425_v20  ;;  %v11556_v20 = vpop.f32.mrf.mxu0 }
 0x4b2   : > { %v11540_v57 = vpop.f32.mrf.mxu1 }
 0x4b4   : > { %v8960_v11 = vpop.f32.mrf.mxu1 }
 0x4b5   : > { %v11545_v22 = vadd.f32 %v8960_v11, %v11433_v13  ;;  %v11563_v13 = vpop.f32.mrf.mxu0 }
 0x4b6   : > { %v11547_v34 = vpop.f32.mrf.mxu1 }
 0x4b8   : > { %v8961_v1 = vpop.f32.mrf.mxu1 }
 0x4b9   : > { %v11552_v56 = vadd.f32 %v8961_v1, %v11441_v45  ;;  %v11570_v45 = vpop.f32.mrf.mxu0 }
 0x4ba   : > { %v11554_v4 = vpop.f32.mrf.mxu1 }
 0x4bc   : > { %v8964_v8 = vpop.f32.mrf.mxu1 }
 0x4bd   : > { %v11559_v58 = vadd.f32 %v8964_v8, %v11449_v32  ;;  %v11577_v32 = vpop.f32.mrf.mxu0 }
 0x4be   : > { %v11561_v15 = vpop.f32.mrf.mxu1 }
 0x4bf   : > { %12271 = vst [vmem:[#allocation81_spill] sm:$0xff] %v11559_v58 }
 0x4c0   : > { %v8965_v11 = vpop.f32.mrf.mxu1 }
 0x4c1   : > { %v11566_v27 = vadd.f32 %v8965_v11, %v11457_v35  ;;  %v11584_v35 = vpop.f32.mrf.mxu0 }
 0x4c2   : > { %v11568_v26 = vpop.f32.mrf.mxu1 }
 0x4c3   : > { %12272 = vst [vmem:[#allocation53_spill] sm:$0xff] %v11566_v27 }
 0x4c4   : > { %v8968_v1 = vpop.f32.mrf.mxu1 }
 0x4c5   : > { %v11573_v31 = vadd.f32 %v8968_v1, %v11465_v16  ;;  %v11591_v16 = vpop.f32.mrf.mxu0 }
 0x4c6   : > { %v11575_v3 = vpop.f32.mrf.mxu1 }
 0x4c7   : > { %12273 = vst [vmem:[#allocation78_spill] sm:$0xff] %v11573_v31  ;;  %12274 = vst [vmem:[#allocation83_spill] sm:$0xff] %v11575_v3 }
 0x4c8   : > { %v8969_v8 = vpop.f32.mrf.mxu1 }
 0x4c9   : > { %v11580_v58 = vadd.f32 %v8969_v8, %v11473_v21  ;;  %v11598_v21 = vpop.f32.mrf.mxu0 }
 0x4ca   : > { %v11582_v9 = vpop.f32.mrf.mxu1  ;;  %12281 = vst [vmem:[#allocation65_spill] sm:$0xff] %v11598_v21 }
 0x4cb   : > { %12275 = vst [vmem:[#allocation49_spill] sm:$0xff] %v11580_v58  ;;  %12276 = vst [vmem:[#allocation48_spill] sm:$0xff] %v11582_v9 }
 0x4cc   : > { %v8972_v11 = vpop.f32.mrf.mxu1 }
 0x4cd   : > { %v11587_v27 = vadd.f32 %v8972_v11, %v11479_v41  ;;  %v11605_v41 = vpop.f32.mrf.mxu0 }
 0x4ce   : > { %v11589_v28 = vpop.f32.mrf.mxu1 }
 0x4cf   : > { %12277 = vst [vmem:[#allocation66_spill] sm:$0xff] %v11587_v27  ;;  %12278 = vst [vmem:[#allocation56_spill] sm:$0xff] %v11589_v28 }
 0x4d0   : > { %v8973_v1 = vpop.f32.mrf.mxu1 }
 0x4d1   : > { %v11594_v31 = vadd.f32 %v8973_v1, %v11487_v24  ;;  %v6065_v24 = vadd.f32 %v11369_v25, %v11391_v46  ;;  %v11614_v1 = vpop.f32.mrf.mxu0  ;;  %v6806_v46 = vadd.f32 %v11503_v10, %v11506_v59 }
 0x4d2   : > { %v11596_v3 = vpop.f32.mrf.mxu1 }
 0x4d3   : > { %12279 = vst [vmem:[#allocation64_spill] sm:$0xff] %v11594_v31  ;;  %12280 = vst [vmem:[#allocation63_spill] sm:$0xff] %v11596_v3  ;;  %v6435_v3 = vadd.f32 %v6278_v2, %v6065_v24 }
 0x4d4   : > { %v8976_v8 = vpop.f32.mrf.mxu1 }
 0x4d5   : > { %v11601_v58 = vadd.f32 %v8976_v8, %v11493_v29  ;;  %v11616_v29 = vpop.f32.mrf.mxu0 }
 0x4d6   : > { %v11603_v9 = vpop.f32.mrf.mxu1 }
 0x4d7   : > { %12282 = vst [vmem:[#allocation80_spill] sm:$0xff] %v11601_v58  ;;  %12283 = vst [vmem:[#allocation85_spill] sm:$0xff] %v11603_v9  ;;  %v6068_v58 = vadd.f32 %v11377_v47, %v11399_v18  ;;  %v11631_v9 = vpop.f32.mrf.mxu0 }
 0x4d8   : > { %v8977_v11 = vpop.f32.mrf.mxu1 }
 0x4d9   : > { %v11608_v27 = vadd.f32 %v8977_v11, %v11501_v38  ;;  %v6804_v38 = vadd.f32 %v11511_v52, %v11509_v60  ;;  %v6805_v11 = vadd.f32 %v6648_v48, %v6435_v3  ;;  %v6438_v25 = vadd.f32 %v11521_v42, %v6068_v58  ;;  %v11644_v59 = vpop.f32.mrf.mxu0 }
 0x4da   : > { %v11610_v28 = vpop.f32.mrf.mxu1  ;;  %v6073_v42 = vadd.f32 %v11403_v0, %v11423_v63  ;;  %v6811_v0 = vadd.f32 %v11542_v55, %v11524_v51  ;;  %v6077_v55 = vadd.f32 %v11419_v53, %v11439_v40  ;;  %v6815_v53 = vadd.f32 %v11570_v45, %v11538_v43 }
 0x4db   : > { %12284 = vst [vmem:[#allocation55_spill] sm:$0xff] %v11608_v27  ;;  %12285 = vst [vmem:[#allocation82_spill] sm:$0xff] %v11610_v28  ;;  %v6069_v27 = vadd.f32 %v11385_v62, %v11407_v14  ;;  %v6807_v62 = vadd.f32 %v11516_v19, %v11514_v6  ;;  %v6081_v45 = vadd.f32 %v11435_v36, %v11455_v17 }
 0x4dc   : > { %v9044_v31 = vpop.f32.mrf.mxu1 }
 0x4dd   : > { %v6439_v18 = vadd.f32 %v11526_v23, %v6069_v27  ;;  %v11634_v60 = vadd.f32 %v9044_v31, %v6806_v46  ;;  %v6072_v31 = vadd.f32 %v11395_v54, %v11415_v5  ;;  %v11660_v54 = vpop.f32.mrf.mxu0 }
 0x4de   : > { %v7015_v21 = vpop.f32.mrf.mxu1 }
 0x4df   : > { %v11627_v2 = vadd.f32 %v7015_v21, %v6804_v38  ;;  %v6809_v19 = vadd.f32 %v11549_v49, %v6439_v18  ;;  %v6442_v23 = vadd.f32 %v11533_v33, %v6072_v31  ;;  %v6443_v38 = vadd.f32 %v11540_v57, %v6073_v42 }
 0x4e0   : > { %v9045_v8 = vpop.f32.mrf.mxu1  ;;  %v6076_v57 = vadd.f32 %v11411_v12, %v11431_v7 }
 0x4e1   : > { %v11640_v3 = vadd.f32 %v9045_v8, %v6807_v62  ;;  %v6813_v51 = vadd.f32 %v11577_v32, %v6443_v38 }
 0x4e2   : > { %v7018_v28 = vpop.f32.mrf.mxu1 }
 0x4e3   : > { %v11629_v24 = vadd.f32 %v7018_v28, %v6805_v11  ;;  %v6808_v28 = vadd.f32 %v11535_v50, %v6438_v25  ;;  %v6810_v50 = vadd.f32 %v11528_v44, %v11519_v37  ;;  %v6812_v44 = vadd.f32 %v11563_v13, %v6442_v23  ;;  %v11672_v25 = vpop.f32.mrf.mxu0 }
 0x4e4   : > { %v9048_v47 = vpop.f32.mrf.mxu1  ;;  %v6814_v13 = vadd.f32 %v11556_v20, %v11531_v39 }
 0x4e5   : > { %v7270_v14 = vadd.f32 %v11629_v24, %v11627_v2  ;;  %v11663_v11 = vadd.f32 %v9048_v47, %v6810_v50  ;;  %v11688_v12 = vpop.f32.mrf.mxu0 }
 0x4e6   : > { %v7031_v58 = vpop.f32.mrf.mxu1 }
 0x4e7   : > { %v7271_v10 = vadd.f32 %v7270_v14, %v11634_v60  ;;  %v11648_v27 = vadd.f32 %v7031_v58, %v6808_v28  ;;  %v6446_v14 = vadd.f32 %v11547_v34, %v6076_v57  ;;  %v6447_v28 = vadd.f32 %v11554_v4, %v6077_v55  ;;  %v6728_v31 = vpop.f32.mrf.mxu0 }
 0x4e8   : > { %v9049_v52 = vpop.f32.mrf.mxu1 }
 0x4e9   : > { %v7272_v6 = vadd.f32 %v7271_v10, %v11640_v3  ;;  %v11668_v49 = vadd.f32 %v9049_v52, %v6811_v0  ;;  %v6816_v20 = vadd.f32 %v11591_v16, %v6446_v14  ;;  %v6817_v43 = vadd.f32 %v11605_v41, %v6447_v28  ;;  %v12286_v41 = vld [vmem:[#allocation65_spill] sm:$0xff]  ;;  %v12291_v14 = vld [vmem:[#allocation83_spill] sm:$0xff] }
 0x4ea   : > { %v7034_v48 = vpop.f32.mrf.mxu1  ;;  %v6818_v16 = vadd.f32 %v11584_v35, %v11545_v22  ;;  %v6819_v36 = vadd.f32 %v12286_v41, %v11552_v56 }
 0x4eb   : > { %v7273_v21 = vadd.f32 %v7272_v6, %v11648_v27  ;;  %v11658_v8 = vadd.f32 %v7034_v48, %v6809_v19  ;;  %v6080_v19 = vadd.f32 %v11427_v61, %v11447_v30  ;;  %v11714_v61 = vpop.f32.mrf.mxu0 }
 0x4ec   : > { %v9052_v5 = vpop.f32.mrf.mxu1 }
 0x4ed   : > { %v7274_v63 = vadd.f32 %v7273_v21, %v11658_v8  ;;  %v11691_v52 = vadd.f32 %v9052_v5, %v6814_v13  ;;  %v6450_v23 = vadd.f32 %v11561_v15, %v6080_v19  ;;  %v6451_v5 = vadd.f32 %v11568_v26, %v6081_v45 }
 0x4ee   : > { %v7047_v33 = vpop.f32.mrf.mxu1 }
 0x4ef   : > { %v7275_v37 = vadd.f32 %v7274_v63, %v11663_v11  ;;  %v11676_v47 = vadd.f32 %v7047_v33, %v6812_v44  ;;  %v6820_v35 = vadd.f32 %v11616_v29, %v6450_v23  ;;  %v6741_v63 = vpop.f32.mrf.mxu0  ;;  %v12288_v44 = vld [vmem:[#allocation77_spill] sm:$0xff]  ;;  %v6821_v56 = vadd.f32 %v11644_v59, %v6451_v5 }
 0x4f0   : > { %v9053_v46 = vpop.f32.mrf.mxu1  ;;  %v12294_v59 = vld [vmem:[#allocation53_spill] sm:$0xff] }
 0x4f1   : > { %v7276_v18 = vadd.f32 %v7275_v37, %v11668_v49  ;;  %v11696_v32 = vadd.f32 %v9053_v46, %v6815_v53  ;;  %v12287_v37 = vld [vmem:[#allocation79_spill] sm:$0xff]  ;;  %v9021_v53 = vpop.f32.mrf.mxu0 }
 0x4f2   : > { %v7050_v62 = vpop.f32.mrf.mxu1  ;;  %v6084_v46 = vadd.f32 %v12288_v44, %v12287_v37  ;;  %v12300_v37 = vld [vmem:[#allocation78_spill] sm:$0xff] }
 0x4f3   : > { %v7277_v58 = vadd.f32 %v7276_v18, %v11676_v47  ;;  %v11686_v10 = vadd.f32 %v7050_v62, %v6813_v51  ;;  %v12289_v18 = vld [vmem:[#allocation46_spill] sm:$0xff]  ;;  %v12290_v51 = vld [vmem:[#allocation52_spill] sm:$0xff]  ;;  %v6826_v44 = vadd.f32 %v11660_v54, %v12300_v37 }
 0x4f4   : > { %v9056_v7 = vpop.f32.mrf.mxu1  ;;  %v6085_v55 = vadd.f32 %v12290_v51, %v12289_v18  ;;  %v6454_v13 = vadd.f32 %v12291_v14, %v6084_v46  ;;  %v12301_v18 = vld [vmem:[#allocation63_spill] sm:$0xff] }
 0x4f5   : > { %v7278_v40 = vadd.f32 %v7277_v58, %v11686_v10  ;;  %v11717_v38 = vadd.f32 %v9056_v7, %v6818_v16  ;;  %v12292_v58 = vld [vmem:[#allocation81_spill] sm:$0xff]  ;;  %v12295_v16 = vld [vmem:[#allocation62_spill] sm:$0xff] }
 0x4f6   : > { %v7063_v34 = vpop.f32.mrf.mxu1  ;;  %v6822_v29 = vadd.f32 %v11614_v1, %v12292_v58  ;;  %v6824_v45 = vadd.f32 %v11672_v25, %v6454_v13 }
 0x4f7   : > { %v7279_v39 = vadd.f32 %v7278_v40, %v11691_v52  ;;  %v11702_v4 = vadd.f32 %v7063_v34, %v6816_v20  ;;  %v12293_v34 = vld [vmem:[#allocation48_spill] sm:$0xff] }
 0x4f8   : > { %v9057_v6 = vpop.f32.mrf.mxu1 }
 0x4f9   : > { %v7280_v42 = vadd.f32 %v7279_v39, %v11696_v32  ;;  %v11722_v0 = vadd.f32 %v9057_v6, %v6819_v36  ;;  %v6455_v39 = vadd.f32 %v12293_v34, %v6085_v55  ;;  %v6823_v6 = vadd.f32 %v11631_v9, %v12294_v59  ;;  %v12297_v9 = vld [vmem:[#allocation60_spill] sm:$0xff]  ;;  %v12304_v59 = vld [vmem:[#allocation54_spill] sm:$0xff] }
 0x4fa   : > { %v7066_v48 = vpop.f32.mrf.mxu1 }
 0x4fb   : > { %v7281_v50 = vadd.f32 %v7280_v42, %v11702_v4  ;;  %v11712_v21 = vadd.f32 %v7066_v48, %v6817_v43  ;;  %v6744_v48 = vpop.f32.mrf.mxu0  ;;  %v6825_v36 = vadd.f32 %v6728_v31, %v6455_v39  ;;  %v12302_v31 = vld [vmem:[#allocation49_spill] sm:$0xff]  ;;  %v12303_v39 = vld [vmem:[#allocation59_spill] sm:$0xff] }
 0x4fc   : > { %v9060_v30 = vpop.f32.mrf.mxu1 }
 0x4fd   : > { %v7282_v17 = vadd.f32 %v7281_v50, %v11712_v21  ;;  %v11741_v20 = vadd.f32 %v9060_v30, %v6822_v29  ;;  %v12296_v50 = vld [vmem:[#allocation75_spill] sm:$0xff] }
 0x4fe   : > { %v7079_v15 = vpop.f32.mrf.mxu1  ;;  %v6088_v5 = vadd.f32 %v12296_v50, %v12295_v16 }
 0x4ff   : > { %v7283_v22 = vadd.f32 %v7282_v17, %v11717_v38  ;;  %v11728_v26 = vadd.f32 %v7079_v15, %v6820_v35  ;;  %v12298_v17 = vld [vmem:[#allocation47_spill] sm:$0xff]  ;;  %v12299_v35 = vld [vmem:[#allocation56_spill] sm:$0xff] }
 0x500   : > { %v9061_v33 = vpop.f32.mrf.mxu1  ;;  %v6089_v15 = vadd.f32 %v12298_v17, %v12297_v9 }
 0x501   : > { %v7284_v57 = vadd.f32 %v7283_v22, %v11722_v0  ;;  %v11746_v43 = vadd.f32 %v9061_v33, %v6823_v6  ;;  %v6458_v33 = vadd.f32 %v12299_v35, %v6088_v5  ;;  %v6092_v6 = vadd.f32 %v12304_v59, %v12303_v39 }
 0x502   : > { %v7082_v62 = vpop.f32.mrf.mxu1  ;;  %v6459_v51 = vadd.f32 %v12301_v18, %v6089_v15  ;;  %v12309_v15 = vld [vmem:[#allocation82_spill] sm:$0xff] }
 0x503   : > { %v7285_v7 = vadd.f32 %v7284_v57, %v11728_v26  ;;  %v11738_v28 = vadd.f32 %v7082_v62, %v6821_v56  ;;  %v9024_v57 = vpop.f32.mrf.mxu0  ;;  %v6827_v62 = vadd.f32 %v11688_v12, %v12302_v31  ;;  %v6828_v54 = vadd.f32 %v6741_v63, %v6458_v33  ;;  %v12307_v12 = vld [vmem:[#allocation85_spill] sm:$0xff]  ;;  %v12310_v33 = vld [vmem:[#allocation64_spill] sm:$0xff] }
 0x504   : > { %v9064_v40 = vpop.f32.mrf.mxu1  ;;  %v6462_v5 = vadd.f32 %v12307_v12, %v6092_v6  ;;  %v6831_v37 = vadd.f32 %v9021_v53, %v12310_v33 }
 0x505   : > { %v7286_v19 = vadd.f32 %v7285_v7, %v11738_v28  ;;  %v11764_v55 = vadd.f32 %v9064_v40, %v6826_v44  ;;  %v6757_v7 = vpop.f32.mrf.mxu0  ;;  %v12305_v40 = vld [vmem:[#allocation76_spill] sm:$0xff] }
 0x506   : > { %v7095_v42 = vpop.f32.mrf.mxu1 }
 0x507   : > { %v7287_v1 = vadd.f32 %v7286_v19, %v11741_v20  ;;  %v11752_v41 = vadd.f32 %v7095_v42, %v6824_v45  ;;  %v12306_v45 = vld [vmem:[#allocation61_spill] sm:$0xff]  ;;  %v9025_v63 = vpop.f32.mrf.mxu0 }
 0x508   : > { %v9065_v23 = vpop.f32.mrf.mxu1  ;;  %v6093_v16 = vadd.f32 %v12306_v45, %v12305_v40 }
 0x509   : > { %v7288_v30 = vadd.f32 %v7287_v1, %v11746_v43  ;;  %v7197_v58 = vadd.f32 %v9065_v23, %v6827_v62  ;;  %v6829_v1 = vadd.f32 %v6744_v48, %v6459_v51  ;;  %v6832_v51 = vadd.f32 %v6757_v7, %v6462_v5  ;;  %v6760_v31 = vpop.f32.mrf.mxu0 }
 0x50a   : > { %v7098_v22 = vpop.f32.mrf.mxu1 }
 0x50b   : > { %v7289_v25 = vadd.f32 %v7288_v30, %v11752_v41  ;;  %v11761_v46 = vadd.f32 %v7098_v22, %v6825_v36  ;;  %v12308_v30 = vld [vmem:[#allocation66_spill] sm:$0xff]  ;;  %v6463_v22 = vadd.f32 %v12309_v15, %v6093_v16 }
 0x50c   : > { %v9068_v56 = vpop.f32.mrf.mxu1  ;;  %v6830_v23 = vadd.f32 %v11714_v61, %v12308_v30 }
 0x50d   : > { %v7290_v14 = vadd.f32 %v7289_v25, %v11761_v46 }
 0x50e   : > { %v7111_v13 = vpop.f32.mrf.mxu1  ;;  %v7200_v35 = vadd.f32 %v9068_v56, %v6830_v23 }
 0x50f   : > { %v7291_v29 = vadd.f32 %v7290_v14, %v11764_v55  ;;  %v7198_v19 = vadd.f32 %v7111_v13, %v6828_v54  ;;  %v12311_v54 = vld [vmem:[#allocation80_spill] sm:$0xff] }
 0x510   : > { %v9069_v34 = vpop.f32.mrf.mxu1  ;;  %v6834_v39 = vadd.f32 %v9024_v57, %v12311_v54 }
 0x511   : > { %v7292_v42 = vadd.f32 %v7291_v29, %v7197_v58  ;;  %v7201_v25 = vadd.f32 %v9069_v34, %v6831_v37  ;;  %v6833_v29 = vadd.f32 %v6760_v31, %v6463_v22 }
 0x512   : > { %v7114_v50 = vpop.f32.mrf.mxu1 }
 0x513   : > { %v7293_v36 = vadd.f32 %v7292_v42, %v7198_v19  ;;  %v7199_v9 = vadd.f32 %v7114_v50, %v6829_v1  ;;  %v12312_v1 = vld [vmem:[#allocation55_spill] sm:$0xff] }
 0x514   : > { %v9072_v17 = vpop.f32.mrf.mxu1  ;;  %v6835_v56 = vadd.f32 %v9025_v63, %v12312_v1 }
 0x515   : > { %v7294_v44 = vadd.f32 %v7293_v36, %v7199_v9  ;;  %v7204_v42 = vadd.f32 %v9072_v17, %v6834_v39 }
 0x516   : > { %v7127_v48 = vpop.f32.mrf.mxu1 }
 0x517   : > { %v7295_v18 = vadd.f32 %v7294_v44, %v7200_v35  ;;  %v7202_v14 = vadd.f32 %v7127_v48, %v6832_v51 }
 0x518   : > { %v9073_v62 = vpop.f32.mrf.mxu1 }
 0x519   : > { %v7296_v13 = vadd.f32 %v7295_v18, %v7201_v25  ;;  %v7205_v53 = vadd.f32 %v9073_v62, %v6835_v56 }
 0x51a   : > { %v7130_v61 = vpop.f32.mrf.mxu1 }
 0x51b   : > { %v7297_v59 = vadd.f32 %v7296_v13, %v7202_v14  ;;  %v7203_v6 = vadd.f32 %v7130_v61, %v6833_v29 }
 0x51d   : > { %v7298_v40 = vadd.f32 %v7297_v59, %v7203_v6 }
 0x51f   : > { %v7299_v45 = vadd.f32 %v7298_v40, %v7204_v42 }
 0x521   : > { %v7300_v16 = vadd.f32 %v7299_v45, %v7205_v53 }
 0x523   : > { %v7301_v34 = vrot.slane %v7300_v16, 4 }
 0x525   : > { %v7302_v50 = vadd.f32 %v7301_v34, %v7300_v16 }
 0x527   : > { %v7303_v7 = vrot.slane %v7302_v50, 2 }
 0x529   : > { %v7304_v12 = vadd.f32 %v7303_v7, %v7302_v50 }
 0x52b   : > { %v7305_v5 = vrot.slane %v7304_v12, 1 }
 0x52d   : > { %v7306_v30 = vadd.f32 %v7305_v5, %v7304_v12 }
 0x52f   : > { %v7307_v23 = vmul.f32 0.00390625, %v7306_v30 }
 0x531   : > { %v11782_v36 = vsub.f32 %v11676_v47, %v7307_v23  ;;  %v11785_v57 = vsub.f32 %v11686_v10, %v7307_v23  ;;  %v11788_v17 = vsub.f32 %v11691_v52, %v7307_v23  ;;  %v11791_v63 = vsub.f32 %v11696_v32, %v7307_v23 }
 0x532   : > { %v11794_v15 = vsub.f32 %v11702_v4, %v7307_v23  ;;  %v11797_v22 = vsub.f32 %v11712_v21, %v7307_v23  ;;  %v11800_v33 = vsub.f32 %v11717_v38, %v7307_v23  ;;  %v11803_v47 = vsub.f32 %v11722_v0, %v7307_v23 }
 0x533   : > { %v11806_v10 = vsub.f32 %v11728_v26, %v7307_v23  ;;  %v11809_v52 = vsub.f32 %v11738_v28, %v7307_v23  ;;  %v11812_v32 = vsub.f32 %v11741_v20, %v7307_v23  ;;  %v11815_v4 = vsub.f32 %v11746_v43, %v7307_v23 }
 0x534   : > { %v11818_v21 = vsub.f32 %v11752_v41, %v7307_v23  ;;  %v11821_v38 = vsub.f32 %v11761_v46, %v7307_v23  ;;  %v11824_v0 = vsub.f32 %v11764_v55, %v7307_v23  ;;  %v11826_v26 = vsub.f32 %v7197_v58, %v7307_v23 }
 0x535   : > { %v11828_v37 = vsub.f32 %v7198_v19, %v7307_v23  ;;  %v11830_v28 = vsub.f32 %v7199_v9, %v7307_v23  ;;  %v11832_v20 = vsub.f32 %v7200_v35, %v7307_v23  ;;  %v11834_v44 = vsub.f32 %v7201_v25, %v7307_v23 }
 0x536   : > { %v11836_v43 = vsub.f32 %v7202_v14, %v7307_v23  ;;  %v11838_v41 = vsub.f32 %v7203_v6, %v7307_v23  ;;  %v11840_v48 = vsub.f32 %v7204_v42, %v7307_v23  ;;  %v11842_v46 = vsub.f32 %v7205_v53, %v7307_v23 }
 0x537   : > { %v11845_v55 = vsub.f32 %v11627_v2, %v7307_v23  ;;  %v11848_v58 = vsub.f32 %v11629_v24, %v7307_v23  ;;  %v11851_v19 = vsub.f32 %v11634_v60, %v7307_v23  ;;  %v11858_v25 = vsub.f32 %v11640_v3, %v7307_v23 }
 0x538   : > { %v11861_v18 = vsub.f32 %v11648_v27, %v7307_v23  ;;  %v11866_v51 = vsub.f32 %v11658_v8, %v7307_v23  ;;  %v11871_v62 = vsub.f32 %v11663_v11, %v7307_v23  ;;  %v11876_v27 = vsub.f32 %v11668_v49, %v7307_v23 }
 0x539   : > { %v7340_v9 = vmul.f32 %v11845_v55, %v11845_v55  ;;  %v7341_v35 = vmul.f32 %v11848_v58, %v11848_v58  ;;  %v7342_v2 = vmul.f32 %v11851_v19, %v11851_v19  ;;  %v7343_v60 = vmul.f32 %v11858_v25, %v11858_v25 }
 0x53a   : > { %v7344_v3 = vmul.f32 %v11861_v18, %v11861_v18  ;;  %v7345_v13 = vmul.f32 %v11866_v51, %v11866_v51  ;;  %v7346_v8 = vmul.f32 %v11871_v62, %v11871_v62  ;;  %v7347_v54 = vmul.f32 %v11876_v27, %v11876_v27 }
 0x53b   : > { %v7372_v24 = vadd.f32 %v7341_v35, %v7340_v9  ;;  %v7348_v39 = vmul.f32 %v11782_v36, %v11782_v36  ;;  %v7349_v49 = vmul.f32 %v11785_v57, %v11785_v57  ;;  %v7350_v42 = vmul.f32 %v11788_v17, %v11788_v17 }
 0x53c   : > { %v7351_v56 = vmul.f32 %v11791_v63, %v11791_v63  ;;  %v7352_v53 = vmul.f32 %v11794_v15, %v11794_v15  ;;  %v7353_v16 = vmul.f32 %v11797_v22, %v11797_v22  ;;  %v7354_v50 = vmul.f32 %v11800_v33, %v11800_v33 }
 0x53d   : > { %v7373_v31 = vadd.f32 %v7372_v24, %v7342_v2  ;;  %v7355_v12 = vmul.f32 %v11803_v47, %v11803_v47  ;;  %v7356_v30 = vmul.f32 %v11806_v10, %v11806_v10  ;;  %v7357_v9 = vmul.f32 %v11809_v52, %v11809_v52 }
 0x53e   : > { %v7358_v2 = vmul.f32 %v11812_v32, %v11812_v32 }
 0x53f   : > { %v7374_v14 = vadd.f32 %v7373_v31, %v7343_v60  ;;  %v7359_v60 = vmul.f32 %v11815_v4, %v11815_v4 }
 0x541   : > { %v7375_v29 = vadd.f32 %v7374_v14, %v7344_v3  ;;  %v7360_v3 = vmul.f32 %v11818_v21, %v11818_v21 }
 0x543   : > { %v7376_v61 = vadd.f32 %v7375_v29, %v7345_v13  ;;  %v7361_v13 = vmul.f32 %v11821_v38, %v11821_v38 }
 0x545   : > { %v7377_v11 = vadd.f32 %v7376_v61, %v7346_v8  ;;  %v7362_v8 = vmul.f32 %v11824_v0, %v11824_v0 }
 0x547   : > { %v7378_v59 = vadd.f32 %v7377_v11, %v7347_v54  ;;  %v7363_v54 = vmul.f32 %v11826_v26, %v11826_v26 }
 0x549   : > { %v7379_v6 = vadd.f32 %v7378_v59, %v7348_v39  ;;  %v7364_v39 = vmul.f32 %v11828_v37, %v11828_v37 }
 0x54b   : > { %v7380_v1 = vadd.f32 %v7379_v6, %v7349_v49  ;;  %v7365_v49 = vmul.f32 %v11830_v28, %v11830_v28 }
 0x54d   : > { %v7381_v40 = vadd.f32 %v7380_v1, %v7350_v42  ;;  %v7366_v42 = vmul.f32 %v11832_v20, %v11832_v20 }
 0x54f   : > { %v7382_v45 = vadd.f32 %v7381_v40, %v7351_v56  ;;  %v7367_v56 = vmul.f32 %v11834_v44, %v11834_v44 }
 0x551   : > { %v7383_v34 = vadd.f32 %v7382_v45, %v7352_v53  ;;  %v7368_v53 = vmul.f32 %v11836_v43, %v11836_v43 }
 0x553   : > { %v7384_v7 = vadd.f32 %v7383_v34, %v7353_v16  ;;  %v7369_v16 = vmul.f32 %v11838_v41, %v11838_v41 }
 0x555   : > { %v7385_v5 = vadd.f32 %v7384_v7, %v7354_v50  ;;  %v7370_v50 = vmul.f32 %v11840_v48, %v11840_v48 }
 0x557   : > { %v7386_v23 = vadd.f32 %v7385_v5, %v7355_v12  ;;  %v7371_v12 = vmul.f32 %v11842_v46, %v11842_v46 }
 0x559   : > { %v7387_v35 = vadd.f32 %v7386_v23, %v7356_v30 }
 0x55b   : > { %v7388_v24 = vadd.f32 %v7387_v35, %v7357_v9 }
 0x55d   : > { %v7389_v31 = vadd.f32 %v7388_v24, %v7358_v2 }
 0x55f   : > { %v7390_v14 = vadd.f32 %v7389_v31, %v7359_v60 }
 0x561   : > { %v7391_v29 = vadd.f32 %v7390_v14, %v7360_v3 }
 0x563   : > { %v7392_v61 = vadd.f32 %v7391_v29, %v7361_v13 }
 0x565   : > { %v7393_v11 = vadd.f32 %v7392_v61, %v7362_v8 }
 0x567   : > { %v7394_v59 = vadd.f32 %v7393_v11, %v7363_v54 }
 0x569   : > { %v7395_v6 = vadd.f32 %v7394_v59, %v7364_v39 }
 0x56b   : > { %v7396_v1 = vadd.f32 %v7395_v6, %v7365_v49  ;;  %v12313_v49 = vld [vmem:[#allocation43_spill] sm:$0xff] }
 0x56d   : > { %v7397_v40 = vadd.f32 %v7396_v1, %v7366_v42 }
 0x56f   : > { %v7398_v45 = vadd.f32 %v7397_v40, %v7367_v56 }
 0x571   : > { %v7399_v34 = vadd.f32 %v7398_v45, %v7368_v53  ;;  %v12318_v53 = vld [vmem:[#allocation18_spill] sm:$0xff]  ;;  %v12319_v45 = vld [vmem:[#allocation19_spill] sm:$0xff] }
 0x573   : > { %v7400_v7 = vadd.f32 %v7399_v34, %v7369_v16  ;;  %v12320_v16 = vld [vmem:[#allocation20_spill] sm:$0xff]  ;;  %v12321_v34 = vld [vmem:[#allocation21_spill] sm:$0xff] }
 0x575   : > { %v7401_v5 = vadd.f32 %v7400_v7, %v7370_v50  ;;  %v12322_v50 = vld [vmem:[#allocation22_spill] sm:$0xff] }
 0x577   : > { %v7402_v30 = vadd.f32 %v7401_v5, %v7371_v12  ;;  %v12323_v12 = vld [vmem:[#allocation23_spill] sm:$0xff] }
 0x579   : > { %v7403_v23 = vrot.slane %v7402_v30, 4 }
 0x57b   : > { %v7404_v9 = vadd.f32 %v7403_v23, %v7402_v30  ;;  %v12324_v30 = vld [vmem:[#allocation24_spill] sm:$0xff] }
 0x57d   : > { %v7405_v35 = vrot.slane %v7404_v9, 2 }
 0x57f   : > { %v7406_v2 = vadd.f32 %v7405_v35, %v7404_v9  ;;  %v12325_v9 = vld [vmem:[#allocation25_spill] sm:$0xff] }
 0x581   : > { %v7407_v24 = vrot.slane %v7406_v2, 1 }
 0x583   : > { %v7408_v60 = vadd.f32 %v7407_v24, %v7406_v2  ;;  %v12326_v2 = vld [vmem:[#allocation26_spill] sm:$0xff] }
 0x585   : > { %v7409_v31 = vmul.f32 0.00390625, %v7408_v60  ;;  %v12327_v60 = vld [vmem:[#allocation27_spill] sm:$0xff] }
 0x587   : > { %v7410_v3 = vadd.f32 1e-05, %v7409_v31 }
 0x589   : > { %9293 = vrsqrt.f32 %v7410_v3  ;;  %v12328_v3 = vld [vmem:[#allocation28_spill] sm:$0xff] }
 0x596   : > { %v9294_v14 = vpop.eup %9293 }
 0x597   : > { %v7441_v13 = vmul.f32 %v9294_v14, %v11838_v41  ;;  %v7412_v29 = vmul.f32 %v9294_v14, %v11845_v55  ;;  %v7413_v8 = vmul.f32 %v9294_v14, %v11848_v58  ;;  %v7414_v61 = vmul.f32 %v9294_v14, %v11851_v19 }
 0x598   : > { %v7415_v54 = vmul.f32 %v9294_v14, %v11858_v25  ;;  %v7416_v11 = vmul.f32 %v9294_v14, %v11861_v18  ;;  %v7417_v39 = vmul.f32 %v9294_v14, %v11866_v51  ;;  %v7418_v59 = vmul.f32 %v9294_v14, %v11871_v62 }
 0x599   : > { %v7473_v6 = vadd.f32 %v7441_v13, %v12313_v49  ;;  %v7419_v42 = vmul.f32 %v9294_v14, %v11876_v27  ;;  %v7420_v41 = vmul.f32 %v9294_v14, %v11782_v36  ;;  %v7421_v55 = vmul.f32 %v9294_v14, %v11785_v57  ;;  %v12329_v13 = vld [vmem:[#allocation29_spill] sm:$0xff] }
 0x59a   : > { %v7422_v58 = vmul.f32 %v9294_v14, %v11788_v17  ;;  %v7423_v19 = vmul.f32 %v9294_v14, %v11791_v63  ;;  %v7424_v25 = vmul.f32 %v9294_v14, %v11794_v15  ;;  %v7425_v18 = vmul.f32 %v9294_v14, %v11797_v22  ;;  %v12333_v49 = vld [vmem:[#allocation33_spill] sm:$0xff] }
 0x59b   : > { %7505 = vst [vmem:[%s11950_s18 + $0xe8] sm:$0xff] %v7473_v6  ;;  %v7426_v51 = vmul.f32 %v9294_v14, %v11800_v33  ;;  %v7427_v62 = vmul.f32 %v9294_v14, %v11803_v47  ;;  %v7428_v36 = vmul.f32 %v9294_v14, %v11806_v10  ;;  %v7429_v57 = vmul.f32 %v9294_v14, %v11809_v52 }
 0x59c   : > { %v7430_v17 = vmul.f32 %v9294_v14, %v11812_v32  ;;  %v7431_v63 = vmul.f32 %v9294_v14, %v11815_v4  ;;  %v7432_v15 = vmul.f32 %v9294_v14, %v11818_v21  ;;  %v7433_v22 = vmul.f32 %v9294_v14, %v11821_v38  ;;  %v12314_v38 = vld [vmem:[#allocation16_spill] sm:$0xff] }
 0x59d   : > { %v7434_v27 = vmul.f32 %v9294_v14, %v11824_v0  ;;  %v7435_v1 = vmul.f32 %v9294_v14, %v11826_v26  ;;  %v7436_v33 = vmul.f32 %v9294_v14, %v11828_v37  ;;  %v7437_v47 = vmul.f32 %v9294_v14, %v11830_v28  ;;  %v12315_v26 = vld [vmem:[#allocation17_spill] sm:$0xff]  ;;  %v12316_v37 = vld [vmem:[#allocation14_spill] sm:$0xff]  ;;  %v12317_v28 = vld [vmem:[#allocation15_spill] sm:$0xff] }
 0x59e   : > { %v7438_v10 = vmul.f32 %v9294_v14, %v11832_v20  ;;  %v7439_v52 = vmul.f32 %v9294_v14, %v11834_v44  ;;  %v7440_v32 = vmul.f32 %v9294_v14, %v11836_v43  ;;  %v7442_v4 = vmul.f32 %v9294_v14, %v11840_v48 }
 0x59f   : > { %v7443_v21 = vmul.f32 %v9294_v14, %v11842_v46  ;;  %v7444_v0 = vadd.f32 %v7412_v29, %v12314_v38  ;;  %v7445_v56 = vadd.f32 %v7413_v8, %v12315_v26  ;;  %v7446_v40 = vadd.f32 %v7414_v61, %v12316_v37  ;;  %v12330_v8 = vld [vmem:[#allocation30_spill] sm:$0xff]  ;;  %v12344_v38 = vld [vmem:[#allocation45_spill] sm:$0xff] }
 0x5a0   : > { %v7447_v20 = vadd.f32 %v7415_v54, %v12317_v28  ;;  %v7448_v44 = vadd.f32 %v7416_v11, %v12318_v53  ;;  %v7449_v43 = vadd.f32 %v7417_v39, %v12319_v45  ;;  %v7450_v48 = vadd.f32 %v7418_v59, %v12320_v16  ;;  %v12331_v54 = vld [vmem:[#allocation31_spill] sm:$0xff]  ;;  %v12332_v39 = vld [vmem:[#allocation32_spill] sm:$0xff] }
 0x5a1   : > { %v7451_v46 = vadd.f32 %v7419_v42, %v12321_v34  ;;  %v7452_v7 = vadd.f32 %v7420_v41, %v12322_v50  ;;  %v7453_v5 = vadd.f32 %v7421_v55, %v12323_v12  ;;  %v7454_v23 = vadd.f32 %v7422_v58, %v12324_v30  ;;  %7476 = vst [vmem:[%s11950_s18] sm:$0xff] %v7444_v0  ;;  %v12334_v42 = vld [vmem:[#allocation34_spill] sm:$0xff]  ;;  %v12335_v55 = vld [vmem:[#allocation35_spill] sm:$0xff] }
 0x5a2   : > { %7477 = vst [vmem:[%s11950_s18 + $0x8] sm:$0xff] %v7445_v56  ;;  %7478 = vst [vmem:[%s11950_s18 + $0x10] sm:$0xff] %v7446_v40  ;;  %v7455_v35 = vadd.f32 %v7423_v19, %v12325_v9  ;;  %v7456_v24 = vadd.f32 %v7424_v25, %v12326_v2  ;;  %v7457_v31 = vadd.f32 %v7425_v18, %v12327_v60  ;;  %v12336_v19 = vld [vmem:[#allocation36_spill] sm:$0xff]  ;;  %v12337_v18 = vld [vmem:[#allocation37_spill] sm:$0xff] }
 0x5a3   : > { %v7458_v14 = vadd.f32 %v7426_v51, %v12328_v3  ;;  %7479 = vst [vmem:[%s11950_s18 + $0x18] sm:$0xff] %v7447_v20  ;;  %7480 = vst [vmem:[%s11950_s18 + $0x20] sm:$0xff] %v7448_v44  ;;  %v7459_v29 = vadd.f32 %v7427_v62, %v12329_v13  ;;  %v7460_v61 = vadd.f32 %v7428_v36, %v12330_v8  ;;  %v12338_v62 = vld [vmem:[#allocation38_spill] sm:$0xff] }
 0x5a4   : > { %7481 = vst [vmem:[%s11950_s18 + $0x28] sm:$0xff] %v7449_v43  ;;  %7482 = vst [vmem:[%s11950_s18 + $0x30] sm:$0xff] %v7450_v48  ;;  %v7461_v11 = vadd.f32 %v7429_v57, %v12331_v54  ;;  %v7462_v59 = vadd.f32 %v7430_v17, %v12332_v39  ;;  %v7463_v6 = vadd.f32 %v7431_v63, %v12333_v49  ;;  %v12339_v57 = vld [vmem:[#allocation39_spill] sm:$0xff]  ;;  %v12340_v63 = vld [vmem:[#allocation40_spill] sm:$0xff] }
 0x5a5   : > { %7483 = vst [vmem:[%s11950_s18 + $0x38] sm:$0xff] %v7451_v46  ;;  %7484 = vst [vmem:[%s11950_s18 + $0x40] sm:$0xff] %v7452_v7  ;;  %v7464_v41 = vadd.f32 %v7432_v15, %v12334_v42  ;;  %v7465_v58 = vadd.f32 %v7433_v22, %v12335_v55  ;;  %v7466_v25 = vadd.f32 %v7434_v27, %v12336_v19  ;;  %v12341_v22 = vld [vmem:[#allocation41_spill] sm:$0xff] }
 0x5a6   : > { %7485 = vst [vmem:[%s11950_s18 + $0x48] sm:$0xff] %v7453_v5  ;;  %7486 = vst [vmem:[%s11950_s18 + $0x50] sm:$0xff] %v7454_v23  ;;  %v7467_v51 = vadd.f32 %v7435_v1, %v12337_v18  ;;  %v7468_v36 = vadd.f32 %v7436_v33, %v12338_v62  ;;  %v7469_v17 = vadd.f32 %v7437_v47, %v12339_v57  ;;  %v12342_v1 = vld [vmem:[#allocation42_spill] sm:$0xff]  ;;  %v12343_v47 = vld [vmem:[#allocation44_spill] sm:$0xff] }
 0x5a7   : > { %7487 = vst [vmem:[%s11950_s18 + $0x58] sm:$0xff] %v7455_v35  ;;  %7488 = vst [vmem:[%s11950_s18 + $0x60] sm:$0xff] %v7456_v24  ;;  %v7470_v15 = vadd.f32 %v7438_v10, %v12340_v63  ;;  %v7471_v27 = vadd.f32 %v7439_v52, %v12341_v22  ;;  %v7472_v33 = vadd.f32 %v7440_v32, %v12342_v1 }
 0x5a8   : > { %7489 = vst [vmem:[%s11950_s18 + $0x68] sm:$0xff] %v7457_v31  ;;  %7490 = vst [vmem:[%s11950_s18 + $0x70] sm:$0xff] %v7458_v14  ;;  %v7474_v10 = vadd.f32 %v7442_v4, %v12343_v47  ;;  %v7475_v0 = vadd.f32 %v7443_v21, %v12344_v38 }
 0x5a9   : > { %7491 = vst [vmem:[%s11950_s18 + $0x78] sm:$0xff] %v7459_v29  ;;  %7492 = vst [vmem:[%s11950_s18 + $0x80] sm:$0xff] %v7460_v61 }
 0x5aa   : > { %7493 = vst [vmem:[%s11950_s18 + $0x88] sm:$0xff] %v7461_v11  ;;  %7494 = vst [vmem:[%s11950_s18 + $0x90] sm:$0xff] %v7462_v59 }
 0x5ab   : > { %7495 = vst [vmem:[%s11950_s18 + $0x98] sm:$0xff] %v7463_v6  ;;  %7496 = vst [vmem:[%s11950_s18 + $0xa0] sm:$0xff] %v7464_v41 }
 0x5ac   : > { %7497 = vst [vmem:[%s11950_s18 + $0xa8] sm:$0xff] %v7465_v58  ;;  %7498 = vst [vmem:[%s11950_s18 + $0xb0] sm:$0xff] %v7466_v25 }
 0x5ad   : > { %7499 = vst [vmem:[%s11950_s18 + $0xb8] sm:$0xff] %v7467_v51  ;;  %7500 = vst [vmem:[%s11950_s18 + $0xc0] sm:$0xff] %v7468_v36 }
 0x5ae   : > { %7501 = vst [vmem:[%s11950_s18 + $0xc8] sm:$0xff] %v7469_v17  ;;  %7502 = vst [vmem:[%s11950_s18 + $0xd0] sm:$0xff] %v7470_v15 }
 0x5af   : > { %7503 = vst [vmem:[%s11950_s18 + $0xd8] sm:$0xff] %v7471_v27  ;;  %7504 = vst [vmem:[%s11950_s18 + $0xe0] sm:$0xff] %v7472_v33 }
 0x5b0   : > { %7506 = vst [vmem:[%s11950_s18 + $0xf0] sm:$0xff] %v7474_v10  ;;  %7507 = vst [vmem:[%s11950_s18 + $0xf8] sm:$0xff] %v7475_v0 }
 0x5b1   : > { %9388 = shalt.err (!%p9385_p9)
}
 0x5b2   : > { %s9389_s22 = scalar_lea.hbm %s12021_s28, 4096  ;;  %s9393_s26 = scalar_lea.hbm %s12085_s3, 8192 }
 0x5b3   : > { %p9390_p13 = scmp.ne.s32.totalorder %s12021_s28, %s9389_s22  ;;  %p9394_p4 = scmp.lt.s32.totalorder %s12021_s28, %s12085_s3 }
 0x5b4   : > { %p9395_p8 = scmp.lt.s32.totalorder %s9393_s26, %s9389_s22 }
 0x5b5   : > { %p9391_p5 = pnand %p9390_p13, %p12345_p10 }
 0x5b6   : > { %p9396_p3 = por %p9395_p8, %p9394_p4 }
 0x5b7   : > { %p9392_p0 = pneg %p9391_p5 }
 0x5b9   : > { %p9397_p11 = pnand %p9396_p3, %p9392_p0 }
 0x5bb   : > { %9400 = shalt.err (!%p9397_p11)
}
 0x5bc   : > { %s9453_s6 = smov 128   ;;  %s9454_s18 = smov 8  }
 0x5bd   : > { %9084 = dma.vmem_to_hbm [thread:$0]  (%p12345_p10), %s12023_s25, 4096, %s12021_s28, %s7509_s29, %s9453_s6, %s9453_s6, %s9454_s18  }
 0x5be PF: > { %s7537_s20 = sand.u32 1, %s9431_s12   ;;  %p12346_p1 = scmp.ne.s32.totalorder %s12123_s19, 0 }
 0x5bf   : > { %p12347_p2 = scmp.ge.s32.totalorder %s9443_s15, 2  ;;  %s7538_s16 = scalar_lea.sflag [#allocation6], %s7537_s20 }
 0x5c1   : > { %p9098_p6 = pnand %p12347_p2, %p12346_p1 }
 0x5c3   : > { %p9099_p12 = pneg %p9098_p6 }
 0x5c5   : > { %9426 = dma.done.wait (%p9099_p12), %s7538_s16, 4096  }
 0x5c6   : > { %9428 = vsyncadd (%p9099_p12), %s7538_s16, 4294963200  ;;  %p17_p7 = scmp.ge.s32.totalorder %s9547_s7, 4   ;;  %s12348_s12 = smov %s9435_s13 }
 0x5c7   : > { %s12349_s13 = smov %s9439_s14  ;;  %s12350_s14 = smov %s9563_s11 }
 0x5c8   : > { %s12351_s15 = smov %s9547_s7  ;;  %19 = sbr.rel (!%p17_p7) target bundleno = 6 (0x6), region = 104 }
 0x5cd   :  { %7543 = vsyncpa [#allocation5], 1 }
 0x5ce   :  { %7545 = vsyncpa [#allocation5 + $0x1], 1 }
 0x5cf   :  { %7546 = vsyncpa [#allocation8], 1 }
 0x5d0   :  { %7547 = vsyncpa [#allocation6], 1 }
 0x5d1   :  { %7549 = vsyncpa [#allocation6 + $0x1], 1 }

</bundles_post_ra>
